<compile_context>
chip_gen: v7x
topology: tpu7x:2x2x1
jax: 0.10.0
libtpu: 0.0.40
codegen_flags: <defaults>
</compile_context>

<pallas_src>
import functools
import math

import numpy as np
import jax
import jax.numpy as jnp
from jax import lax
from jax.experimental import pallas as pl
from jax.experimental.pallas import tpu as pltpu


def _round_up(x, m):
    return ((x + m - 1) // m) * m


def _bottleneck_kernel(x_ref, mask_ref, w1_ref, s1_ref, b1_ref,
                       w2_ref, s2_ref, b2_ref, w3_ref, s3_ref, b3_ref,
                       o_ref, halo_ref, *, spatial_w, pad_rows):
    """One batch-tile per grid step.

    x_ref: (M, CinP) f32 with M = B_TILE*H*W;  o_ref: (M, CoutP) f32.
    """
    m = x_ref.shape[0]
    bf16 = jnp.bfloat16

    # ---- conv1 (1x1) == channel matmul on the MXU, folded BN1, ReLU --------
    y1 = jnp.dot(x_ref[...].astype(bf16), w1_ref[...],
                 preferred_element_type=jnp.float32)
    y1 = jnp.maximum(y1 * s1_ref[...] + b1_ref[...], 0.0)

    # Stage y1 once in the halo scratch (aligned interior store only).  The
    # pad strips are NEVER initialized: every read that lands in them (or in
    # a neighbouring image) is killed by the where-select below.
    halo_ref[pad_rows:pad_rows + m, :] = y1

    # ---- conv2 (3x3, pad=1) as nine accumulated MXU dots --------------------
    acc = None
    for t in range(9):                      # static unroll of the 9 taps
        dy, dx = t // 3 - 1, t % 3 - 1
        start = pad_rows + dy * spatial_w + dx
        view = halo_ref[start:start + m, :]                  # (M, C1P) f32
        tap = jnp.where(mask_ref[t] != 0.0, view, 0.0).astype(bf16)
        d = jnp.dot(tap, w2_ref[t], preferred_element_type=jnp.float32)
        acc = d if acc is None else acc + d
    y2 = jnp.maximum(acc * s2_ref[...] + b2_ref[...], 0.0)

    # ---- conv3 (1x1), folded BN3, identity residual, final ReLU -------------
    y3 = jnp.dot(y2.astype(bf16), w3_ref[...],
                 preferred_element_type=jnp.float32)
    y3 = y3 * s3_ref[...] + b3_ref[...]
    o_ref[...] = jnp.maximum(y3 + x_ref[...], 0.0)           # residual_fn='sum'


def prepare_bottleneck(params, H, W, b_tile):
    """Pad/cast weights + folded-BN constants ONCE (hoisted off the call path)."""
    w1, s1, b1, w2, s2, b2, w3, s3, b3 = params
    Cin, C1 = w1.shape
    C2 = w2.shape[3]
    Cout = w3.shape[1]
    assert Cin == Cout, "identity residual requires inplanes == outplanes"
    HW = H * W
    CinP, C1P, C2P, CoutP = (_round_up(c, 128) for c in (Cin, C1, C2, Cout))
    assert CinP == CoutP

    f32, bf16 = jnp.float32, jnp.bfloat16
    # Lane-dense channel padding (multiples of 128) + bf16 weights for the MXU.
    w1p = jnp.pad(w1, ((0, CinP - Cin), (0, C1P - C1))).astype(bf16)
    w2p = jnp.pad(w2, ((0, 0), (0, 0), (0, C1P - C1), (0, C2P - C2))
                  ).astype(bf16).reshape(9, C1P, C2P)
    w3p = jnp.pad(w3, ((0, C2P - C2), (0, CoutP - Cout))).astype(bf16)
    pad_c = lambda a, cp: jnp.pad(a.astype(f32), ((0, 0), (0, cp - a.shape[1])))
    s1p, b1p = pad_c(s1, C1P), pad_c(b1, C1P)
    s2p, b2p = pad_c(s2, C2P), pad_c(b2, C2P)
    s3p, b3p = pad_c(s3, CoutP), pad_c(b3, CoutP)

    # Per-position validity of the nine 3x3 taps, tiled over the b_tile images
    # that share one grid step (the same masks kill cross-image taps).
    hh = np.arange(H)[:, None]
    ww = np.arange(W)[None, :]
    mask = np.stack(
        [(((hh + dy) >= 0) & ((hh + dy) < H) &
          ((ww + dx) >= 0) & ((ww + dx) < W)).reshape(HW, 1)
         for dy in (-1, 0, 1) for dx in (-1, 0, 1)], axis=0)
    mask = jnp.asarray(np.tile(mask, (1, b_tile, 1)), f32)

    consts = (mask, w1p, s1p, b1p, w2p, s2p, b2p, w3p, s3p, b3p)
    meta = dict(H=H, W=W, b_tile=b_tile, Cin=Cin, Cout=Cout,
                CinP=CinP, C1P=C1P, C2P=C2P, CoutP=CoutP)
    return consts, meta


def bottleneck_pallas(x_nhwc, prepped):
    """x_nhwc: (N,H,W,Cin) f32; prepped = prepare_bottleneck(...) output."""
    consts, meta = prepped
    mask, w1p, s1p, b1p, w2p, s2p, b2p, w3p, s3p, b3p = consts
    H, W, b_tile = meta['H'], meta['W'], meta['b_tile']
    Cin, Cout = meta['Cin'], meta['Cout']
    CinP, C1P, C2P, CoutP = meta['CinP'], meta['C1P'], meta['C2P'], meta['CoutP']

    N, Hx, Wx, Cx = x_nhwc.shape
    assert (Hx, Wx, Cx) == (H, W, Cin)
    assert N % b_tile == 0, "batch must be divisible by the per-step tile"
    HW = H * W
    M = b_tile * HW                          # rows per grid step (fills the MXU)
    pad_rows = _round_up(W + 1, 8)
    halo_rows = pad_rows + M + pad_rows

    f32 = jnp.float32
    xf = jnp.pad(x_nhwc.reshape(N * HW, Cin).astype(f32),
                 ((0, 0), (0, CinP - Cin)))

    def resident(shape):
        zero = (0,) * len(shape)
        return pl.BlockSpec(shape, lambda n: zero)   # grid-invariant, VMEM-resident

    kernel = functools.partial(_bottleneck_kernel, spatial_w=W, pad_rows=pad_rows)

    # VMEM budget derived from actual block sizes (2x for double buffering),
    # plus headroom, clamped to stay within v7x's 64 MiB per TensorCore.
    def nbytes(shape, dtype):
        return int(np.prod(shape)) * jnp.dtype(dtype).itemsize
    resident_bytes = (
        nbytes((9, M, 1), f32)
        + nbytes((CinP, C1P), jnp.bfloat16) + 2 * nbytes((1, C1P), f32)
        + nbytes((9, C1P, C2P), jnp.bfloat16) + 2 * nbytes((1, C2P), f32)
        + nbytes((C2P, CoutP), jnp.bfloat16) + 2 * nbytes((1, CoutP), f32))
    pipelined_bytes = nbytes((M, CinP), f32) + nbytes((M, CoutP), f32)
    scratch_bytes = nbytes((halo_rows, C1P), f32)
    vmem_limit = min(2 * (resident_bytes + pipelined_bytes) + scratch_bytes
                     + (8 << 20), 64 << 20)

    out = pl.pallas_call(
        kernel,
        out_shape=jax.ShapeDtypeStruct((N * HW, CoutP), f32),
        grid=(N // b_tile,),
        in_specs=[
            pl.BlockSpec((M, CinP), lambda n: (n, 0)),        # activations
            resident((9, M, 1)),                              # tap masks
            resident((CinP, C1P)), resident((1, C1P)), resident((1, C1P)),
            resident((9, C1P, C2P)), resident((1, C2P)), resident((1, C2P)),
            resident((C2P, CoutP)), resident((1, CoutP)), resident((1, CoutP)),
        ],
        out_specs=pl.BlockSpec((M, CoutP), lambda n: (n, 0)),
        scratch_shapes=[pltpu.VMEM((halo_rows, C1P), f32)],
        compiler_params=pltpu.CompilerParams(
            dimension_semantics=("parallel",),
            vmem_limit_bytes=vmem_limit),
    )(xf, mask, w1p, s1p, b1p, w2p, s2p, b2p, w3p, s3p, b3p)

    # Standalone block: unpad back to Cout.  When chaining Bottleneck blocks,
    # keep the CoutP-padded (N*HW, CoutP) layout and pay this slice only once.
    return out.reshape(N, H, W, CoutP)[..., :Cout]


def bottleneck_ref(x_nhwc, params):
    """Pure-JAX reference (lax convs) with the same bf16 quantization points."""
    w1, s1, b1, w2, s2, b2, w3, s3, b3 = params
    dn = ('NHWC', 'HWIO', 'NHWC')
    bf, f32 = jnp.bfloat16, jnp.float32
    y = lax.conv_general_dilated(
        x_nhwc.astype(bf), w1.reshape(1, 1, *w1.shape).astype(bf), (1, 1),
        'VALID', dimension_numbers=dn, preferred_element_type=f32)
    y = jnp.maximum(y * s1 + b1, 0.0)
    y = lax.conv_general_dilated(
        y.astype(bf), w2.astype(bf), (1, 1), ((1, 1), (1, 1)),
        dimension_numbers=dn, preferred_element_type=f32)
    y = jnp.maximum(y * s2 + b2, 0.0)
    y = lax.conv_general_dilated(
        y.astype(bf), w3.reshape(1, 1, *w3.shape).astype(bf), (1, 1),
        'VALID', dimension_numbers=dn, preferred_element_type=f32)
    y = y * s3 + b3
    return jnp.maximum(y + x_nhwc, 0.0)


def _fold_bn(key, c, eps=1e-5):
    """Deterministic BN params folded to (scale, bias), each shaped (1, c)."""
    k1, k2, k3, k4 = jax.random.split(key, 4)
    gamma = 1.0 + 0.1 * jax.random.normal(k1, (c,), jnp.float32)
    beta = 0.1 * jax.random.normal(k2, (c,), jnp.float32)
    mean = 0.1 * jax.random.normal(k3, (c,), jnp.float32)
    var = 1.0 + 0.1 * jax.random.uniform(k4, (c,), jnp.float32)
    scale = gamma / jnp.sqrt(var + eps)
    bias = beta - mean * scale
    return scale.reshape(1, c), bias.reshape(1, c)


if __name__ == "__main__":
    # Module hyper-params (small, consistent with Bottleneck.__init__):
    inplanes = 32
    planes = 8
    cardinality, base_width, reduce_first = 1, 64, 1
    width = int(math.floor(planes * (base_width / 64)) * cardinality)   # 8
    first_planes = width // reduce_first                                 # 8
    outplanes = planes * 4                                               # 32
    assert inplanes == outplanes  # identity residual (downsample=None)

    N, H, W = 8, 8, 8
    key = jax.random.PRNGKey(0)
    kx, kw1, kw2, kw3, kb1, kb2, kb3 = jax.random.split(key, 7)

    # Input in PyTorch NCHW convention, transposed to the kernel layout (NHWC).
    x_nchw = jax.random.normal(kx, (N, inplanes, H, W), jnp.float32)
    x_nhwc = jnp.transpose(x_nchw, (0, 2, 3, 1))

    # Conv weights (bias=False): 1x1 convs as (Cin, Cout); 3x3 conv as HWIO.
    w1 = 0.1 * jax.random.normal(kw1, (inplanes, first_planes), jnp.float32)
    w2 = 0.1 * jax.random.normal(kw2, (3, 3, first_planes, width), jnp.float32)
    w3 = 0.1 * jax.random.normal(kw3, (width, outplanes), jnp.float32)

    s1, b1 = _fold_bn(kb1, first_planes)
    s2, b2 = _fold_bn(kb2, width)
    s3, b3 = _fold_bn(kb3, outplanes)
    params = (w1, s1, b1, w2, s2, b2, w3, s3, b3)

    # 4 images per grid step on v6e/v7x-sized MXUs (falls back if N is small).
    b_tile = max(b for b in (4, 2, 1) if N % b == 0)
    prepped = prepare_bottleneck(params, H, W, b_tile)   # hoisted, done once

    out = jax.block_until_ready(bottleneck_pallas(x_nhwc, prepped))
    ref = jax.block_until_ready(bottleneck_ref(x_nhwc, params))

    assert out.shape == (N, H, W, outplanes)
    assert jnp.allclose(out, ref, rtol=1e-2, atol=1e-2), "mismatch vs reference"

    print("KERNEL_OK")
</pallas_src>

<mosaic_0001>
module attributes {stable_mosaic.version = 11 : i64} {
  func.func @_bottleneck_kernel(%arg0: i32, %arg1: memref<256x128xf32, #tpu.memory_space<vmem>>, %arg2: memref<9x256x1xf32, #tpu.memory_space<vmem>>, %arg3: memref<128x128xbf16, #tpu.memory_space<vmem>>, %arg4: memref<1x128xf32, #tpu.memory_space<vmem>>, %arg5: memref<1x128xf32, #tpu.memory_space<vmem>>, %arg6: memref<9x128x128xbf16, #tpu.memory_space<vmem>>, %arg7: memref<1x128xf32, #tpu.memory_space<vmem>>, %arg8: memref<1x128xf32, #tpu.memory_space<vmem>>, %arg9: memref<128x128xbf16, #tpu.memory_space<vmem>>, %arg10: memref<1x128xf32, #tpu.memory_space<vmem>>, %arg11: memref<1x128xf32, #tpu.memory_space<vmem>>, %arg12: memref<256x128xf32, #tpu.memory_space<vmem>>, %arg13: memref<288x128xf32, #tpu.memory_space<vmem>>) attributes {dimension_semantics = [#tpu.dimension_semantics<parallel>], iteration_bounds = array<i64: 2>, scalar_prefetch = 0 : i64, scratch_operands = 1 : i64, tpu.core_type = #tpu.core_type<tc>, window_params = [{transform_indices = @transform_0, window_bounds = array<i64: 256, 128>}, {pipeline_mode = #tpu.pipeline_mode<synchronous>, transform_indices = @transform_1, window_bounds = array<i64: 9, 256, 1>}, {pipeline_mode = #tpu.pipeline_mode<synchronous>, transform_indices = @transform_2, window_bounds = array<i64: 128, 128>}, {pipeline_mode = #tpu.pipeline_mode<synchronous>, transform_indices = @transform_3, window_bounds = array<i64: 1, 128>}, {pipeline_mode = #tpu.pipeline_mode<synchronous>, transform_indices = @transform_4, window_bounds = array<i64: 1, 128>}, {pipeline_mode = #tpu.pipeline_mode<synchronous>, transform_indices = @transform_5, window_bounds = array<i64: 9, 128, 128>}, {pipeline_mode = #tpu.pipeline_mode<synchronous>, transform_indices = @transform_6, window_bounds = array<i64: 1, 128>}, {pipeline_mode = #tpu.pipeline_mode<synchronous>, transform_indices = @transform_7, window_bounds = array<i64: 1, 128>}, {pipeline_mode = #tpu.pipeline_mode<synchronous>, transform_indices = @transform_8, window_bounds = array<i64: 128, 128>}, {pipeline_mode = #tpu.pipeline_mode<synchronous>, transform_indices = @transform_9, window_bounds = array<i64: 1, 128>}, {pipeline_mode = #tpu.pipeline_mode<synchronous>, transform_indices = @transform_10, window_bounds = array<i64: 1, 128>}, {transform_indices = @transform_11, window_bounds = array<i64: 256, 128>}]} {
    %c0 = arith.constant 0 : index
    %c0_0 = arith.constant 0 : index
    %0 = vector.load %arg1[%c0, %c0_0] : memref<256x128xf32, #tpu.memory_space<vmem>>, vector<256x128xf32>
    %1 = arith.truncf %0 : vector<256x128xf32> to vector<256x128xbf16>
    %c0_1 = arith.constant 0 : index
    %c0_2 = arith.constant 0 : index
    %2 = vector.load %arg3[%c0_1, %c0_2] : memref<128x128xbf16, #tpu.memory_space<vmem>>, vector<128x128xbf16>
    %cst = arith.constant dense<0.000000e+00> : vector<256x128xf32>
    %3 = tpu.matmul %1, %2, %cst {dimension_numbers = #tpu.dot_dimension_numbers<[1], [0], [0], [1], [0, 0, 1, 1], [], []>} : vector<256x128xbf16>, vector<128x128xbf16>, vector<256x128xf32> -> vector<256x128xf32>
    %c0_3 = arith.constant 0 : index
    %c0_4 = arith.constant 0 : index
    %4 = vector.load %arg4[%c0_3, %c0_4] : memref<1x128xf32, #tpu.memory_space<vmem>>, vector<1x128xf32>
    %5 = vector.broadcast %4 : vector<1x128xf32> to vector<256x128xf32>
    %6 = arith.mulf %3, %5 : vector<256x128xf32>
    %c0_5 = arith.constant 0 : index
    %c0_6 = arith.constant 0 : index
    %7 = vector.load %arg5[%c0_5, %c0_6] : memref<1x128xf32, #tpu.memory_space<vmem>>, vector<1x128xf32>
    %8 = vector.broadcast %7 : vector<1x128xf32> to vector<256x128xf32>
    %9 = arith.addf %6, %8 : vector<256x128xf32>
    %cst_7 = arith.constant 0.000000e+00 : f32
    %10 = vector.broadcast %cst_7 : f32 to vector<256x128xf32>
    %11 = arith.maximumf %9, %10 : vector<256x128xf32>
    %c16 = arith.constant 16 : index
    %c0_8 = arith.constant 0 : index
    %12 = vector.load %arg13[%c16, %c0_8] : memref<288x128xf32, #tpu.memory_space<vmem>>, vector<256x128xf32>
    tpu.vector_store %arg13[%c16, %c0_8], %11 {strides = array<i32>} : memref<288x128xf32, #tpu.memory_space<vmem>>, vector<256x128xf32>,
    %c7 = arith.constant 7 : index
    %c0_9 = arith.constant 0 : index
    %13 = vector.load %arg13[%c7, %c0_9] : memref<288x128xf32, #tpu.memory_space<vmem>>, vector<256x128xf32>
    %c0_10 = arith.constant 0 : index
    %c0_11 = arith.constant 0 : index
    %c0_12 = arith.constant 0 : index
    %14 = vector.load %arg2[%c0_10, %c0_11, %c0_12] : memref<9x256x1xf32, #tpu.memory_space<vmem>>, vector<1x256x1xf32>
    %15 = vector.shape_cast %14 : vector<1x256x1xf32> to vector<256x1xf32>
    %cst_13 = arith.constant 0.000000e+00 : f32
    %16 = vector.broadcast %cst_13 : f32 to vector<256x1xf32>
    %17 = arith.cmpf one, %15, %16 : vector<256x1xf32>
    %cst_14 = arith.constant 0.000000e+00 : f32
    %18 = vector.shape_cast %17 : vector<256x1xi1> to vector<256x1xi1>
    %19 = vector.broadcast %18 : vector<256x1xi1> to vector<256x128xi1>
    %20 = vector.broadcast %cst_14 : f32 to vector<256x128xf32>
    %21 = arith.select %19, %13, %20 : vector<256x128xi1>, vector<256x128xf32>
    %22 = arith.truncf %21 : vector<256x128xf32> to vector<256x128xbf16>
    %c0_15 = arith.constant 0 : index
    %c0_16 = arith.constant 0 : index
    %c0_17 = arith.constant 0 : index
    %23 = vector.load %arg6[%c0_15, %c0_16, %c0_17] : memref<9x128x128xbf16, #tpu.memory_space<vmem>>, vector<1x128x128xbf16>
    %24 = vector.shape_cast %23 : vector<1x128x128xbf16> to vector<128x128xbf16>
    %cst_18 = arith.constant dense<0.000000e+00> : vector<256x128xf32>
    %25 = tpu.matmul %22, %24, %cst_18 {dimension_numbers = #tpu.dot_dimension_numbers<[1], [0], [0], [1], [0, 0, 1, 1], [], []>} : vector<256x128xbf16>, vector<128x128xbf16>, vector<256x128xf32> -> vector<256x128xf32>
    %c8 = arith.constant 8 : index
    %c0_19 = arith.constant 0 : index
    %26 = vector.load %arg13[%c8, %c0_19] : memref<288x128xf32, #tpu.memory_space<vmem>>, vector<256x128xf32>
    %c1 = arith.constant 1 : index
    %c0_20 = arith.constant 0 : index
    %c0_21 = arith.constant 0 : index
    %27 = vector.load %arg2[%c1, %c0_20, %c0_21] : memref<9x256x1xf32, #tpu.memory_space<vmem>>, vector<1x256x1xf32>
    %28 = vector.shape_cast %27 : vector<1x256x1xf32> to vector<256x1xf32>
    %cst_22 = arith.constant 0.000000e+00 : f32
    %29 = vector.broadcast %cst_22 : f32 to vector<256x1xf32>
    %30 = arith.cmpf one, %28, %29 : vector<256x1xf32>
    %cst_23 = arith.constant 0.000000e+00 : f32
    %31 = vector.shape_cast %30 : vector<256x1xi1> to vector<256x1xi1>
    %32 = vector.broadcast %31 : vector<256x1xi1> to vector<256x128xi1>
    %33 = vector.broadcast %cst_23 : f32 to vector<256x128xf32>
    %34 = arith.select %32, %26, %33 : vector<256x128xi1>, vector<256x128xf32>
    %35 = arith.truncf %34 : vector<256x128xf32> to vector<256x128xbf16>
    %c1_24 = arith.constant 1 : index
    %c0_25 = arith.constant 0 : index
    %c0_26 = arith.constant 0 : index
    %36 = vector.load %arg6[%c1_24, %c0_25, %c0_26] : memref<9x128x128xbf16, #tpu.memory_space<vmem>>, vector<1x128x128xbf16>
    %37 = vector.shape_cast %36 : vector<1x128x128xbf16> to vector<128x128xbf16>
    %cst_27 = arith.constant dense<0.000000e+00> : vector<256x128xf32>
    %38 = tpu.matmul %35, %37, %cst_27 {dimension_numbers = #tpu.dot_dimension_numbers<[1], [0], [0], [1], [0, 0, 1, 1], [], []>} : vector<256x128xbf16>, vector<128x128xbf16>, vector<256x128xf32> -> vector<256x128xf32>
    %39 = arith.addf %25, %38 : vector<256x128xf32>
    %c9 = arith.constant 9 : index
    %c0_28 = arith.constant 0 : index
    %40 = vector.load %arg13[%c9, %c0_28] : memref<288x128xf32, #tpu.memory_space<vmem>>, vector<256x128xf32>
    %c2 = arith.constant 2 : index
    %c0_29 = arith.constant 0 : index
    %c0_30 = arith.constant 0 : index
    %41 = vector.load %arg2[%c2, %c0_29, %c0_30] : memref<9x256x1xf32, #tpu.memory_space<vmem>>, vector<1x256x1xf32>
    %42 = vector.shape_cast %41 : vector<1x256x1xf32> to vector<256x1xf32>
    %cst_31 = arith.constant 0.000000e+00 : f32
    %43 = vector.broadcast %cst_31 : f32 to vector<256x1xf32>
    %44 = arith.cmpf one, %42, %43 : vector<256x1xf32>
    %cst_32 = arith.constant 0.000000e+00 : f32
    %45 = vector.shape_cast %44 : vector<256x1xi1> to vector<256x1xi1>
    %46 = vector.broadcast %45 : vector<256x1xi1> to vector<256x128xi1>
    %47 = vector.broadcast %cst_32 : f32 to vector<256x128xf32>
    %48 = arith.select %46, %40, %47 : vector<256x128xi1>, vector<256x128xf32>
    %49 = arith.truncf %48 : vector<256x128xf32> to vector<256x128xbf16>
    %c2_33 = arith.constant 2 : index
    %c0_34 = arith.constant 0 : index
    %c0_35 = arith.constant 0 : index
    %50 = vector.load %arg6[%c2_33, %c0_34, %c0_35] : memref<9x128x128xbf16, #tpu.memory_space<vmem>>, vector<1x128x128xbf16>
    %51 = vector.shape_cast %50 : vector<1x128x128xbf16> to vector<128x128xbf16>
    %cst_36 = arith.constant dense<0.000000e+00> : vector<256x128xf32>
    %52 = tpu.matmul %49, %51, %cst_36 {dimension_numbers = #tpu.dot_dimension_numbers<[1], [0], [0], [1], [0, 0, 1, 1], [], []>} : vector<256x128xbf16>, vector<128x128xbf16>, vector<256x128xf32> -> vector<256x128xf32>
    %53 = arith.addf %39, %52 : vector<256x128xf32>
    %c15 = arith.constant 15 : index
    %c0_37 = arith.constant 0 : index
    %54 = vector.load %arg13[%c15, %c0_37] : memref<288x128xf32, #tpu.memory_space<vmem>>, vector<256x128xf32>
    %c3 = arith.constant 3 : index
    %c0_38 = arith.constant 0 : index
    %c0_39 = arith.constant 0 : index
    %55 = vector.load %arg2[%c3, %c0_38, %c0_39] : memref<9x256x1xf32, #tpu.memory_space<vmem>>, vector<1x256x1xf32>
    %56 = vector.shape_cast %55 : vector<1x256x1xf32> to vector<256x1xf32>
    %cst_40 = arith.constant 0.000000e+00 : f32
    %57 = vector.broadcast %cst_40 : f32 to vector<256x1xf32>
    %58 = arith.cmpf one, %56, %57 : vector<256x1xf32>
    %cst_41 = arith.constant 0.000000e+00 : f32
    %59 = vector.shape_cast %58 : vector<256x1xi1> to vector<256x1xi1>
    %60 = vector.broadcast %59 : vector<256x1xi1> to vector<256x128xi1>
    %61 = vector.broadcast %cst_41 : f32 to vector<256x128xf32>
    %62 = arith.select %60, %54, %61 : vector<256x128xi1>, vector<256x128xf32>
    %63 = arith.truncf %62 : vector<256x128xf32> to vector<256x128xbf16>
    %c3_42 = arith.constant 3 : index
    %c0_43 = arith.constant 0 : index
    %c0_44 = arith.constant 0 : index
    %64 = vector.load %arg6[%c3_42, %c0_43, %c0_44] : memref<9x128x128xbf16, #tpu.memory_space<vmem>>, vector<1x128x128xbf16>
    %65 = vector.shape_cast %64 : vector<1x128x128xbf16> to vector<128x128xbf16>
    %cst_45 = arith.constant dense<0.000000e+00> : vector<256x128xf32>
    %66 = tpu.matmul %63, %65, %cst_45 {dimension_numbers = #tpu.dot_dimension_numbers<[1], [0], [0], [1], [0, 0, 1, 1], [], []>} : vector<256x128xbf16>, vector<128x128xbf16>, vector<256x128xf32> -> vector<256x128xf32>
    %67 = arith.addf %53, %66 : vector<256x128xf32>
    %c16_46 = arith.constant 16 : index
    %c0_47 = arith.constant 0 : index
    %68 = vector.load %arg13[%c16_46, %c0_47] : memref<288x128xf32, #tpu.memory_space<vmem>>, vector<256x128xf32>
    %c4 = arith.constant 4 : index
    %c0_48 = arith.constant 0 : index
    %c0_49 = arith.constant 0 : index
    %69 = vector.load %arg2[%c4, %c0_48, %c0_49] : memref<9x256x1xf32, #tpu.memory_space<vmem>>, vector<1x256x1xf32>
    %70 = vector.shape_cast %69 : vector<1x256x1xf32> to vector<256x1xf32>
    %cst_50 = arith.constant 0.000000e+00 : f32
    %71 = vector.broadcast %cst_50 : f32 to vector<256x1xf32>
    %72 = arith.cmpf one, %70, %71 : vector<256x1xf32>
    %cst_51 = arith.constant 0.000000e+00 : f32
    %73 = vector.shape_cast %72 : vector<256x1xi1> to vector<256x1xi1>
    %74 = vector.broadcast %73 : vector<256x1xi1> to vector<256x128xi1>
    %75 = vector.broadcast %cst_51 : f32 to vector<256x128xf32>
    %76 = arith.select %74, %68, %75 : vector<256x128xi1>, vector<256x128xf32>
    %77 = arith.truncf %76 : vector<256x128xf32> to vector<256x128xbf16>
    %c4_52 = arith.constant 4 : index
    %c0_53 = arith.constant 0 : index
    %c0_54 = arith.constant 0 : index
    %78 = vector.load %arg6[%c4_52, %c0_53, %c0_54] : memref<9x128x128xbf16, #tpu.memory_space<vmem>>, vector<1x128x128xbf16>
    %79 = vector.shape_cast %78 : vector<1x128x128xbf16> to vector<128x128xbf16>
    %cst_55 = arith.constant dense<0.000000e+00> : vector<256x128xf32>
    %80 = tpu.matmul %77, %79, %cst_55 {dimension_numbers = #tpu.dot_dimension_numbers<[1], [0], [0], [1], [0, 0, 1, 1], [], []>} : vector<256x128xbf16>, vector<128x128xbf16>, vector<256x128xf32> -> vector<256x128xf32>
    %81 = arith.addf %67, %80 : vector<256x128xf32>
    %c17 = arith.constant 17 : index
    %c0_56 = arith.constant 0 : index
    %82 = vector.load %arg13[%c17, %c0_56] : memref<288x128xf32, #tpu.memory_space<vmem>>, vector<256x128xf32>
    %c5 = arith.constant 5 : index
    %c0_57 = arith.constant 0 : index
    %c0_58 = arith.constant 0 : index
    %83 = vector.load %arg2[%c5, %c0_57, %c0_58] : memref<9x256x1xf32, #tpu.memory_space<vmem>>, vector<1x256x1xf32>
    %84 = vector.shape_cast %83 : vector<1x256x1xf32> to vector<256x1xf32>
    %cst_59 = arith.constant 0.000000e+00 : f32
    %85 = vector.broadcast %cst_59 : f32 to vector<256x1xf32>
    %86 = arith.cmpf one, %84, %85 : vector<256x1xf32>
    %cst_60 = arith.constant 0.000000e+00 : f32
    %87 = vector.shape_cast %86 : vector<256x1xi1> to vector<256x1xi1>
    %88 = vector.broadcast %87 : vector<256x1xi1> to vector<256x128xi1>
    %89 = vector.broadcast %cst_60 : f32 to vector<256x128xf32>
    %90 = arith.select %88, %82, %89 : vector<256x128xi1>, vector<256x128xf32>
    %91 = arith.truncf %90 : vector<256x128xf32> to vector<256x128xbf16>
    %c5_61 = arith.constant 5 : index
    %c0_62 = arith.constant 0 : index
    %c0_63 = arith.constant 0 : index
    %92 = vector.load %arg6[%c5_61, %c0_62, %c0_63] : memref<9x128x128xbf16, #tpu.memory_space<vmem>>, vector<1x128x128xbf16>
    %93 = vector.shape_cast %92 : vector<1x128x128xbf16> to vector<128x128xbf16>
    %cst_64 = arith.constant dense<0.000000e+00> : vector<256x128xf32>
    %94 = tpu.matmul %91, %93, %cst_64 {dimension_numbers = #tpu.dot_dimension_numbers<[1], [0], [0], [1], [0, 0, 1, 1], [], []>} : vector<256x128xbf16>, vector<128x128xbf16>, vector<256x128xf32> -> vector<256x128xf32>
    %95 = arith.addf %81, %94 : vector<256x128xf32>
    %c23 = arith.constant 23 : index
    %c0_65 = arith.constant 0 : index
    %96 = vector.load %arg13[%c23, %c0_65] : memref<288x128xf32, #tpu.memory_space<vmem>>, vector<256x128xf32>
    %c6 = arith.constant 6 : index
    %c0_66 = arith.constant 0 : index
    %c0_67 = arith.constant 0 : index
    %97 = vector.load %arg2[%c6, %c0_66, %c0_67] : memref<9x256x1xf32, #tpu.memory_space<vmem>>, vector<1x256x1xf32>
    %98 = vector.shape_cast %97 : vector<1x256x1xf32> to vector<256x1xf32>
    %cst_68 = arith.constant 0.000000e+00 : f32
    %99 = vector.broadcast %cst_68 : f32 to vector<256x1xf32>
    %100 = arith.cmpf one, %98, %99 : vector<256x1xf32>
    %cst_69 = arith.constant 0.000000e+00 : f32
    %101 = vector.shape_cast %100 : vector<256x1xi1> to vector<256x1xi1>
    %102 = vector.broadcast %101 : vector<256x1xi1> to vector<256x128xi1>
    %103 = vector.broadcast %cst_69 : f32 to vector<256x128xf32>
    %104 = arith.select %102, %96, %103 : vector<256x128xi1>, vector<256x128xf32>
    %105 = arith.truncf %104 : vector<256x128xf32> to vector<256x128xbf16>
    %c6_70 = arith.constant 6 : index
    %c0_71 = arith.constant 0 : index
    %c0_72 = arith.constant 0 : index
    %106 = vector.load %arg6[%c6_70, %c0_71, %c0_72] : memref<9x128x128xbf16, #tpu.memory_space<vmem>>, vector<1x128x128xbf16>
    %107 = vector.shape_cast %106 : vector<1x128x128xbf16> to vector<128x128xbf16>
    %cst_73 = arith.constant dense<0.000000e+00> : vector<256x128xf32>
    %108 = tpu.matmul %105, %107, %cst_73 {dimension_numbers = #tpu.dot_dimension_numbers<[1], [0], [0], [1], [0, 0, 1, 1], [], []>} : vector<256x128xbf16>, vector<128x128xbf16>, vector<256x128xf32> -> vector<256x128xf32>
    %109 = arith.addf %95, %108 : vector<256x128xf32>
    %c24 = arith.constant 24 : index
    %c0_74 = arith.constant 0 : index
    %110 = vector.load %arg13[%c24, %c0_74] : memref<288x128xf32, #tpu.memory_space<vmem>>, vector<256x128xf32>
    %c7_75 = arith.constant 7 : index
    %c0_76 = arith.constant 0 : index
    %c0_77 = arith.constant 0 : index
    %111 = vector.load %arg2[%c7_75, %c0_76, %c0_77] : memref<9x256x1xf32, #tpu.memory_space<vmem>>, vector<1x256x1xf32>
    %112 = vector.shape_cast %111 : vector<1x256x1xf32> to vector<256x1xf32>
    %cst_78 = arith.constant 0.000000e+00 : f32
    %113 = vector.broadcast %cst_78 : f32 to vector<256x1xf32>
    %114 = arith.cmpf one, %112, %113 : vector<256x1xf32>
    %cst_79 = arith.constant 0.000000e+00 : f32
    %115 = vector.shape_cast %114 : vector<256x1xi1> to vector<256x1xi1>
    %116 = vector.broadcast %115 : vector<256x1xi1> to vector<256x128xi1>
    %117 = vector.broadcast %cst_79 : f32 to vector<256x128xf32>
    %118 = arith.select %116, %110, %117 : vector<256x128xi1>, vector<256x128xf32>
    %119 = arith.truncf %118 : vector<256x128xf32> to vector<256x128xbf16>
    %c7_80 = arith.constant 7 : index
    %c0_81 = arith.constant 0 : index
    %c0_82 = arith.constant 0 : index
    %120 = vector.load %arg6[%c7_80, %c0_81, %c0_82] : memref<9x128x128xbf16, #tpu.memory_space<vmem>>, vector<1x128x128xbf16>
    %121 = vector.shape_cast %120 : vector<1x128x128xbf16> to vector<128x128xbf16>
    %cst_83 = arith.constant dense<0.000000e+00> : vector<256x128xf32>
    %122 = tpu.matmul %119, %121, %cst_83 {dimension_numbers = #tpu.dot_dimension_numbers<[1], [0], [0], [1], [0, 0, 1, 1], [], []>} : vector<256x128xbf16>, vector<128x128xbf16>, vector<256x128xf32> -> vector<256x128xf32>
    %123 = arith.addf %109, %122 : vector<256x128xf32>
    %c25 = arith.constant 25 : index
    %c0_84 = arith.constant 0 : index
    %124 = vector.load %arg13[%c25, %c0_84] : memref<288x128xf32, #tpu.memory_space<vmem>>, vector<256x128xf32>
    %c8_85 = arith.constant 8 : index
    %c0_86 = arith.constant 0 : index
    %c0_87 = arith.constant 0 : index
    %125 = vector.load %arg2[%c8_85, %c0_86, %c0_87] : memref<9x256x1xf32, #tpu.memory_space<vmem>>, vector<1x256x1xf32>
    %126 = vector.shape_cast %125 : vector<1x256x1xf32> to vector<256x1xf32>
    %cst_88 = arith.constant 0.000000e+00 : f32
    %127 = vector.broadcast %cst_88 : f32 to vector<256x1xf32>
    %128 = arith.cmpf one, %126, %127 : vector<256x1xf32>
    %cst_89 = arith.constant 0.000000e+00 : f32
    %129 = vector.shape_cast %128 : vector<256x1xi1> to vector<256x1xi1>
    %130 = vector.broadcast %129 : vector<256x1xi1> to vector<256x128xi1>
    %131 = vector.broadcast %cst_89 : f32 to vector<256x128xf32>
    %132 = arith.select %130, %124, %131 : vector<256x128xi1>, vector<256x128xf32>
    %133 = arith.truncf %132 : vector<256x128xf32> to vector<256x128xbf16>
    %c8_90 = arith.constant 8 : index
    %c0_91 = arith.constant 0 : index
    %c0_92 = arith.constant 0 : index
    %134 = vector.load %arg6[%c8_90, %c0_91, %c0_92] : memref<9x128x128xbf16, #tpu.memory_space<vmem>>, vector<1x128x128xbf16>
    %135 = vector.shape_cast %134 : vector<1x128x128xbf16> to vector<128x128xbf16>
    %cst_93 = arith.constant dense<0.000000e+00> : vector<256x128xf32>
    %136 = tpu.matmul %133, %135, %cst_93 {dimension_numbers = #tpu.dot_dimension_numbers<[1], [0], [0], [1], [0, 0, 1, 1], [], []>} : vector<256x128xbf16>, vector<128x128xbf16>, vector<256x128xf32> -> vector<256x128xf32>
    %137 = arith.addf %123, %136 : vector<256x128xf32>
    %c0_94 = arith.constant 0 : index
    %c0_95 = arith.constant 0 : index
    %138 = vector.load %arg7[%c0_94, %c0_95] : memref<1x128xf32, #tpu.memory_space<vmem>>, vector<1x128xf32>
    %139 = vector.broadcast %138 : vector<1x128xf32> to vector<256x128xf32>
    %140 = arith.mulf %137, %139 : vector<256x128xf32>
    %c0_96 = arith.constant 0 : index
    %c0_97 = arith.constant 0 : index
    %141 = vector.load %arg8[%c0_96, %c0_97] : memref<1x128xf32, #tpu.memory_space<vmem>>, vector<1x128xf32>
    %142 = vector.broadcast %141 : vector<1x128xf32> to vector<256x128xf32>
    %143 = arith.addf %140, %142 : vector<256x128xf32>
    %cst_98 = arith.constant 0.000000e+00 : f32
    %144 = vector.broadcast %cst_98 : f32 to vector<256x128xf32>
    %145 = arith.maximumf %143, %144 : vector<256x128xf32>
    %146 = arith.truncf %145 : vector<256x128xf32> to vector<256x128xbf16>
    %c0_99 = arith.constant 0 : index
    %c0_100 = arith.constant 0 : index
    %147 = vector.load %arg9[%c0_99, %c0_100] : memref<128x128xbf16, #tpu.memory_space<vmem>>, vector<128x128xbf16>
    %cst_101 = arith.constant dense<0.000000e+00> : vector<256x128xf32>
    %148 = tpu.matmul %146, %147, %cst_101 {dimension_numbers = #tpu.dot_dimension_numbers<[1], [0], [0], [1], [0, 0, 1, 1], [], []>} : vector<256x128xbf16>, vector<128x128xbf16>, vector<256x128xf32> -> vector<256x128xf32>
    %c0_102 = arith.constant 0 : index
    %c0_103 = arith.constant 0 : index
    %149 = vector.load %arg10[%c0_102, %c0_103] : memref<1x128xf32, #tpu.memory_space<vmem>>, vector<1x128xf32>
    %150 = vector.broadcast %149 : vector<1x128xf32> to vector<256x128xf32>
    %151 = arith.mulf %148, %150 : vector<256x128xf32>
    %c0_104 = arith.constant 0 : index
    %c0_105 = arith.constant 0 : index
    %152 = vector.load %arg11[%c0_104, %c0_105] : memref<1x128xf32, #tpu.memory_space<vmem>>, vector<1x128xf32>
    %153 = vector.broadcast %152 : vector<1x128xf32> to vector<256x128xf32>
    %154 = arith.addf %151, %153 : vector<256x128xf32>
    %c0_106 = arith.constant 0 : index
    %c0_107 = arith.constant 0 : index
    %155 = vector.load %arg1[%c0_106, %c0_107] : memref<256x128xf32, #tpu.memory_space<vmem>>, vector<256x128xf32>
    %156 = arith.addf %154, %155 : vector<256x128xf32>
    %cst_108 = arith.constant 0.000000e+00 : f32
    %157 = vector.broadcast %cst_108 : f32 to vector<256x128xf32>
    %158 = arith.maximumf %156, %157 : vector<256x128xf32>
    %c0_109 = arith.constant 0 : index
    %c0_110 = arith.constant 0 : index
    %159 = vector.load %arg12[%c0_109, %c0_110] : memref<256x128xf32, #tpu.memory_space<vmem>>, vector<256x128xf32>
    tpu.vector_store %arg12[%c0_109, %c0_110], %158 {strides = array<i32>} : memref<256x128xf32, #tpu.memory_space<vmem>>, vector<256x128xf32>,
    return
  }
  func.func @transform_0(%arg0: i32) -> (i32, i32) {
    %c0_i32 = arith.constant 0 : i32
    %c0_i32_0 = arith.constant 0 : i32
    return %arg0, %c0_i32 : i32, i32
  }
  func.func @transform_1(%arg0: i32) -> (i32, i32, i32) {
    %c0_i32 = arith.constant 0 : i32
    %c0_i32_0 = arith.constant 0 : i32
    %c0_i32_1 = arith.constant 0 : i32
    %c0_i32_2 = arith.constant 0 : i32
    return %c0_i32, %c0_i32_0, %c0_i32_1 : i32, i32, i32
  }
  func.func @transform_2(%arg0: i32) -> (i32, i32) {
    %c0_i32 = arith.constant 0 : i32
    %c0_i32_0 = arith.constant 0 : i32
    %c0_i32_1 = arith.constant 0 : i32
    return %c0_i32, %c0_i32_0 : i32, i32
  }
  func.func @transform_3(%arg0: i32) -> (i32, i32) {
    %c0_i32 = arith.constant 0 : i32
    %c0_i32_0 = arith.constant 0 : i32
    %c0_i32_1 = arith.constant 0 : i32
    return %c0_i32, %c0_i32_0 : i32, i32
  }
  func.func @transform_4(%arg0: i32) -> (i32, i32) {
    %c0_i32 = arith.constant 0 : i32
    %c0_i32_0 = arith.constant 0 : i32
    %c0_i32_1 = arith.constant 0 : i32
    return %c0_i32, %c0_i32_0 : i32, i32
  }
  func.func @transform_5(%arg0: i32) -> (i32, i32, i32) {
    %c0_i32 = arith.constant 0 : i32
    %c0_i32_0 = arith.constant 0 : i32
    %c0_i32_1 = arith.constant 0 : i32
    %c0_i32_2 = arith.constant 0 : i32
    return %c0_i32, %c0_i32_0, %c0_i32_1 : i32, i32, i32
  }
  func.func @transform_6(%arg0: i32) -> (i32, i32) {
    %c0_i32 = arith.constant 0 : i32
    %c0_i32_0 = arith.constant 0 : i32
    %c0_i32_1 = arith.constant 0 : i32
    return %c0_i32, %c0_i32_0 : i32, i32
  }
  func.func @transform_7(%arg0: i32) -> (i32, i32) {
    %c0_i32 = arith.constant 0 : i32
    %c0_i32_0 = arith.constant 0 : i32
    %c0_i32_1 = arith.constant 0 : i32
    return %c0_i32, %c0_i32_0 : i32, i32
  }
  func.func @transform_8(%arg0: i32) -> (i32, i32) {
    %c0_i32 = arith.constant 0 : i32
    %c0_i32_0 = arith.constant 0 : i32
    %c0_i32_1 = arith.constant 0 : i32
    return %c0_i32, %c0_i32_0 : i32, i32
  }
  func.func @transform_9(%arg0: i32) -> (i32, i32) {
    %c0_i32 = arith.constant 0 : i32
    %c0_i32_0 = arith.constant 0 : i32
    %c0_i32_1 = arith.constant 0 : i32
    return %c0_i32, %c0_i32_0 : i32, i32
  }
  func.func @transform_10(%arg0: i32) -> (i32, i32) {
    %c0_i32 = arith.constant 0 : i32
    %c0_i32_0 = arith.constant 0 : i32
    %c0_i32_1 = arith.constant 0 : i32
    return %c0_i32, %c0_i32_0 : i32, i32
  }
  func.func @transform_11(%arg0: i32) -> (i32, i32) {
    %c0_i32 = arith.constant 0 : i32
    %c0_i32_0 = arith.constant 0 : i32
    return %arg0, %c0_i32 : i32, i32
  }
}

</mosaic_0001>

<bundles_post_ra>
// kernel: tpu_custom_call.1
= control target key start
LH: loop header
LB: loop body
LE: loop exit
PB: predicated region body
PF: predicated region fallthrough
CT: control target
= control target key end

     0   :  { %16 = vsyncpa [#allocation4], 0  ;;  %s11855_s0 = inlined_call_operand.vmem [shape: f32[512,128], index: 0, kind: input, shape index: {}]   ;;  %s11856_s1 = inlined_call_operand.vmem [shape: f32[9,256,1], index: 1, kind: input, shape index: {}]   ;;  %s11857_s2 = inlined_call_operand.vmem [shape: bf16[128,128], index: 2, kind: input, shape index: {}]   ;;  %s11858_s3 = inlined_call_operand.vmem [shape: f32[1,128], index: 3, kind: input, shape index: {}]   ;;  %s11859_s4 = inlined_call_operand.vmem [shape: f32[1,128], index: 4, kind: input, shape index: {}]   ;;  %s11860_s5 = inlined_call_operand.vmem [shape: bf16[9,128,128], index: 5, kind: input, shape index: {}]   ;;  %s11861_s6 = inlined_call_operand.vmem [shape: f32[1,128], index: 6, kind: input, shape index: {}]   ;;  %s11862_s7 = inlined_call_operand.vmem [shape: f32[1,128], index: 7, kind: input, shape index: {}]   ;;  %s11863_s8 = inlined_call_operand.vmem [shape: bf16[128,128], index: 8, kind: input, shape index: {}]   ;;  %s11864_s9 = inlined_call_operand.vmem [shape: f32[1,128], index: 9, kind: input, shape index: {}]   ;;  %s11865_s10 = inlined_call_operand.vmem [shape: f32[1,128], index: 10, kind: input, shape index: {}]   ;;  %s11866_s11 = inlined_call_operand.hbm [shape: f32[512,128], index: 11, kind: output, shape index: {}]  }
   0x1   :  { %18 = vsyncpa [#allocation4 + $0x1], 0  ;;  %s8694_s17 = smov 0   ;;  %s8696_s18 = smov 0  }
   0x2   :  { %s8698_s19 = smov 0   ;;  %s8700_s20 = smov 0  }
   0x3 LB: > { %s8715_s21 = sadd.s32 4294967295, %s8628_s20   ;;  %s6438_s22 = sadd.s32 4294967294, %s8628_s20   ;;  %s8628_s20 = sphi %s8700_s20, %s11998_s20   ;;  %s8624_s19 = sphi %s8698_s19, %s11997_s19   ;;  %s8620_s18 = sphi %s8696_s18, %s11996_s18   ;;  %s8616_s17 = sphi %s8694_s17, %s11995_s17  }
   0x4   : > { %s8719_s23 = sadd.s32 1, %s8628_s20   ;;  %s267_s24 = sadd.s32 1, %s8624_s19 }
   0x5   : > { %s264_s25 = ssub.s32 %s8628_s20, %s8719_s23  ;;  %p277_p0 = scmp.ne.s32.totalorder %s8624_s19, %s8620_s18 }
   0x6   : > { %p265_p1 = scmp.eq.s32.totalorder %s264_s25, 0  ;;  %p278_p2 = scmp.eq.s32.totalorder %s8715_s21, 1 }
   0x7   : > { %p283_p3 = scmp.ne.s32.totalorder %s8620_s18, %s8616_s17  ;;  %p284_p4 = scmp.eq.s32.totalorder %s6438_s22, 1 }
   0x8   : > { %s8730_s26 = scalar_select %p265_p1, %s8624_s19, %s267_s24  }
   0x9   : > { %p8732_p5 = por %p278_p2, %p277_p0  ;;  %p8736_p6 = por %p284_p4, %p283_p3 }
   0xa   : > { %11897 = sst [smem:[#allocation6_spill]] %s8730_s26  ;;  %p6441_p7 = scmp.ge.s32.totalorder %s8628_s20, 1 }
   0xb   : > { %p341_p8 = scmp.lt.s32.totalorder %s8628_s20, 3 }
   0xd   : > { %p342_p9 = pnand %p6441_p7, %p341_p8 }
   0xf   : > { %345 = sbr.rel (%p342_p9) target bundleno = 1192 (0x4a8), region = 64 }
  0x16   : > { %v838_v0 = vld [vmem:[%s11856_s1 + $0x10] sm:$0xff]  ;;  %v836_v1 = vld [vmem:[%s11856_s1] sm:$0xff]  ;;  %v11884_v2 = vmov 0   ;;  %v839_v4 = vld [vmem:[%s11856_s1 + $0x18] sm:$0xff]  ;;  %s6443_s12 = sshll.u32 %s8715_s21, 5  ;;  %s378_s15 = sand.u32 1, %s8620_s18  }
  0x17   : > { %8468 = vset.pattern.permute.xlu1 %v11884_v2  ;;  %8467 = vset.pattern.permute.xlu0 %v11884_v2  ;;  %vm870_vm0 = vcmp.ne.f32.partialorder %v838_v0, 0.0  ;;  %vm868_vm1 = vcmp.ne.f32.partialorder %v836_v1, 0.0  ;;  %v8469_v3 = vld [vmem:[%s11857_s2] sm:$0xff]   ;;  %vm871_vm2 = vcmp.ne.f32.partialorder %v839_v4, 0.0  ;;  %v837_v7 = vld [vmem:[%s11856_s1 + $0x8] sm:$0xff]  ;;  %v8471_v13 = vld [vmem:[%s11857_s2 + $0x10] sm:$0xff]  }
  0x18   : > { %v902_v5 = vsel %vm870_vm0, 1, %v11884_v2  ;;  %v900_v6 = vsel %vm868_vm1, 1, %v11884_v2  ;;  %vm869_vm3 = vcmp.ne.f32.partialorder %v837_v7, 0.0  ;;  %v8470_v8 = vld [vmem:[%s11857_s2 + $0x8] sm:$0xff]   ;;  %7625 = vmatprep.subr.bf16.mxu0 %v8469_v3  ;;  %v903_v10 = vsel %vm871_vm2, 1, %v11884_v2  ;;  %v840_v12 = vld [vmem:[%s11856_s1 + $0x20] sm:$0xff] }
  0x19   : > { %939 = vperm.xlu1 %8468, %v902_v5   ;;  %933 = vperm.xlu0 %8467, %v900_v6   ;;  %v841_v9 = vld [vmem:[%s11856_s1 + $0x28] sm:$0xff]  ;;  %v901_v11 = vsel %vm869_vm3, 1, %v11884_v2  ;;  %vm872_vm5 = vcmp.ne.f32.partialorder %v840_v12, 0.0  ;;  %v843_v14 = vld [vmem:[%s11856_s1 + $0x38] sm:$0xff]  ;;  %v842_v15 = vld [vmem:[%s11856_s1 + $0x30] sm:$0xff]  ;;  %p382_p10 = scmp.lt.s32.totalorder %s6443_s12, 63 }
  0x1a   : > { %7626 = vmatpush3.bf16.msra.mxu0 %v8469_v3  ;;  %vm873_vm4 = vcmp.ne.f32.partialorder %v841_v9, 0.0  ;;  %v904_v17 = vsel %vm872_vm5, 1, %v11884_v2  ;;  %vm875_vm6 = vcmp.ne.f32.partialorder %v843_v14, 0.0  ;;  %vm874_vm7 = vcmp.ne.f32.partialorder %v842_v15, 0.0  ;;  %v8472_v18 = vld [vmem:[%s11857_s2 + $0x18] sm:$0xff]   ;;  %v845_v19 = vld [vmem:[%s11856_s1 + $0x48] sm:$0xff] }
  0x1b   : > { %7627 = vmatprep.subr.bf16.mxu0 %v8470_v8  ;;  %v905_v16 = vsel %vm873_vm4, 1, %v11884_v2  ;;  %v844_v20 = vld [vmem:[%s11856_s1 + $0x40] sm:$0xff]  ;;  %s12000_s12 = smov (!%p382_p10, %s6443_s12), 63  ;;  %v907_v21 = vsel %vm875_vm6, 1, %v11884_v2  ;;  %v906_v22 = vsel %vm874_vm7, 1, %v11884_v2  ;;  %vm877_vm8 = vcmp.ne.f32.partialorder %v845_v19, 0.0 }
  0x1c   : > { %vm876_vm9 = vcmp.ne.f32.partialorder %v844_v20, 0.0  ;;  %v8473_v23 = vld [vmem:[%s11857_s2 + $0x20] sm:$0xff]   ;;  %v847_v24 = vld [vmem:[%s11856_s1 + $0x58] sm:$0xff]  ;;  %s6444_s14 = sshll.u32 %s12000_s12, 3  ;;  %v846_v25 = vld [vmem:[%s11856_s1 + $0x50] sm:$0xff]  ;;  %v909_v28 = vsel %vm877_vm8, 1, %v11884_v2 }
  0x1d   : > { %942 = vperm.xlu1 %8468, %v903_v10   ;;  %936 = vperm.xlu0 %8467, %v901_v11   ;;  %s8807_s26 = scalar_lea.vmem %s11855_s0, %s6444_s14  ;;  %v908_v29 = vsel %vm876_vm9, 1, %v11884_v2  ;;  %vm879_vm10 = vcmp.ne.f32.partialorder %v847_v24, 0.0  ;;  %vm878_vm11 = vcmp.ne.f32.partialorder %v846_v25, 0.0  ;;  %v8474_v31 = vld [vmem:[%s11857_s2 + $0x28] sm:$0xff]   ;;  %v848_v33 = vld [vmem:[%s11856_s1 + $0x60] sm:$0xff]  ;;  %v8475_v36 = vld [vmem:[%s11857_s2 + $0x30] sm:$0xff]  }
  0x1e   : > { %7628 = vmatpush3.bf16.msra.mxu0 %v8470_v8  ;;  %v389_v26 = vld [vmem:[%s8807_s26] sm:$0xff]  ;;  %v390_v27 = vld [vmem:[%s8807_s26 + $0x8] sm:$0xff]  ;;  %v911_v34 = vsel %vm879_vm10, 1, %v11884_v2  ;;  %v910_v35 = vsel %vm878_vm11, 1, %v11884_v2  ;;  %vm880_vm13 = vcmp.ne.f32.partialorder %v848_v33, 0.0  ;;  %v851_v37 = vld [vmem:[%s11856_s1 + $0x78] sm:$0xff] }
  0x1f   : > { %7629 = vmatprep.subr.bf16.mxu0 %v8471_v13  ;;  %v421_v30 = vpack.c.bf16 %v390_v27, %v389_v26  ;;  %v849_v32 = vld [vmem:[%s11856_s1 + $0x68] sm:$0xff]  ;;  %v850_v38 = vld [vmem:[%s11856_s1 + $0x70] sm:$0xff]  ;;  %v912_v40 = vsel %vm880_vm13, 1, %v11884_v2  ;;  %vm883_vm14 = vcmp.ne.f32.partialorder %v851_v37, 0.0  ;;  %v8476_v41 = vld [vmem:[%s11857_s2 + $0x38] sm:$0xff]   ;;  %s6442_s24 = sshll.u32 %s378_s15, 8 }
  0x20   : > { %vm881_vm12 = vcmp.ne.f32.partialorder %v849_v32, 0.0  ;;  %vm882_vm15 = vcmp.ne.f32.partialorder %v850_v38, 0.0  ;;  %v853_v42 = vld [vmem:[%s11856_s1 + $0x88] sm:$0xff]  ;;  %v852_v43 = vld [vmem:[%s11856_s1 + $0x80] sm:$0xff]  ;;  %v915_v44 = vsel %vm883_vm14, 1, %v11884_v2  ;;  %v391_v46 = vld [vmem:[%s8807_s26 + $0x10] sm:$0xff] }
  0x21   : > { %948 = vperm.xlu1 %8468, %v905_v16   ;;  %945 = vperm.xlu0 %8467, %v904_v17   ;;  %v913_v39 = vsel %vm881_vm12, 1, %v11884_v2  ;;  %v914_v45 = vsel %vm882_vm15, 1, %v11884_v2  ;;  %vm885_vm0 = vcmp.ne.f32.partialorder %v853_v42, 0.0  ;;  %vm884_vm1 = vcmp.ne.f32.partialorder %v852_v43, 0.0  ;;  %v392_v47 = vld [vmem:[%s8807_s26 + $0x18] sm:$0xff]  ;;  %v854_v49 = vld [vmem:[%s11856_s1 + $0x90] sm:$0xff] }
  0x22   : > { %7630 = vmatpush3.bf16.msra.mxu0 %v8471_v13  ;;  %7641 = vmatprep.mubr.bf16.mxu0 %v421_v30  ;;  %v855_v48 = vld [vmem:[%s11856_s1 + $0x98] sm:$0xff]  ;;  %v393_v50 = vld [vmem:[%s8807_s26 + $0x20] sm:$0xff]  ;;  %v394_v51 = vld [vmem:[%s8807_s26 + $0x28] sm:$0xff]  ;;  %v917_v52 = vsel %vm885_vm0, 1, %v11884_v2  ;;  %v916_v53 = vsel %vm884_vm1, 1, %v11884_v2  ;;  %v422_v54 = vpack.c.bf16 %v392_v47, %v391_v46  ;;  %vm886_vm3 = vcmp.ne.f32.partialorder %v854_v49, 0.0 }
  0x23   : > { %7631 = vmatprep.subr.bf16.mxu0 %v8472_v18  ;;  %vm887_vm2 = vcmp.ne.f32.partialorder %v855_v48, 0.0  ;;  %v423_v55 = vpack.c.bf16 %v394_v51, %v393_v50  ;;  %v857_v56 = vld [vmem:[%s11856_s1 + $0xa8] sm:$0xff]  ;;  %v856_v57 = vld [vmem:[%s11856_s1 + $0xa0] sm:$0xff]  ;;  %v918_v59 = vsel %vm886_vm3, 1, %v11884_v2  ;;  %v395_v60 = vld [vmem:[%s8807_s26 + $0x30] sm:$0xff]  ;;  %s11685_s12 = scalar_lea.vmem [#allocation3], %s6442_s24 }
  0x24   : > { %v919_v58 = vsel %vm887_vm2, 1, %v11884_v2  ;;  %vm889_vm4 = vcmp.ne.f32.partialorder %v857_v56, 0.0  ;;  %vm888_vm5 = vcmp.ne.f32.partialorder %v856_v57, 0.0  ;;  %v396_v61 = vld [vmem:[%s8807_s26 + $0x38] sm:$0xff]  ;;  %v858_v63 = vld [vmem:[%s11856_s1 + $0xb0] sm:$0xff]  ;;  %v397_v0 = vld [vmem:[%s8807_s26 + $0x40] sm:$0xff] }
  0x25   : > { %954 = vperm.xlu1 %8468, %v907_v21   ;;  %951 = vperm.xlu0 %8467, %v906_v22   ;;  %v859_v62 = vld [vmem:[%s11856_s1 + $0xb8] sm:$0xff]  ;;  %v398_v1 = vld [vmem:[%s8807_s26 + $0x48] sm:$0xff]  ;;  %v921_v3 = vsel %vm889_vm4, 1, %v11884_v2  ;;  %v920_v4 = vsel %vm888_vm5, 1, %v11884_v2  ;;  %v424_v5 = vpack.c.bf16 %v396_v61, %v395_v60  ;;  %vm890_vm7 = vcmp.ne.f32.partialorder %v858_v63, 0.0  ;;  %v860_v8 = vld [vmem:[%s11856_s1 + $0xc0] sm:$0xff] }
  0x26   : > { %7632 = vmatpush3.bf16.msra.mxu0 %v8472_v18  ;;  %vm891_vm6 = vcmp.ne.f32.partialorder %v859_v62, 0.0  ;;  %v425_v6 = vpack.c.bf16 %v398_v1, %v397_v0  ;;  %v861_v7 = vld [vmem:[%s11856_s1 + $0xc8] sm:$0xff]  ;;  %v922_v10 = vsel %vm890_vm7, 1, %v11884_v2  ;;  %vm892_vm9 = vcmp.ne.f32.partialorder %v860_v8, 0.0  ;;  %v399_v11 = vld [vmem:[%s8807_s26 + $0x50] sm:$0xff]  ;;  %v400_v12 = vld [vmem:[%s8807_s26 + $0x58] sm:$0xff] }
  0x27   : > { %7633 = vmatprep.subr.bf16.mxu0 %v8473_v23  ;;  %v923_v9 = vsel %vm891_vm6, 1, %v11884_v2  ;;  %vm893_vm8 = vcmp.ne.f32.partialorder %v861_v7, 0.0  ;;  %v863_v13 = vld [vmem:[%s11856_s1 + $0xd8] sm:$0xff]  ;;  %v862_v14 = vld [vmem:[%s11856_s1 + $0xd0] sm:$0xff]  ;;  %v401_v15 = vld [vmem:[%s8807_s26 + $0x60] sm:$0xff]  ;;  %v924_v18 = vsel %vm892_vm9, 1, %v11884_v2  ;;  %v426_v19 = vpack.c.bf16 %v400_v12, %v399_v11 }
  0x28   : > { %v402_v16 = vld [vmem:[%s8807_s26 + $0x68] sm:$0xff]  ;;  %v925_v17 = vsel %vm893_vm8, 1, %v11884_v2  ;;  %vm895_vm10 = vcmp.ne.f32.partialorder %v863_v13, 0.0  ;;  %vm894_vm11 = vcmp.ne.f32.partialorder %v862_v14, 0.0  ;;  %v864_v22 = vld [vmem:[%s11856_s1 + $0xe0] sm:$0xff]  ;;  %v403_v25 = vld [vmem:[%s8807_s26 + $0x70] sm:$0xff] }
  0x29   : > { %960 = vperm.xlu1 %8468, %v909_v28   ;;  %957 = vperm.xlu0 %8467, %v908_v29   ;;  %v427_v20 = vpack.c.bf16 %v402_v16, %v401_v15  ;;  %v865_v21 = vld [vmem:[%s11856_s1 + $0xe8] sm:$0xff]  ;;  %v926_v24 = vsel %vm894_vm11, 1, %v11884_v2  ;;  %vm896_vm13 = vcmp.ne.f32.partialorder %v864_v22, 0.0  ;;  %v404_v26 = vld [vmem:[%s8807_s26 + $0x78] sm:$0xff]  ;;  %v866_v28 = vld [vmem:[%s11856_s1 + $0xf0] sm:$0xff]  ;;  %s7360_s25 = sshll.u32 %s8715_s21, 12 }
  0x2a   : > { %7634 = vmatpush3.bf16.msra.mxu0 %v8473_v23  ;;  %v927_v23 = vsel %vm895_vm10, 1, %v11884_v2  ;;  %vm897_vm12 = vcmp.ne.f32.partialorder %v865_v21, 0.0  ;;  %v867_v27 = vld [vmem:[%s11856_s1 + $0xf8] sm:$0xff]  ;;  %v405_v29 = vld [vmem:[%s8807_s26 + $0x80] sm:$0xff]  ;;  %v406_v30 = vld [vmem:[%s8807_s26 + $0x88] sm:$0xff]  ;;  %v928_v32 = vsel %vm896_vm13, 1, %v11884_v2  ;;  %v428_v33 = vpack.c.bf16 %v404_v26, %v403_v25  ;;  %s11805_s14 = scalar_lea.hbm %s11866_s11, %s7360_s25 }
  0x2b   : > { %7635 = vmatprep.subr.bf16.mxu0 %v8474_v31  ;;  %vm899_vm14 = vcmp.ne.f32.partialorder %v867_v27, 0.0  ;;  %vm898_vm15 = vcmp.ne.f32.partialorder %v866_v28, 0.0  ;;  %v6458_v37 = vld [vmem:[%s11856_s1 + $0x118] sm:$0xff]  ;;  %v6460_v46 = vld [vmem:[%s11856_s1 + $0x128] sm:$0xff]  ;;  %v6459_v49 = vld [vmem:[%s11856_s1 + $0x120] sm:$0xff]  ;;  %s6376_s29 = sshll.u32 %s11685_s12, 4  ;;  %s11807_s29 = int_to_ptr.vmem [resolvable:$true] %s6376_s29 }
  0x2c   : > { %v931_v38 = vsel %vm899_vm14, 1, %v11884_v2  ;;  %v408_v42 = vld [vmem:[%s8807_s26 + $0x98] sm:$0xff]  ;;  %vm1192_vm2 = vcmp.ne.f32.partialorder %v6458_v37, 0.0  ;;  %vm1194_vm4 = vcmp.ne.f32.partialorder %v6460_v46, 0.0  ;;  %vm1193_vm5 = vcmp.ne.f32.partialorder %v6459_v49, 0.0  ;;  %v6461_v56 = vld [vmem:[%s11856_s1 + $0x130] sm:$0xff] }
  0x2d   : > { %966 = vperm.xlu1 %8468, %v911_v34   ;;  %963 = vperm.xlu0 %8467, %v910_v35   ;;  %v6456_v34 = vld [vmem:[%s11856_s1 + $0x108] sm:$0xff]  ;;  %v429_v35 = vpack.c.bf16 %v406_v30, %v405_v29  ;;  %v1224_v51 = vsel %vm1192_vm2, 1, %v11884_v2  ;;  %v1226_v57 = vsel %vm1194_vm4, 1, %v11884_v2  ;;  %v1225_v60 = vsel %vm1193_vm5, 1, %v11884_v2  ;;  %v6463_v63 = vld [vmem:[%s11856_s1 + $0x140] sm:$0xff]  ;;  %v6465_v7 = vld [vmem:[%s11856_s1 + $0x150] sm:$0xff] }
  0x2e   : > { %7636 = vmatpush3.bf16.msra.mxu0 %v8474_v31  ;;  %v929_v31 = vsel %vm897_vm12, 1, %v11884_v2  ;;  %vm1190_vm0 = vcmp.ne.f32.partialorder %v6456_v34, 0.0  ;;  %v6464_v61 = vld [vmem:[%s11856_s1 + $0x148] sm:$0xff]  ;;  %vm1195_vm7 = vcmp.ne.f32.partialorder %v6461_v56, 0.0  ;;  %vm1197_vm9 = vcmp.ne.f32.partialorder %v6463_v63, 0.0  ;;  %v6467_v14 = vld [vmem:[%s11856_s1 + $0x160] sm:$0xff] }
  0x2f   : > { %7637 = vmatprep.subr.bf16.mxu0 %v8475_v36  ;;  %v1222_v43 = vsel %vm1190_vm0, 1, %v11884_v2  ;;  %vm1198_vm8 = vcmp.ne.f32.partialorder %v6464_v61, 0.0  ;;  %v418_v11 = vld [vmem:[%s8807_s26 + $0xe8] sm:$0xff]  ;;  %vm1199_vm11 = vcmp.ne.f32.partialorder %v6465_v7, 0.0  ;;  %vm1201_vm13 = vcmp.ne.f32.partialorder %v6467_v14, 0.0  ;;  %v6469_v21 = vld [vmem:[%s11856_s1 + $0x170] sm:$0xff] }
  0x30   : > { %v1230_v8 = vsel %vm1198_vm8, 1, %v11884_v2  ;;  %v6468_v12 = vld [vmem:[%s11856_s1 + $0x168] sm:$0xff]  ;;  %v6471_v26 = vld [vmem:[%s11856_s1 + $0x180] sm:$0xff]  ;;  %v6474_v28 = vld [vmem:[%s11856_s1 + $0x198] sm:$0xff]  ;;  %s11814_s21 = scalar_lea.sflag [#allocation4], %s378_s15  ;;  %s8631_s16 = smov [#allocation3]  }
  0x31   : > { %972 = vperm.xlu1 %8468, %v913_v39   ;;  %969 = vperm.xlu0 %8467, %v912_v40   ;;  %v930_v39 = vsel %vm898_vm15, 1, %v11884_v2  ;;  %v407_v40 = vld [vmem:[%s8807_s26 + $0x90] sm:$0xff]  ;;  %vm1202_vm12 = vcmp.ne.f32.partialorder %v6468_v12, 0.0  ;;  %vm1203_vm15 = vcmp.ne.f32.partialorder %v6469_v21, 0.0  ;;  %vm1208_vm2 = vcmp.ne.f32.partialorder %v6474_v28, 0.0  ;;  %v8477_v34 = vld [vmem:[%s11860_s5 + $0x40] sm:$0xff]  }
  0x32   : > { %7638 = vmatpush3.bf16.msra.mxu0 %v8475_v36  ;;  %v6455_v36 = vld [vmem:[%s11856_s1 + $0x100] sm:$0xff]  ;;  %v430_v48 = vpack.c.bf16 %v408_v42, %v407_v40  ;;  %v1234_v22 = vsel %vm1202_vm12, 1, %v11884_v2  ;;  %v1235_v29 = vsel %vm1203_vm15, 1, %v11884_v2  ;;  %v6473_v30 = vld [vmem:[%s11856_s1 + $0x190] sm:$0xff]  ;;  %v1240_v37 = vsel %vm1208_vm2, 1, %v11884_v2  ;;  %v6480_v42 = vld [vmem:[%s11856_s1 + $0x1c8] sm:$0xff] }
  0x33   : > { %7639 = vmatprep.subr.bf16.mxu0 %v8476_v41  ;;  %vm1189_vm1 = vcmp.ne.f32.partialorder %v6455_v36, 0.0  ;;  %v6478_v36 = vld [vmem:[%s11856_s1 + $0x1b8] sm:$0xff]  ;;  %v6477_v40 = vld [vmem:[%s11856_s1 + $0x1b0] sm:$0xff]  ;;  %vm1214_vm8 = vcmp.ne.f32.partialorder %v6480_v42, 0.0  ;;  %v6616_v61 = vld [vmem:[%s11856_s1 + $0x208] sm:$0xff]  ;;  %s8570_s22 = sshll.u32 %s8631_s16, 4  ;;  %s8571_s22 = int_to_ptr.vmem [resolvable:$false] %s8570_s22 }
  0x34   : > { %v1221_v47 = vsel %vm1189_vm1, 1, %v11884_v2  ;;  %vm1205_vm1 = vcmp.ne.f32.partialorder %v6471_v26, 0.0  ;;  %v6482_v46 = vld [vmem:[%s11856_s1 + $0x1d8] sm:$0xff]  ;;  %v6735_v21 = vld [vmem:[%s11856_s1 + $0x380] sm:$0xff]  ;;  %v6737_v26 = vld [vmem:[%s11856_s1 + $0x390] sm:$0xff]  ;;  %s8572_s24 = scalar_lea.vmem %s8571_s22, 8192  ;;  %p8573_p0 = scmp.lt.s32.totalorder %s11807_s29, %s8571_s22 }
  0x35   : > { %978 = vperm.xlu1 %8468, %v915_v44   ;;  %975 = vperm.xlu0 %8467, %v914_v45   ;;  %v409_v44 = vld [vmem:[%s8807_s26 + $0xa0] sm:$0xff]  ;;  %v410_v45 = vld [vmem:[%s8807_s26 + $0xa8] sm:$0xff]  ;;  %v8480_v49 = vld [vmem:[%s11860_s5 + $0x58] sm:$0xff]  }
  0x36   : > { %7640 = vmatpush3.bf16.msra.mxu0 %v8476_v41  ;;  %v6457_v41 = vld [vmem:[%s11856_s1 + $0x110] sm:$0xff]  ;;  %v431_v50 = vpack.c.bf16 %v410_v45, %v409_v44  ;;  %v6479_v45 = vld [vmem:[%s11856_s1 + $0x1c0] sm:$0xff]  ;;  %v8484_v7 = vld [vmem:[%s11860_s5 + $0x78] sm:$0xff]  }
  0x37   : > { %vm1191_vm3 = vcmp.ne.f32.partialorder %v6457_v41, 0.0  ;;  %7673 = vmatprep.subr.bf16.mxu0 %v8477_v34  ;;  %v8479_v44 = vld [vmem:[%s11860_s5 + $0x50] sm:$0xff]  }
  0x39   : > { %984 = vperm.xlu1 %8468, %v917_v52   ;;  %981 = vperm.xlu0 %8467, %v916_v53   ;;  %v1223_v52 = vsel %vm1191_vm3, 1, %v11884_v2  ;;  %v411_v53 = vld [vmem:[%s8807_s26 + $0xb0] sm:$0xff]  ;;  %vm1207_vm3 = vcmp.ne.f32.partialorder %v6473_v30, 0.0  ;;  %v6736_v30 = vld [vmem:[%s11856_s1 + $0x388] sm:$0xff] }
  0x3a   : > { %7642 = vmatmul.mubr.bf16.vlgmr.msra.gmra.mrb[0].mxu0 %v422_v54  ;;  %v412_v54 = vld [vmem:[%s8807_s26 + $0xb8] sm:$0xff] }
  0x3b   : > { %7645 = vmatprep.mubr.bf16.mxu0 %v423_v55  ;;  %v6462_v55 = vld [vmem:[%s11856_s1 + $0x138] sm:$0xff]  ;;  %v432_v62 = vpack.c.bf16 %v412_v54, %v411_v53  ;;  %7674 = vmatpush3.bf16.msra.mxu0 %v8477_v34  ;;  %v8481_v54 = vld [vmem:[%s11860_s5 + $0x60] sm:$0xff]   ;;  %v8486_v34 = vld [vmem:[%s11860_s5 + $0xc8] sm:$0xff]  }
  0x3c   : > { %vm1196_vm6 = vcmp.ne.f32.partialorder %v6462_v55, 0.0  ;;  %v6483_v55 = vld [vmem:[%s11856_s1 + $0x1e0] sm:$0xff] }
  0x3d   : > { %990 = vperm.xlu1 %8468, %v919_v58   ;;  %987 = vperm.xlu0 %8467, %v918_v59   ;;  %v413_v58 = vld [vmem:[%s8807_s26 + $0xc0] sm:$0xff]  ;;  %v414_v59 = vld [vmem:[%s8807_s26 + $0xc8] sm:$0xff]  ;;  %v1228_v1 = vsel %vm1196_vm6, 1, %v11884_v2  ;;  %vm1212_vm6 = vcmp.ne.f32.partialorder %v6478_v36, 0.0 }
  0x3e   : > { %v433_v0 = vpack.c.bf16 %v414_v59, %v413_v58  ;;  %v6485_v59 = vld [vmem:[%s11856_s1 + $0x1f0] sm:$0xff]  ;;  %v6739_v36 = vld [vmem:[%s11856_s1 + $0x3a0] sm:$0xff] }
  0x3f   : > { %vm1219_vm15 = vcmp.ne.f32.partialorder %v6485_v59, 0.0  ;;  %v6745_v59 = vld [vmem:[%s11856_s1 + $0x3d0] sm:$0xff] }
  0x41   : > { %996 = vperm.xlu1 %8468, %v921_v3   ;;  %993 = vperm.xlu0 %8467, %v920_v4   ;;  %v415_v3 = vld [vmem:[%s8807_s26 + $0xd0] sm:$0xff]  ;;  %v416_v4 = vld [vmem:[%s8807_s26 + $0xd8] sm:$0xff] }
  0x42   : > { %7646 = vmatmul.mubr.bf16.gmra.mrb[4].mxu0 %v424_v5  ;;  %v6466_v5 = vld [vmem:[%s11856_s1 + $0x158] sm:$0xff]  ;;  %v434_v13 = vpack.c.bf16 %v416_v4, %v415_v3 }
  0x43   : > { %7649 = vmatprep.mubr.bf16.mxu0 %v425_v6  ;;  %v1227_v6 = vsel %vm1195_vm7, 1, %v11884_v2  ;;  %vm1200_vm10 = vcmp.ne.f32.partialorder %v6466_v5, 0.0  ;;  %vm1211_vm7 = vcmp.ne.f32.partialorder %v6477_v40, 0.0  ;;  %v6618_v3 = vld [vmem:[%s11856_s1 + $0x218] sm:$0xff]  ;;  %v1251_v5 = vsel %vm1219_vm15, 1, %v11884_v2  ;;  %v8487_v40 = vld [vmem:[%s11860_s5 + $0xd0] sm:$0xff]  }
  0x44   : > { %v1232_v16 = vsel %vm1200_vm10, 1, %v11884_v2  ;;  %vm1216_vm10 = vcmp.ne.f32.partialorder %v6482_v46, 0.0  ;;  %vm1932_vm2 = vcmp.ne.f32.partialorder %v6618_v3, 0.0  ;;  %v6740_v46 = vld [vmem:[%s11856_s1 + $0x3a8] sm:$0xff]  ;;  %v6747_v3 = vld [vmem:[%s11856_s1 + $0x3e0] sm:$0xff] }
  0x45   : > { %1002 = vperm.xlu1 %8468, %v923_v9   ;;  %999 = vperm.xlu0 %8467, %v922_v10   ;;  %v1229_v9 = vsel %vm1197_vm9, 1, %v11884_v2  ;;  %v417_v10 = vld [vmem:[%s8807_s26 + $0xe0] sm:$0xff]  ;;  %vm1213_vm9 = vcmp.ne.f32.partialorder %v6479_v45, 0.0  ;;  %v1248_v56 = vsel %vm1216_vm10, 1, %v11884_v2  ;;  %v1964_v14 = vsel %vm1932_vm2, 1, %v11884_v2  ;;  %v6741_v45 = vld [vmem:[%s11856_s1 + $0x3b0] sm:$0xff] }
  0x46   : > { %v435_v15 = vpack.c.bf16 %v418_v11, %v417_v10  ;;  %v1245_v53 = vsel %vm1213_vm9, 1, %v11884_v2  ;;  %v6619_v11 = vld [vmem:[%s11856_s1 + $0x220] sm:$0xff]  ;;  %vm2510_vm10 = vcmp.ne.f32.partialorder %v6737_v26, 0.0  ;;  %vm2513_vm15 = vcmp.ne.f32.partialorder %v6740_v46, 0.0 }
  0x47   : > { %vm2518_vm2 = vcmp.ne.f32.partialorder %v6745_v59, 0.0  ;;  %v8494_v26 = vld [vmem:[%s11860_s5 + $0x100] sm:$0xff]  }
  0x48   : > { %v6831_v59 = vld [vmem:[%s11856_s1 + $0x440] sm:$0xff] }
  0x49   : > { %1008 = vperm.xlu1 %8468, %v925_v17   ;;  %1005 = vperm.xlu0 %8467, %v924_v18   ;;  %v1231_v17 = vsel %vm1199_vm11, 1, %v11884_v2  ;;  %v419_v18 = vld [vmem:[%s8807_s26 + $0xf0] sm:$0xff] }
  0x4a   : > { %7650 = vmatmul.mubr.bf16.gmra.mrb[8].mxu0 %v426_v19  ;;  %v420_v19 = vld [vmem:[%s8807_s26 + $0xf8] sm:$0xff] }
  0x4b   : > { %7653 = vmatprep.mubr.bf16.mxu0 %v427_v20  ;;  %v6470_v20 = vld [vmem:[%s11856_s1 + $0x178] sm:$0xff]  ;;  %v436_v25 = vpack.c.bf16 %v420_v19, %v419_v18  ;;  %v6621_v19 = vld [vmem:[%s11856_s1 + $0x230] sm:$0xff] }
  0x4c   : > { %vm1204_vm14 = vcmp.ne.f32.partialorder %v6470_v20, 0.0 }
  0x4d   : > { %1014 = vperm.xlu1 %8468, %v927_v23   ;;  %1011 = vperm.xlu0 %8467, %v926_v24   ;;  %v6472_v23 = vld [vmem:[%s11856_s1 + $0x188] sm:$0xff]  ;;  %v1233_v24 = vsel %vm1201_vm13, 1, %v11884_v2  ;;  %v1236_v27 = vsel %vm1204_vm14, 1, %v11884_v2  ;;  %vm1217_vm13 = vcmp.ne.f32.partialorder %v6483_v55, 0.0 }
  0x4e   : > { %vm1206_vm0 = vcmp.ne.f32.partialorder %v6472_v23, 0.0  ;;  %v1249_v63 = vsel %vm1217_vm13, 1, %v11884_v2  ;;  %v6623_v23 = vld [vmem:[%s11856_s1 + $0x240] sm:$0xff] }
  0x4f   : > { %vm1937_vm9 = vcmp.ne.f32.partialorder %v6623_v23, 0.0  ;;  %v6750_v23 = vld [vmem:[%s11856_s1 + $0x3f8] sm:$0xff] }
  0x51   : > { %1020 = vperm.xlu1 %8468, %v929_v31   ;;  %1017 = vperm.xlu0 %8467, %v928_v32   ;;  %v1238_v31 = vsel %vm1206_vm0, 1, %v11884_v2  ;;  %v6476_v32 = vld [vmem:[%s11856_s1 + $0x1a8] sm:$0xff]  ;;  %vm1930_vm0 = vcmp.ne.f32.partialorder %v6616_v61, 0.0 }
  0x52   : > { %7654 = vmatmul.mubr.bf16.gmra.mrb[12].mxu0 %v428_v33  ;;  %v1237_v33 = vsel %vm1205_vm1, 1, %v11884_v2  ;;  %vm1210_vm4 = vcmp.ne.f32.partialorder %v6476_v32, 0.0  ;;  %v8490_v61 = vld [vmem:[%s11860_s5 + $0xe8] sm:$0xff]  }
  0x53   : > { %7657 = vmatprep.mubr.bf16.mxu0 %v429_v35  ;;  %v6475_v35 = vld [vmem:[%s11856_s1 + $0x1a0] sm:$0xff]  ;;  %v1242_v41 = vsel %vm1210_vm4, 1, %v11884_v2 }
  0x54   : > { %vm1209_vm5 = vcmp.ne.f32.partialorder %v6475_v35, 0.0  ;;  %v1969_v35 = vsel %vm1937_vm9, 1, %v11884_v2  ;;  %vm2523_vm9 = vcmp.ne.f32.partialorder %v6750_v23, 0.0 }
  0x55   : > { %1026 = vperm.xlu1 %8468, %v931_v38   ;;  %1023 = vperm.xlu0 %8467, %v930_v39   ;;  %v1239_v38 = vsel %vm1207_vm3, 1, %v11884_v2  ;;  %v8478_v39 = vld [vmem:[%s11860_s5 + $0x48] sm:$0xff]  }
  0x56   : > { %7675 = vmatprep.subr.bf16.mxu0 %v8478_v39 }
  0x57   : > { %7676 = vmatpush3.bf16.msra.mxu0 %v8478_v39 }
  0x58   : > { %7677 = vmatprep.subr.bf16.mxu0 %v8479_v44 }
  0x59   : > { %1257 = vperm.xlu1 %8468, %v1222_v43   ;;  %1254 = vperm.xlu0 %8467, %v1221_v47   ;;  %v1241_v43 = vsel %vm1209_vm5, 1, %v11884_v2  ;;  %v1244_v47 = vsel %vm1212_vm6, 1, %v11884_v2  ;;  %vm1933_vm5 = vcmp.ne.f32.partialorder %v6619_v11, 0.0  ;;  %v6749_v11 = vld [vmem:[%s11856_s1 + $0x3f0] sm:$0xff] }
  0x5a   : > { %7658 = vmatmul.mubr.bf16.gmra.mrb[16].mxu0 %v430_v48  ;;  %v1243_v48 = vsel %vm1211_vm7, 1, %v11884_v2  ;;  %vm1935_vm7 = vcmp.ne.f32.partialorder %v6621_v19, 0.0 }
  0x5b   : > { %7661 = vmatprep.mubr.bf16.mxu0 %v431_v50  ;;  %7678 = vmatpush3.bf16.msra.mxu0 %v8479_v44  ;;  %v6481_v50 = vld [vmem:[%s11856_s1 + $0x1d0] sm:$0xff] }
  0x5c   : > { %7679 = vmatprep.subr.bf16.mxu0 %v8480_v49  ;;  %vm1215_vm11 = vcmp.ne.f32.partialorder %v6481_v50, 0.0 }
  0x5d   : > { %1263 = vperm.xlu1 %8468, %v1224_v51   ;;  %1260 = vperm.xlu0 %8467, %v1223_v52   ;;  %v1246_v51 = vsel %vm1214_vm8, 1, %v11884_v2  ;;  %v6484_v52 = vld [vmem:[%s11856_s1 + $0x1e8] sm:$0xff]  ;;  %v1247_v58 = vsel %vm1215_vm11, 1, %v11884_v2  ;;  %vm2508_vm8 = vcmp.ne.f32.partialorder %v6735_v21, 0.0  ;;  %vm2509_vm11 = vcmp.ne.f32.partialorder %v6736_v30, 0.0 }
  0x5e   : > { %vm1218_vm12 = vcmp.ne.f32.partialorder %v6484_v52, 0.0  ;;  %v2541_v42 = vsel %vm2509_vm11, 1, %v11884_v2  ;;  %v6743_v52 = vld [vmem:[%s11856_s1 + $0x3c0] sm:$0xff] }
  0x5f   : > { %7680 = vmatpush3.bf16.msra.mxu0 %v8480_v49 }
  0x60   : > { %7681 = vmatprep.subr.bf16.mxu0 %v8481_v54 }
  0x61   : > { %1269 = vperm.xlu1 %8468, %v1226_v57   ;;  %1266 = vperm.xlu0 %8467, %v1225_v60   ;;  %v6486_v57 = vld [vmem:[%s11856_s1 + $0x1f8] sm:$0xff]  ;;  %v8482_v60 = vld [vmem:[%s11860_s5 + $0x68] sm:$0xff]  }
  0x62   : > { %7662 = vmatmul.mubr.bf16.gmra.mrb[20].mxu0 %v432_v62  ;;  %v1250_v62 = vsel %vm1218_vm12, 1, %v11884_v2  ;;  %vm1220_vm14 = vcmp.ne.f32.partialorder %v6486_v57, 0.0  ;;  %vm2512_vm12 = vcmp.ne.f32.partialorder %v6739_v36, 0.0  ;;  %v2555_v36 = vsel %vm2523_vm9, 1, %v11884_v2 }
  0x63   : > { %7665 = vmatprep.mubr.bf16.mxu0 %v433_v0  ;;  %7682 = vmatpush3.bf16.msra.mxu0 %v8481_v54  ;;  %v6615_v0 = vld [vmem:[%s11856_s1 + $0x200] sm:$0xff]  ;;  %v1252_v4 = vsel %vm1220_vm14, 1, %v11884_v2  ;;  %vm2514_vm14 = vcmp.ne.f32.partialorder %v6741_v45, 0.0 }
  0x64   : > { %7683 = vmatprep.subr.bf16.mxu0 %v8482_v60  ;;  %vm1929_vm1 = vcmp.ne.f32.partialorder %v6615_v0, 0.0  ;;  %v8489_v54 = vld [vmem:[%s11860_s5 + $0xe0] sm:$0xff]   ;;  %v2546_v55 = vsel %vm2514_vm14, 1, %v11884_v2 }
  0x65   : > { %1275 = vperm.xlu1 %8468, %v1228_v1   ;;  %1272 = vperm.xlu0 %8467, %v1227_v6   ;;  %v8483_v1 = vld [vmem:[%s11860_s5 + $0x70] sm:$0xff]   ;;  %v1961_v10 = vsel %vm1929_vm1, 1, %v11884_v2 }
  0x66   : > { %v6617_v6 = vld [vmem:[%s11856_s1 + $0x210] sm:$0xff] }
  0x67   : > { %7684 = vmatpush3.bf16.msra.mxu0 %v8482_v60  ;;  %vm1931_vm3 = vcmp.ne.f32.partialorder %v6617_v6, 0.0  ;;  %v6744_v60 = vld [vmem:[%s11856_s1 + $0x3c8] sm:$0xff]  ;;  %v8491_v6 = vld [vmem:[%s11860_s5 + $0xf0] sm:$0xff]  }
  0x68   : > { %7685 = vmatprep.subr.bf16.mxu0 %v8483_v1 }
  0x69   : > { %1281 = vperm.xlu1 %8468, %v1230_v8   ;;  %1278 = vperm.xlu0 %8467, %v1229_v9   ;;  %v1962_v8 = vsel %vm1930_vm0, 1, %v11884_v2  ;;  %v6620_v9 = vld [vmem:[%s11856_s1 + $0x228] sm:$0xff]  ;;  %vm2516_vm0 = vcmp.ne.f32.partialorder %v6743_v52, 0.0 }
  0x6a   : > { %7666 = vmatmul.mubr.bf16.gmra.mrb[24].mxu0 %v434_v13  ;;  %vm1934_vm4 = vcmp.ne.f32.partialorder %v6620_v9, 0.0  ;;  %v6828_v52 = vld [vmem:[%s11856_s1 + $0x428] sm:$0xff] }
  0x6b   : > { %7669 = vmatprep.mubr.bf16.mxu0 %v435_v15  ;;  %7686 = vmatpush3.bf16.msra.mxu0 %v8483_v1  ;;  %v6622_v15 = vld [vmem:[%s11856_s1 + $0x238] sm:$0xff]  ;;  %v1966_v20 = vsel %vm1934_vm4, 1, %v11884_v2  ;;  %vm2520_vm4 = vcmp.ne.f32.partialorder %v6747_v3, 0.0 }
  0x6c   : > { %7687 = vmatprep.subr.bf16.mxu0 %v8484_v7  ;;  %vm1936_vm6 = vcmp.ne.f32.partialorder %v6622_v15, 0.0  ;;  %v8492_v15 = vld [vmem:[%s11860_s5 + $0xf8] sm:$0xff]  }
  0x6d   : > { %1287 = vperm.xlu1 %8468, %v1232_v16   ;;  %1284 = vperm.xlu0 %8467, %v1231_v17   ;;  %v1963_v16 = vsel %vm1931_vm3, 1, %v11884_v2  ;;  %v1968_v28 = vsel %vm1936_vm6, 1, %v11884_v2  ;;  %vm2517_vm3 = vcmp.ne.f32.partialorder %v6744_v60, 0.0  ;;  %vm2522_vm6 = vcmp.ne.f32.partialorder %v6749_v11, 0.0  ;;  %v6830_v60 = vld [vmem:[%s11856_s1 + $0x438] sm:$0xff] }
  0x6f   : > { %7688 = vmatpush3.bf16.msra.mxu0 %v8484_v7  ;;  %v2550_v7 = vsel %vm2518_vm2, 1, %v11884_v2 }
  0x71   : > { %1293 = vperm.xlu1 %8468, %v1234_v22   ;;  %1290 = vperm.xlu0 %8467, %v1233_v24   ;;  %v1965_v22 = vsel %vm1933_vm5, 1, %v11884_v2 }
  0x72   : > { %7670 = vmatmul.mubr.bf16.gmra.mrb[28].mxu0 %v436_v25 }
  0x75   : > { %1299 = vperm.xlu1 %8468, %v1236_v27   ;;  %1296 = vperm.xlu0 %8467, %v1235_v29   ;;  %v8485_v27 = vld [vmem:[%s11860_s5 + $0xc0] sm:$0xff]   ;;  %v1967_v29 = vsel %vm1935_vm7, 1, %v11884_v2 }
  0x76   : > { %8153 = vmatprep.subr.bf16.mxu1 %v8485_v27 }
  0x77   : > { %8161 = vmatpush3.bf16.msra.mxu1 %v8485_v27  ;;  %v2554_v27 = vsel %vm2522_vm6, 1, %v11884_v2 }
  0x78   : > { %8154 = vmatprep.subr.bf16.mxu1 %v8486_v34 }
  0x79   : > { %1305 = vperm.xlu1 %8468, %v1238_v31   ;;  %1302 = vperm.xlu0 %8467, %v1237_v33   ;;  %v2540_v33 = vsel %vm2508_vm8, 1, %v11884_v2 }
  0x7b   : > { %8162 = vmatpush3.bf16.msra.mxu1 %v8486_v34  ;;  %v6824_v34 = vld [vmem:[%s11856_s1 + $0x408] sm:$0xff] }
  0x7c   : > { %8155 = vmatprep.subr.bf16.mxu1 %v8487_v40  ;;  %vm3056_vm11 = vcmp.ne.f32.partialorder %v6824_v34, 0.0 }
  0x7d   : > { %1311 = vperm.xlu1 %8468, %v1240_v37   ;;  %1308 = vperm.xlu0 %8467, %v1239_v38   ;;  %v6738_v37 = vld [vmem:[%s11856_s1 + $0x398] sm:$0xff]  ;;  %v3088_v46 = vsel %vm3056_vm11, 1, %v11884_v2 }
  0x7e   : > { %vm2511_vm13 = vcmp.ne.f32.partialorder %v6738_v37, 0.0 }
  0x7f   : > { %8163 = vmatpush3.bf16.msra.mxu1 %v8487_v40  ;;  %v2543_v49 = vsel %vm2511_vm13, 1, %v11884_v2 }
  0x81   : > { %1317 = vperm.xlu1 %8468, %v1242_v41   ;;  %1314 = vperm.xlu0 %8467, %v1241_v43   ;;  %v2542_v41 = vsel %vm2510_vm10, 1, %v11884_v2 }
  0x85   : > { %1323 = vperm.xlu1 %8468, %v1244_v47   ;;  %1320 = vperm.xlu0 %8467, %v1243_v48   ;;  %v8488_v47 = vld [vmem:[%s11860_s5 + $0xd8] sm:$0xff]   ;;  %v2544_v48 = vsel %vm2512_vm12, 1, %v11884_v2 }
  0x86   : > { %8156 = vmatprep.subr.bf16.mxu1 %v8488_v47 }
  0x87   : > { %8164 = vmatpush3.bf16.msra.mxu1 %v8488_v47 }
  0x88   : > { %8157 = vmatprep.subr.bf16.mxu1 %v8489_v54 }
  0x89   : > { %1329 = vperm.xlu1 %8468, %v1246_v51   ;;  %1326 = vperm.xlu0 %8467, %v1245_v53   ;;  %v6742_v53 = vld [vmem:[%s11856_s1 + $0x3b8] sm:$0xff] }
  0x8a   : > { %vm2515_vm1 = vcmp.ne.f32.partialorder %v6742_v53, 0.0 }
  0x8b   : > { %8165 = vmatpush3.bf16.msra.mxu1 %v8489_v54 }
  0x8c   : > { %8158 = vmatprep.subr.bf16.mxu1 %v8490_v61 }
  0x8d   : > { %1335 = vperm.xlu1 %8468, %v1248_v56   ;;  %1332 = vperm.xlu0 %8467, %v1247_v58   ;;  %v2545_v56 = vsel %vm2513_vm15, 1, %v11884_v2  ;;  %vm3060_vm15 = vcmp.ne.f32.partialorder %v6828_v52, 0.0 }
  0x8f   : > { %8166 = vmatpush3.bf16.msra.mxu1 %v8490_v61 }
  0x90   : > { %8159 = vmatprep.subr.bf16.mxu1 %v8491_v6 }
  0x91   : > { %1341 = vperm.xlu1 %8468, %v1250_v62   ;;  %1338 = vperm.xlu0 %8467, %v1249_v63   ;;  %v2548_v62 = vsel %vm2516_vm0, 1, %v11884_v2  ;;  %v2547_v63 = vsel %vm2515_vm1, 1, %v11884_v2  ;;  %vm3063_vm0 = vcmp.ne.f32.partialorder %v6831_v59, 0.0  ;;  %vm3062_vm1 = vcmp.ne.f32.partialorder %v6830_v60, 0.0 }
  0x93   : > { %8167 = vmatpush3.bf16.msra.mxu1 %v8491_v6  ;;  %v6832_v6 = vld [vmem:[%s11856_s1 + $0x448] sm:$0xff] }
  0x94   : > { %8160 = vmatprep.subr.bf16.mxu1 %v8492_v15 }
  0x95   : > { %1347 = vperm.xlu1 %8468, %v1252_v4   ;;  %1344 = vperm.xlu0 %8467, %v1251_v5   ;;  %v6746_v4 = vld [vmem:[%s11856_s1 + $0x3d8] sm:$0xff]  ;;  %v9227_v5 = vld [vmem:[%s11860_s5] sm:$0xff]  }
  0x96   : > { %7721 = vmatprep.subr.bf16.mxu0 %v9227_v5  ;;  %vm2519_vm5 = vcmp.ne.f32.partialorder %v6746_v4, 0.0  ;;  %v6833_v4 = vld [vmem:[%s11856_s1 + $0x450] sm:$0xff] }
  0x97   : > { %v2551_v19 = vsel %vm2519_vm5, 1, %v11884_v2  ;;  %8168 = vmatpush3.bf16.msra.mxu1 %v8492_v15  ;;  %vm3065_vm2 = vcmp.ne.f32.partialorder %v6833_v4, 0.0  ;;  %v6835_v15 = vld [vmem:[%s11856_s1 + $0x460] sm:$0xff] }
  0x98   : > { %v9106_v12 = vpop.permute.xlu1 %939  ;;  %v9108_v13 = vpop.permute.xlu0 %933  ;;  %7865 = vmatprep.subr.bf16.mxu1 %v8494_v26  ;;  %v6843_v4 = vld [vmem:[%s11856_s1 + $0x4a0] sm:$0xff] }
  0x99   : > { %1997 = vperm.xlu1 %8468, %v1962_v8   ;;  %1994 = vperm.xlu0 %8467, %v1961_v10   ;;  %v2549_v8 = vsel %vm2517_vm3, 1, %v11884_v2  ;;  %vm3064_vm3 = vcmp.ne.f32.partialorder %v6832_v6, 0.0  ;;  %v6842_v6 = vld [vmem:[%s11856_s1 + $0x498] sm:$0xff] }
  0x9c   : > { %v9115_v17 = vpop.permute.xlu1 %942  ;;  %v9117_v18 = vpop.permute.xlu0 %936 }
  0x9d   : > { %2003 = vperm.xlu1 %8468, %v1964_v14   ;;  %2000 = vperm.xlu0 %8467, %v1963_v16   ;;  %v6748_v14 = vld [vmem:[%s11856_s1 + $0x3e8] sm:$0xff]  ;;  %v2552_v16 = vsel %vm2520_vm4, 1, %v11884_v2  ;;  %vm3067_vm4 = vcmp.ne.f32.partialorder %v6835_v15, 0.0 }
  0x9e   : > { %vm2521_vm7 = vcmp.ne.f32.partialorder %v6748_v14, 0.0 }
  0xa0   : > { %v9130_v24 = vpop.permute.xlu1 %948  ;;  %v9132_v25 = vpop.permute.xlu0 %945 }
  0xa1   : > { %2009 = vperm.xlu1 %8468, %v1966_v20   ;;  %2006 = vperm.xlu0 %8467, %v1965_v22   ;;  %v6823_v22 = vld [vmem:[%s11856_s1 + $0x400] sm:$0xff] }
  0xa2   : > { %vm3055_vm8 = vcmp.ne.f32.partialorder %v6823_v22, 0.0  ;;  %v3096_v22 = vsel %vm3064_vm3, 1, %v11884_v2 }
  0xa4   : > { %v9145_v31 = vpop.permute.xlu1 %954  ;;  %v9147_v32 = vpop.permute.xlu0 %951 }
  0xa5   : > { %2015 = vperm.xlu1 %8468, %v1968_v28   ;;  %2012 = vperm.xlu0 %8467, %v1967_v29   ;;  %v2553_v28 = vsel %vm2521_vm7, 1, %v11884_v2 }
  0xa8   : > { %v9160_v38 = vpop.permute.xlu1 %960  ;;  %v9162_v39 = vpop.permute.xlu0 %957 }
  0xa9   : > { %2605 = vperm.xlu1 %8468, %v2540_v33   ;;  %2018 = vperm.xlu0 %8467, %v1969_v35   ;;  %v6825_v33 = vld [vmem:[%s11856_s1 + $0x410] sm:$0xff]  ;;  %v3087_v35 = vsel %vm3055_vm8, 1, %v11884_v2 }
  0xaa   : > { %vm3057_vm10 = vcmp.ne.f32.partialorder %v6825_v33, 0.0  ;;  %v3099_v33 = vsel %vm3067_vm4, 1, %v11884_v2 }
  0xab   : > { %v3089_v45 = vsel %vm3057_vm10, 1, %v11884_v2 }
  0xac   : > { %v9169_v43 = vpop.permute.xlu1 %966  ;;  %v9171_v44 = vpop.permute.xlu0 %963 }
  0xad   : > { %11900 = vst [vmem:[#allocation7_spill] sm:$0xff] %v9169_v43  ;;  %11901 = vst [vmem:[#allocation8_spill] sm:$0xff] %v9171_v44  ;;  %2611 = vperm.xlu1 %8468, %v2542_v41   ;;  %2608 = vperm.xlu0 %8467, %v2541_v42   ;;  %v6827_v41 = vld [vmem:[%s11856_s1 + $0x420] sm:$0xff]  ;;  %v6826_v42 = vld [vmem:[%s11856_s1 + $0x418] sm:$0xff] }
  0xae   : > { %vm3059_vm12 = vcmp.ne.f32.partialorder %v6827_v41, 0.0  ;;  %vm3058_vm13 = vcmp.ne.f32.partialorder %v6826_v42, 0.0  ;;  %v6839_v41 = vld [vmem:[%s11856_s1 + $0x480] sm:$0xff]  ;;  %v6838_v42 = vld [vmem:[%s11856_s1 + $0x478] sm:$0xff]  ;;  %v8495_v43 = vld [vmem:[%s11860_s5 + $0x8] sm:$0xff]  }
  0xaf   : > { %v3091_v53 = vsel %vm3059_vm12, 1, %v11884_v2  ;;  %v3090_v54 = vsel %vm3058_vm13, 1, %v11884_v2  ;;  %vm3071_vm8 = vcmp.ne.f32.partialorder %v6839_v41, 0.0  ;;  %vm3070_vm9 = vcmp.ne.f32.partialorder %v6838_v42, 0.0  ;;  %v6847_v41 = vld [vmem:[%s11856_s1 + $0x4c0] sm:$0xff]  ;;  %v6846_v42 = vld [vmem:[%s11856_s1 + $0x4b8] sm:$0xff] }
  0xb0   : > { %v9184_v50 = vpop.permute.xlu1 %972  ;;  %v9186_v51 = vpop.permute.xlu0 %969  ;;  %v3103_v59 = vsel %vm3071_vm8, 1, %v11884_v2  ;;  %v3102_v60 = vsel %vm3070_vm9, 1, %v11884_v2  ;;  %vm3075_vm12 = vcmp.ne.f32.partialorder %v6843_v4, 0.0  ;;  %vm3074_vm13 = vcmp.ne.f32.partialorder %v6842_v6, 0.0 }
  0xb1   : > { %11902 = vst [vmem:[#allocation9_spill] sm:$0xff] %v9184_v50  ;;  %11903 = vst [vmem:[#allocation10_spill] sm:$0xff] %v9186_v51  ;;  %2617 = vperm.xlu1 %8468, %v2544_v48   ;;  %2614 = vperm.xlu0 %8467, %v2543_v49   ;;  %v6829_v49 = vld [vmem:[%s11856_s1 + $0x430] sm:$0xff] }
  0xb2   : > { %vm3061_vm14 = vcmp.ne.f32.partialorder %v6829_v49, 0.0 }
  0xb3   : > { %v3093_v61 = vsel %vm3061_vm14, 1, %v11884_v2 }
  0xb4   : > { %v9199_v57 = vpop.permute.xlu1 %978  ;;  %v9201_v58 = vpop.permute.xlu0 %975 }
  0xb5   : > { %11904 = vst [vmem:[#allocation11_spill] sm:$0xff] %v9199_v57  ;;  %11905 = vst [vmem:[#allocation12_spill] sm:$0xff] %v9201_v58  ;;  %2623 = vperm.xlu1 %8468, %v2546_v55   ;;  %2620 = vperm.xlu0 %8467, %v2545_v56  }
  0xb8   : > { %v9214_v0 = vpop.permute.xlu1 %984  ;;  %v9216_v1 = vpop.permute.xlu0 %981 }
  0xb9   : > { %11906 = vst [vmem:[#allocation13_spill] sm:$0xff] %v9214_v0  ;;  %11907 = vst [vmem:[#allocation14_spill] sm:$0xff] %v9216_v1  ;;  %2629 = vperm.xlu1 %8468, %v2548_v62   ;;  %2626 = vperm.xlu0 %8467, %v2547_v63   ;;  %v3092_v62 = vsel %vm3060_vm15, 1, %v11884_v2 }
  0xbc   : > { %v9235_v9 = vpop.permute.xlu1 %990  ;;  %v9237_v10 = vpop.permute.xlu0 %987 }
  0xbd   : > { %11908 = vst [vmem:[#allocation15_spill] sm:$0xff] %v9235_v9  ;;  %11909 = vst [vmem:[#allocation16_spill] sm:$0xff] %v9237_v10  ;;  %2635 = vperm.xlu1 %8468, %v2550_v7   ;;  %2632 = vperm.xlu0 %8467, %v2549_v8   ;;  %v3095_v7 = vsel %vm3063_vm0, 1, %v11884_v2  ;;  %v3094_v8 = vsel %vm3062_vm1, 1, %v11884_v2  ;;  %vm3079_vm0 = vcmp.ne.f32.partialorder %v6847_v41, 0.0  ;;  %vm3078_vm1 = vcmp.ne.f32.partialorder %v6846_v42, 0.0 }
  0xbe   : > { %v3111_v4 = vsel %vm3079_vm0, 1, %v11884_v2  ;;  %v3110_v6 = vsel %vm3078_vm1, 1, %v11884_v2 }
  0xc0   : > { %v9250_v20 = vpop.permute.xlu1 %996  ;;  %v9252_v21 = vpop.permute.xlu0 %993 }
  0xc1   : > { %11910 = vst [vmem:[#allocation17_spill] sm:$0xff] %v9250_v20  ;;  %11911 = vst [vmem:[#allocation18_spill] sm:$0xff] %v9252_v21  ;;  %2641 = vperm.xlu1 %8468, %v2552_v16   ;;  %2638 = vperm.xlu0 %8467, %v2551_v19   ;;  %v6834_v16 = vld [vmem:[%s11856_s1 + $0x458] sm:$0xff]  ;;  %v3097_v19 = vsel %vm3065_vm2, 1, %v11884_v2 }
  0xc2   : > { %vm3066_vm5 = vcmp.ne.f32.partialorder %v6834_v16, 0.0 }
  0xc3   : > { %v3098_v34 = vsel %vm3066_vm5, 1, %v11884_v2 }
  0xc4   : > { %v9265_v29 = vpop.permute.xlu1 %1002  ;;  %v9267_v30 = vpop.permute.xlu0 %999 }
  0xc5   : > { %11912 = vst [vmem:[#allocation19_spill] sm:$0xff] %v9265_v29  ;;  %11913 = vst [vmem:[#allocation20_spill] sm:$0xff] %v9267_v30  ;;  %2647 = vperm.xlu1 %8468, %v2554_v27   ;;  %2644 = vperm.xlu0 %8467, %v2553_v28   ;;  %v6837_v27 = vld [vmem:[%s11856_s1 + $0x470] sm:$0xff]  ;;  %v6836_v28 = vld [vmem:[%s11856_s1 + $0x468] sm:$0xff] }
  0xc6   : > { %vm3069_vm6 = vcmp.ne.f32.partialorder %v6837_v27, 0.0  ;;  %vm3068_vm7 = vcmp.ne.f32.partialorder %v6836_v28, 0.0  ;;  %v3107_v27 = vsel %vm3075_vm12, 1, %v11884_v2  ;;  %v3106_v28 = vsel %vm3074_vm13, 1, %v11884_v2 }
  0xc8   : > { %v9277_v37 = vpop.permute.xlu1 %1008  ;;  %v9279_v40 = vpop.permute.xlu0 %1005 }
  0xc9   : > { %11914 = vst [vmem:[#allocation21_spill] sm:$0xff] %v9277_v37  ;;  %11915 = vst [vmem:[#allocation22_spill] sm:$0xff] %v9279_v40  ;;  %3120 = vperm.xlu1 %8468, %v3087_v35   ;;  %2650 = vperm.xlu0 %8467, %v2555_v36   ;;  %v9501_v40 = vld [vmem:[%s11859_s4] ss:$0 sm:$0xff] }
  0xcc   : > { %v9289_v47 = vpop.permute.xlu1 %1014  ;;  %v9291_v48 = vpop.permute.xlu0 %1011 }
  0xcd   : > { %11916 = vst [vmem:[#allocation23_spill] sm:$0xff] %v9289_v47  ;;  %11917 = vst [vmem:[#allocation24_spill] sm:$0xff] %v9291_v48  ;;  %3126 = vperm.xlu1 %8468, %v3089_v45   ;;  %3123 = vperm.xlu0 %8467, %v3088_v46   ;;  %v3101_v45 = vsel %vm3069_vm6, 1, %v11884_v2  ;;  %v3100_v46 = vsel %vm3068_vm7, 1, %v11884_v2 }
  0xd0   : > { %v9301_v55 = vpop.permute.xlu1 %1020  ;;  %v9303_v56 = vpop.permute.xlu0 %1017 }
  0xd1   : > { %11918 = vst [vmem:[#allocation25_spill] sm:$0xff] %v9301_v55  ;;  %11919 = vst [vmem:[#allocation26_spill] sm:$0xff] %v9303_v56  ;;  %3132 = vperm.xlu1 %8468, %v3091_v53   ;;  %3129 = vperm.xlu0 %8467, %v3090_v54   ;;  %v6841_v53 = vld [vmem:[%s11856_s1 + $0x490] sm:$0xff]  ;;  %v6840_v54 = vld [vmem:[%s11856_s1 + $0x488] sm:$0xff] }
  0xd2   : > { %vm3073_vm10 = vcmp.ne.f32.partialorder %v6841_v53, 0.0  ;;  %vm3072_vm11 = vcmp.ne.f32.partialorder %v6840_v54, 0.0  ;;  %v6930_v55 = vld [vmem:[%s11856_s1 + $0x518] sm:$0xff] }
  0xd3   : > { %vm3621_vm13 = vcmp.ne.f32.partialorder %v6930_v55, 0.0 }
  0xd4   : > { %v9313_v63 = vpop.permute.xlu1 %1026  ;;  %v9315_v3 = vpop.permute.xlu0 %1023  ;;  %v3653_v30 = vsel %vm3621_vm13, 1, %v11884_v2 }
  0xd5   : > { %11920 = vst [vmem:[#allocation27_spill] sm:$0xff] %v9313_v63  ;;  %11921 = vst [vmem:[#allocation28_spill] sm:$0xff] %v9315_v3  ;;  %3138 = vperm.xlu1 %8468, %v3093_v61   ;;  %3135 = vperm.xlu0 %8467, %v3092_v62   ;;  %v6929_v3 = vld [vmem:[%s11856_s1 + $0x510] sm:$0xff]  ;;  %v6928_v63 = vld [vmem:[%s11856_s1 + $0x508] sm:$0xff] }
  0xd8   : > { %v9325_v11 = vpop.permute.xlu1 %1257  ;;  %v9327_v14 = vpop.permute.xlu0 %1254 }
  0xd9   : > { %3144 = vperm.xlu1 %8468, %v3095_v7   ;;  %3141 = vperm.xlu0 %8467, %v3094_v8   ;;  %v3105_v7 = vsel %vm3073_vm10, 1, %v11884_v2  ;;  %v3104_v8 = vsel %vm3072_vm11, 1, %v11884_v2  ;;  %vm3620_vm10 = vcmp.ne.f32.partialorder %v6929_v3, 0.0  ;;  %vm3619_vm11 = vcmp.ne.f32.partialorder %v6928_v63, 0.0  ;;  %v6933_v63 = vld [vmem:[%s11856_s1 + $0x530] sm:$0xff]  ;;  %v6932_v3 = vld [vmem:[%s11856_s1 + $0x528] sm:$0xff] }
  0xdc   : > { %v9337_v23 = vpop.permute.xlu1 %1263  ;;  %v9339_v26 = vpop.permute.xlu0 %1260 }
  0xdd   : > { %3150 = vperm.xlu1 %8468, %v3097_v19   ;;  %3147 = vperm.xlu0 %8467, %v3096_v22   ;;  %v6845_v19 = vld [vmem:[%s11856_s1 + $0x4b0] sm:$0xff]  ;;  %v6844_v22 = vld [vmem:[%s11856_s1 + $0x4a8] sm:$0xff] }
  0xde   : > { %vm3077_vm14 = vcmp.ne.f32.partialorder %v6845_v19, 0.0  ;;  %vm3076_vm15 = vcmp.ne.f32.partialorder %v6844_v22, 0.0  ;;  %v6851_v19 = vld [vmem:[%s11856_s1 + $0x4e0] sm:$0xff]  ;;  %v6850_v22 = vld [vmem:[%s11856_s1 + $0x4d8] sm:$0xff] }
  0xdf   : > { %vm3083_vm4 = vcmp.ne.f32.partialorder %v6851_v19, 0.0  ;;  %vm3082_vm5 = vcmp.ne.f32.partialorder %v6850_v22, 0.0  ;;  %v6927_v19 = vld [vmem:[%s11856_s1 + $0x500] sm:$0xff]  ;;  %v6854_v22 = vld [vmem:[%s11856_s1 + $0x4f8] sm:$0xff] }
  0xe0   : > { %v9349_v35 = vpop.permute.xlu1 %1269  ;;  %v9351_v36 = vpop.permute.xlu0 %1266  ;;  %vm3618_vm8 = vcmp.ne.f32.partialorder %v6927_v19, 0.0  ;;  %vm3086_vm9 = vcmp.ne.f32.partialorder %v6854_v22, 0.0  ;;  %v6931_v19 = vld [vmem:[%s11856_s1 + $0x520] sm:$0xff] }
  0xe1   : > { %3156 = vperm.xlu1 %8468, %v3099_v33   ;;  %3153 = vperm.xlu0 %8467, %v3098_v34   ;;  %vm3622_vm12 = vcmp.ne.f32.partialorder %v6931_v19, 0.0  ;;  %vm1353_vm13 = vcmp.eq.s32.totalorder %v9351_v36, 1 }
  0xe2   : > { %v3654_v55 = vsel %vm3622_vm12, 1, %v11884_v2  ;;  %vm1354_vm12 = vcmp.eq.s32.totalorder %v9349_v35, 1  ;;  %v6943_v35 = vld [vmem:[%s11856_s1 + $0x580] sm:$0xff] }
  0xe4   : > { %v9361_v49 = vpop.permute.xlu1 %1275  ;;  %v9363_v52 = vpop.permute.xlu0 %1272 }
  0xe5   : > { %3162 = vperm.xlu1 %8468, %v3101_v45   ;;  %3159 = vperm.xlu0 %8467, %v3100_v46   ;;  %v3109_v45 = vsel %vm3077_vm14, 1, %v11884_v2  ;;  %v3108_v46 = vsel %vm3076_vm15, 1, %v11884_v2  ;;  %vm3624_vm14 = vcmp.ne.f32.partialorder %v6933_v63, 0.0  ;;  %vm3623_vm15 = vcmp.ne.f32.partialorder %v6932_v3, 0.0 }
  0xe6   : > { %v3656_v1 = vsel %vm3624_vm14, 1, %v11884_v2  ;;  %v3655_v0 = vsel %vm3623_vm15, 1, %v11884_v2  ;;  %vm6517_vm15 = vmpackc.low %vm1354_vm12, %vm1353_vm13 }
  0xe8   : > { %v9373_v61 = vpop.permute.xlu1 %1281  ;;  %v9375_v62 = vpop.permute.xlu0 %1278 }
  0xe9   : > { %3168 = vperm.xlu1 %8468, %v3103_v59   ;;  %3165 = vperm.xlu0 %8467, %v3102_v60   ;;  %v6849_v59 = vld [vmem:[%s11856_s1 + $0x4d0] sm:$0xff]  ;;  %v6848_v60 = vld [vmem:[%s11856_s1 + $0x4c8] sm:$0xff] }
  0xea   : > { %vm3081_vm2 = vcmp.ne.f32.partialorder %v6849_v59, 0.0  ;;  %vm3080_vm3 = vcmp.ne.f32.partialorder %v6848_v60, 0.0  ;;  %v3115_v59 = vsel %vm3083_vm4, 1, %v11884_v2  ;;  %v3114_v60 = vsel %vm3082_vm5, 1, %v11884_v2 }
  0xeb   : > { %vm1352_vm5 = vcmp.eq.s32.totalorder %v9337_v23, 1 }
  0xec   : > { %v9385_v15 = vpop.permute.xlu1 %1287  ;;  %v9387_v16 = vpop.permute.xlu0 %1284 }
  0xed   : > { %3174 = vperm.xlu1 %8468, %v3105_v7   ;;  %3171 = vperm.xlu0 %8467, %v3104_v8  }
  0xf0   : > { %v9397_v33 = vpop.permute.xlu1 %1293  ;;  %v9399_v34 = vpop.permute.xlu0 %1290 }
  0xf1   : > { %3180 = vperm.xlu1 %8468, %v3107_v27   ;;  %3177 = vperm.xlu0 %8467, %v3106_v28   ;;  %v3113_v27 = vsel %vm3081_vm2, 1, %v11884_v2  ;;  %v3112_v28 = vsel %vm3080_vm3, 1, %v11884_v2  ;;  %vm1350_vm2 = vcmp.eq.s32.totalorder %v9325_v11, 1  ;;  %vm1349_vm3 = vcmp.eq.s32.totalorder %v9327_v14, 1 }
  0xf2   : > { %vm6511_vm4 = vmpackc.low %vm1350_vm2, %vm1349_vm3 }
  0xf4   : > { %v9409_v53 = vpop.permute.xlu1 %1299  ;;  %v9411_v54 = vpop.permute.xlu0 %1296 }
  0xf5   : > { %3186 = vperm.xlu1 %8468, %v3109_v45   ;;  %3183 = vperm.xlu0 %8467, %v3108_v46   ;;  %v6853_v45 = vld [vmem:[%s11856_s1 + $0x4f0] sm:$0xff]  ;;  %v6852_v46 = vld [vmem:[%s11856_s1 + $0x4e8] sm:$0xff] }
  0xf6   : > { %vm3085_vm6 = vcmp.ne.f32.partialorder %v6853_v45, 0.0  ;;  %vm3084_vm7 = vcmp.ne.f32.partialorder %v6852_v46, 0.0 }
  0xf8   : > { %v9421_v7 = vpop.permute.xlu1 %1305  ;;  %v9423_v8 = vpop.permute.xlu0 %1302 }
  0xf9   : > { %3192 = vperm.xlu1 %8468, %v3111_v4   ;;  %3189 = vperm.xlu0 %8467, %v3110_v6  }
  0xfc   : > { %v9433_v41 = vpop.permute.xlu1 %1311  ;;  %v9435_v42 = vpop.permute.xlu0 %1308 }
  0xfd   : > { %3198 = vperm.xlu1 %8468, %v3113_v27   ;;  %3195 = vperm.xlu0 %8467, %v3112_v28   ;;  %v3117_v27 = vsel %vm3085_vm6, 1, %v11884_v2  ;;  %v3116_v28 = vsel %vm3084_vm7, 1, %v11884_v2  ;;  %vm1351_vm6 = vcmp.eq.s32.totalorder %v9339_v26, 1  ;;  %v6941_v26 = vld [vmem:[%s11856_s1 + $0x570] sm:$0xff] }
  0xfe   : > { %vm3632_vm14 = vcmp.ne.f32.partialorder %v6941_v26, 0.0  ;;  %v6945_v26 = vld [vmem:[%s11856_s1 + $0x590] sm:$0xff] }
 0x100   : > { %v9445_v4 = vpop.permute.xlu1 %1317  ;;  %v9447_v6 = vpop.permute.xlu0 %1314 }
 0x101   : > { %3204 = vperm.xlu1 %8468, %v3115_v59   ;;  %3201 = vperm.xlu0 %8467, %v3114_v60   ;;  %v3650_v59 = vsel %vm3618_vm8, 1, %v11884_v2  ;;  %v3118_v60 = vsel %vm3086_vm9, 1, %v11884_v2  ;;  %vm6514_vm9 = vmpackc.low %vm1352_vm5, %vm1351_vm6  ;;  %vm1358_vm6 = vcmp.eq.s32.totalorder %v9373_v61, 1 }
 0x104   : > { %v9457_v45 = vpop.permute.xlu1 %1323  ;;  %v9459_v46 = vpop.permute.xlu0 %1320 }
 0x105   : > { %3210 = vperm.xlu1 %8468, %v3117_v27   ;;  %3207 = vperm.xlu0 %8467, %v3116_v28   ;;  %v3652_v27 = vsel %vm3620_vm10, 1, %v11884_v2  ;;  %v3651_v28 = vsel %vm3619_vm11, 1, %v11884_v2 }
 0x108   : > { %v9472_v22 = vpop.permute.xlu1 %1329  ;;  %v9474_v56 = vpop.permute.xlu0 %1326 }
 0x109   : > { %3683 = vperm.xlu1 %8468, %v3650_v59   ;;  %3213 = vperm.xlu0 %8467, %v3118_v60   ;;  %v9494_v59 = vld [vmem:[%s11858_s3] ss:$0 sm:$0xff] }
 0x10c   : > { %v9487_v48 = vpop.permute.xlu1 %1335  ;;  %v9489_v47 = vpop.permute.xlu0 %1332 }
 0x10d   : > { %v7643_v60 = vpop.f32.mrb[0].mxu0  ;;  %3689 = vperm.xlu1 %8468, %v3652_v27   ;;  %3686 = vperm.xlu0 %8467, %v3651_v28   ;;  %v6935_v27 = vld [vmem:[%s11856_s1 + $0x540] sm:$0xff]  ;;  %v6934_v28 = vld [vmem:[%s11856_s1 + $0x538] sm:$0xff] }
 0x10e   : > { %v671_v19 = vmul.f32 %v7643_v60, %v9494_v59  ;;  %v535_v37 = vpop.f32.mrb[1].mxu0  ;;  %vm3626_vm0 = vcmp.ne.f32.partialorder %v6935_v27, 0.0  ;;  %vm3625_vm1 = vcmp.ne.f32.partialorder %v6934_v28, 0.0  ;;  %v6939_v27 = vld [vmem:[%s11856_s1 + $0x560] sm:$0xff] }
 0x10f   : > { %v669_v29 = vmul.f32 %v9494_v59, %v535_v37  ;;  %v7644_v21 = vpop.f32.mrb[2].mxu0  ;;  %vm3630_vm10 = vcmp.ne.f32.partialorder %v6939_v27, 0.0 }
 0x110   : > { %v710_v60 = vadd.f32 %v9501_v40, %v671_v19  ;;  %v672_v20 = vmul.f32 %v7644_v21, %v9494_v59  ;;  %v538_v10 = vpop.f32.mrb[3].mxu0  ;;  %v9513_v9 = vpop.permute.xlu1 %1341  ;;  %v1124_v21 = vld [vmem:[#allocation2 + $0x8] sm:$0xff] }
 0x111   : > { %v708_v63 = vadd.f32 %v9501_v40, %v669_v29  ;;  %v670_v37 = vmul.f32 %v9494_v59, %v538_v10  ;;  %v9517_v3 = vpop.permute.xlu0 %1338  ;;  %3695 = vperm.xlu1 %8468, %v3654_v55   ;;  %3692 = vperm.xlu0 %8467, %v3653_v30   ;;  %v6937_v30 = vld [vmem:[%s11856_s1 + $0x550] sm:$0xff] }
 0x112   : > { %v742_v58 = vmax.f32 %v710_v60, 0.0  ;;  %v9522_v19 = vadd.f32 %v9501_v40, %v672_v20  ;;  %v6936_v20 = vld [vmem:[%s11856_s1 + $0x548] sm:$0xff]  ;;  %vm3628_vm7 = vcmp.ne.f32.partialorder %v6937_v30, 0.0 }
 0x113   : > { %v740_v10 = vmax.f32 %v708_v63, 0.0  ;;  %v709_v29 = vadd.f32 %v9501_v40, %v670_v37  ;;  %v11922_v37 = vmov 0   ;;  %vm3627_vm8 = vcmp.ne.f32.partialorder %v6936_v20, 0.0  ;;  %v6940_v30 = vld [vmem:[%s11856_s1 + $0x568] sm:$0xff] }
 0x114   : > { %774 = vst [vmem:[#allocation2 + $0x20] sm:$0xff] %v742_v58  ;;  %v9531_v60 = vpop.permute.xlu1 %1347  ;;  %v3658_v51 = vsel %vm3626_vm0, 1, %v11922_v37  ;;  %v3657_v50 = vsel %vm3625_vm1, 1, %v11922_v37  ;;  %v3659_v23 = vsel %vm3627_vm8, 1, %v11922_v37  ;;  %vm1356_vm0 = vcmp.eq.s32.totalorder %v9361_v49, 1 }
 0x115   : > { %772 = vst [vmem:[#allocation2 + $0x10] sm:$0xff] %v740_v10  ;;  %v741_v2 = vmax.f32 %v709_v29, 0.0  ;;  %v9536_v57 = vpop.permute.xlu0 %1344  ;;  %v7647_v63 = vpop.f32.mrb[4].mxu0  ;;  %3701 = vperm.xlu1 %8468, %v3656_v1   ;;  %3698 = vperm.xlu0 %8467, %v3655_v0   ;;  %v6512_v55 = vpack.c.bf16 %v740_v10, %v1124_v21  ;;  %v11923_v29 = vmax.f32 %v9522_v19, 0.0  ;;  %v6938_v21 = vld [vmem:[%s11856_s1 + $0x558] sm:$0xff]  ;;  %vm1355_vm1 = vcmp.eq.s32.totalorder %v9363_v52, 1 }
 0x116   : > { %v675_v0 = vmul.f32 %v7647_v63, %v9494_v59  ;;  %v551_v1 = vpop.f32.mrb[5].mxu0  ;;  %vm3629_vm11 = vcmp.ne.f32.partialorder %v6938_v21, 0.0  ;;  %vm3631_vm2 = vcmp.ne.f32.partialorder %v6940_v30, 0.0  ;;  %vm6520_vm3 = vmpackc.low %vm1356_vm0, %vm1355_vm1  ;;  %vm1362_vm0 = vcmp.eq.s32.totalorder %v9397_v33, 1  ;;  %v6951_v33 = vld [vmem:[%s11856_s1 + $0x5c0] sm:$0xff] }
 0x117   : > { %775 = vst [vmem:[#allocation2 + $0x28] sm:$0xff] %v11923_v29  ;;  %773 = vst [vmem:[#allocation2 + $0x18] sm:$0xff] %v741_v2  ;;  %v673_v14 = vmul.f32 %v9494_v59, %v551_v1  ;;  %v7648_v11 = vpop.f32.mrb[6].mxu0  ;;  %7689 = vmatprep.mubr.msk.bf16.mxu0 %vm6511_vm4, %v6512_v55  ;;  %v6515_v28 = vpack.c.bf16 %v742_v58, %v741_v2  ;;  %vm3634_vm4 = vcmp.ne.f32.partialorder %v6943_v35, 0.0  ;;  %vm1361_vm1 = vcmp.eq.s32.totalorder %v9399_v34, 1 }
 0x118   : > { %v714_v10 = vadd.f32 %v9501_v40, %v675_v0  ;;  %v676_v63 = vmul.f32 %v7648_v11, %v9494_v59  ;;  %v554_v29 = vpop.f32.mrb[7].mxu0  ;;  %v9560_v44 = vpop.permute.xlu1 %1997  ;;  %v3660_v0 = vsel %vm3628_vm7, 1, %v11922_v37  ;;  %vm1357_vm7 = vcmp.eq.s32.totalorder %v9375_v62, 1 }
 0x119   : > { %v712_v2 = vadd.f32 %v9501_v40, %v673_v14  ;;  %v674_v58 = vmul.f32 %v9494_v59, %v554_v29  ;;  %v9571_v55 = vpop.permute.xlu0 %1994  ;;  %3707 = vperm.xlu1 %8468, %v3658_v51   ;;  %3704 = vperm.xlu0 %8467, %v3657_v50   ;;  %vm6523_vm8 = vmpackc.low %vm1358_vm6, %vm1357_vm7 }
 0x11a   : > { %v746_v1 = vmax.f32 %v714_v10, 0.0  ;;  %v9576_v11 = vadd.f32 %v9501_v40, %v676_v63  ;;  %7690 = vmatmul.mubr.msk.bf16.vlgmr.msra.gmra.mrb[32].mxu0 %vm6514_vm9, %v6515_v28  ;;  %v3662_v28 = vsel %vm3630_vm10, 1, %v11922_v37  ;;  %v8497_v10 = vld [vmem:[%s11860_s5 + $0x10] sm:$0xff]   ;;  %vm1360_vm9 = vcmp.eq.s32.totalorder %v9385_v15, 1 }
 0x11b   : > { %v744_v50 = vmax.f32 %v712_v2, 0.0  ;;  %v713_v51 = vadd.f32 %v9501_v40, %v674_v58  ;;  %7722 = vmatpush3.bf16.msra.mxu0 %v9227_v5  ;;  %v3661_v5 = vsel %vm3629_vm11, 1, %v11922_v37  ;;  %v11924_v58 = vmax.f32 %v9522_v19, 0.0 }
 0x11c   : > { %778 = vst [vmem:[#allocation2 + $0x40] sm:$0xff] %v746_v1  ;;  %v11891_v20 = vmax.f32 %v9576_v11, 0.0  ;;  %v9591_v14 = vpop.permute.xlu1 %2003  ;;  %7723 = vmatprep.subr.bf16.mxu0 %v8495_v43  ;;  %vm1359_vm10 = vcmp.eq.s32.totalorder %v9387_v16, 1  ;;  %vm3636_vm11 = vcmp.ne.f32.partialorder %v6945_v26, 0.0  ;;  %v6949_v16 = vld [vmem:[%s11856_s1 + $0x5b0] sm:$0xff] }
 0x11d   : > { %776 = vst [vmem:[#allocation2 + $0x30] sm:$0xff] %v744_v50  ;;  %v745_v63 = vmax.f32 %v713_v51, 0.0  ;;  %v9598_v29 = vpop.permute.xlu0 %2000  ;;  %v7651_v2 = vpop.f32.mrb[8].mxu0  ;;  %3713 = vperm.xlu1 %8468, %v3660_v0   ;;  %3710 = vperm.xlu0 %8467, %v3659_v23   ;;  %v6518_v27 = vpack.c.bf16 %v744_v50, %v11924_v58  ;;  %v6942_v50 = vld [vmem:[%s11856_s1 + $0x578] sm:$0xff]  ;;  %vm6526_vm13 = vmpackc.low %vm1360_vm9, %vm1359_vm10  ;;  %vm1366_vm10 = vcmp.eq.s32.totalorder %v9421_v7, 1 }
 0x11e   : > { %779 = vst [vmem:[#allocation2 + $0x48] sm:$0xff] %v11891_v20  ;;  %v679_v0 = vmul.f32 %v7651_v2, %v9494_v59  ;;  %v567_v21 = vpop.f32.mrb[9].mxu0  ;;  %vm3633_vm5 = vcmp.ne.f32.partialorder %v6942_v50, 0.0 }
 0x11f   : > { %777 = vst [vmem:[#allocation2 + $0x38] sm:$0xff] %v745_v63  ;;  %v677_v19 = vmul.f32 %v9494_v59, %v567_v21  ;;  %v7652_v23 = vpop.f32.mrb[10].mxu0  ;;  %7693 = vmatprep.mubr.msk.bf16.mxu0 %vm6517_vm15, %v6518_v27  ;;  %v6521_v36 = vpack.c.bf16 %v746_v1, %v745_v63  ;;  %7724 = vmatpush3.bf16.msra.mxu0 %v8495_v43  ;;  %v8499_v1 = vld [vmem:[%s11860_s5 + $0x18] sm:$0xff]   ;;  %v3663_v21 = vsel %vm3631_vm2, 1, %v11922_v37  ;;  %vm3640_vm2 = vcmp.ne.f32.partialorder %v6949_v16, 0.0  ;;  %v6953_v16 = vld [vmem:[%s11856_s1 + $0x5d0] sm:$0xff] }
 0x120   : > { %v718_v51 = vadd.f32 %v9501_v40, %v679_v0  ;;  %v680_v2 = vmul.f32 %v7652_v23, %v9494_v59  ;;  %v570_v58 = vpop.f32.mrb[11].mxu0  ;;  %v9622_v20 = vpop.permute.xlu1 %2009  ;;  %7725 = vmatprep.subr.bf16.mxu0 %v8497_v10  ;;  %v3664_v0 = vsel %vm3632_vm14, 1, %v11922_v37 }
 0x121   : > { %v716_v63 = vadd.f32 %v9501_v40, %v677_v19  ;;  %v678_v43 = vmul.f32 %v9494_v59, %v570_v58  ;;  %v9633_v27 = vpop.permute.xlu0 %2006  ;;  %3719 = vperm.xlu1 %8468, %v3662_v28   ;;  %3716 = vperm.xlu0 %8467, %v3661_v5   ;;  %v6944_v19 = vld [vmem:[%s11856_s1 + $0x588] sm:$0xff] }
 0x122   : > { %11925 = vst [vmem:[#allocation29_spill] sm:$0xff] %v9633_v27  ;;  %v750_v23 = vmax.f32 %v718_v51, 0.0  ;;  %v9640_v52 = vadd.f32 %v9501_v40, %v680_v2  ;;  %7694 = vmatmul.mubr.msk.bf16.gmra.mrb[36].mxu0 %vm6520_vm3, %v6521_v36  ;;  %v8501_v36 = vld [vmem:[%s11860_s5 + $0x20] sm:$0xff]   ;;  %vm3635_vm12 = vcmp.ne.f32.partialorder %v6944_v19, 0.0  ;;  %vm6529_vm3 = vmpackc.low %vm1362_vm0, %vm1361_vm1 }
 0x123   : > { %v748_v49 = vmax.f32 %v716_v63, 0.0  ;;  %v717_v28 = vadd.f32 %v9501_v40, %v678_v43  ;;  %7726 = vmatpush3.bf16.msra.mxu0 %v8497_v10  ;;  %v3666_v10 = vsel %vm3634_vm4, 1, %v11922_v37  ;;  %v3665_v63 = vsel %vm3633_vm5, 1, %v11922_v37 }
 0x124   : > { %782 = vst [vmem:[#allocation2 + $0x60] sm:$0xff] %v750_v23  ;;  %v9649_v5 = vpop.permute.xlu1 %2015  ;;  %7727 = vmatprep.subr.bf16.mxu0 %v8499_v1  ;;  %v11928_v43 = vmax.f32 %v9576_v11, 0.0  ;;  %v6947_v11 = vld [vmem:[%s11856_s1 + $0x5a0] sm:$0xff]  ;;  %v3667_v15 = vsel %vm3635_vm12, 1, %v11922_v37  ;;  %vm1364_vm4 = vcmp.eq.s32.totalorder %v9409_v53, 1  ;;  %vm1363_vm5 = vcmp.eq.s32.totalorder %v9411_v54, 1 }
 0x125   : > { %11926 = vst [vmem:[#allocation30_spill] sm:$0xff] %v9649_v5  ;;  %780 = vst [vmem:[#allocation2 + $0x50] sm:$0xff] %v748_v49  ;;  %v749_v51 = vmax.f32 %v717_v28, 0.0  ;;  %v9657_v2 = vpop.permute.xlu0 %2012  ;;  %v7655_v58 = vpop.f32.mrb[12].mxu0  ;;  %3725 = vperm.xlu1 %8468, %v3664_v0   ;;  %3722 = vperm.xlu0 %8467, %v3663_v21   ;;  %v11929_v0 = vmax.f32 %v9640_v52, 0.0  ;;  %vm3638_vm14 = vcmp.ne.f32.partialorder %v6947_v11, 0.0 }
 0x126   : > { %11927 = vst [vmem:[#allocation31_spill] sm:$0xff] %v9657_v2  ;;  %v6524_v30 = vpack.c.bf16 %v748_v49, %v11928_v43  ;;  %v683_v35 = vmul.f32 %v7655_v58, %v9494_v59  ;;  %v583_v21 = vpop.f32.mrb[13].mxu0  ;;  %v6946_v49 = vld [vmem:[%s11856_s1 + $0x598] sm:$0xff]  ;;  %vm6532_vm7 = vmpackc.low %vm1364_vm4, %vm1363_vm5  ;;  %vm1370_vm4 = vcmp.eq.s32.totalorder %v9445_v4, 1  ;;  %vm1369_vm5 = vcmp.eq.s32.totalorder %v9447_v6, 1 }
 0x127   : > { %783 = vst [vmem:[#allocation2 + $0x68] sm:$0xff] %v11929_v0  ;;  %781 = vst [vmem:[#allocation2 + $0x58] sm:$0xff] %v749_v51  ;;  %v681_v62 = vmul.f32 %v9494_v59, %v583_v21  ;;  %v7656_v61 = vpop.f32.mrb[14].mxu0  ;;  %v6527_v50 = vpack.c.bf16 %v750_v23, %v749_v51  ;;  %7728 = vmatpush3.bf16.msra.mxu0 %v8499_v1  ;;  %v8503_v21 = vld [vmem:[%s11860_s5 + $0x28] sm:$0xff]   ;;  %v3668_v51 = vsel %vm3636_vm11, 1, %v11922_v37  ;;  %vm3637_vm15 = vcmp.ne.f32.partialorder %v6946_v49, 0.0 }
 0x128   : > { %7697 = vmatprep.mubr.msk.bf16.mxu0 %vm6523_vm8, %v6524_v30  ;;  %v722_v28 = vadd.f32 %v9501_v40, %v683_v35  ;;  %v684_v58 = vmul.f32 %v7656_v61, %v9494_v59  ;;  %v586_v43 = vpop.f32.mrb[15].mxu0  ;;  %v9683_v0 = vpop.permute.xlu1 %2605  ;;  %7729 = vmatprep.subr.bf16.mxu0 %v8501_v36  ;;  %vm3642_vm8 = vcmp.ne.f32.partialorder %v6951_v33, 0.0  ;;  %vm1365_vm11 = vcmp.eq.s32.totalorder %v9423_v8, 1 }
 0x129   : > { %v720_v23 = vadd.f32 %v9501_v40, %v681_v62  ;;  %v682_v1 = vmul.f32 %v9494_v59, %v586_v43  ;;  %v9694_v30 = vpop.permute.xlu0 %2018  ;;  %3731 = vperm.xlu1 %8468, %v3666_v10   ;;  %3728 = vperm.xlu0 %8467, %v3665_v63   ;;  %v6948_v63 = vld [vmem:[%s11856_s1 + $0x5a8] sm:$0xff]  ;;  %vm6535_vm12 = vmpackc.low %vm1366_vm10, %vm1365_vm11  ;;  %vm1371_vm11 = vcmp.eq.s32.totalorder %v9459_v46, 1 }
 0x12a   : > { %11930 = vst [vmem:[#allocation32_spill] sm:$0xff] %v9694_v30  ;;  %v754_v35 = vmax.f32 %v722_v28, 0.0  ;;  %v9699_v61 = vadd.f32 %v9501_v40, %v684_v58  ;;  %7698 = vmatmul.mubr.msk.bf16.gmra.mrb[40].mxu0 %vm6526_vm13, %v6527_v50  ;;  %v3670_v50 = vsel %vm3638_vm14, 1, %v11922_v37  ;;  %v8505_v28 = vld [vmem:[%s11860_s5 + $0x30] sm:$0xff]   ;;  %vm3639_vm6 = vcmp.ne.f32.partialorder %v6948_v63, 0.0  ;;  %vm6541_vm10 = vmpackc.low %vm1370_vm4, %vm1369_vm5 }
 0x12b   : > { %v752_v26 = vmax.f32 %v720_v23, 0.0  ;;  %v721_v10 = vadd.f32 %v9501_v40, %v682_v1  ;;  %7730 = vmatpush3.bf16.msra.mxu0 %v8501_v36  ;;  %v3669_v36 = vsel %vm3637_vm15, 1, %v11922_v37  ;;  %v11931_v1 = vmax.f32 %v9640_v52, 0.0 }
 0x12c   : > { %786 = vst [vmem:[#allocation2 + $0x80] sm:$0xff] %v754_v35  ;;  %v11892_v19 = vmax.f32 %v9699_v61, 0.0  ;;  %v9713_v62 = vpop.permute.xlu1 %2611  ;;  %7731 = vmatprep.subr.bf16.mxu0 %v8503_v21  ;;  %v11932_v63 = vmax.f32 %v9699_v61, 0.0  ;;  %vm1368_vm13 = vcmp.eq.s32.totalorder %v9433_v41, 1  ;;  %vm1367_vm14 = vcmp.eq.s32.totalorder %v9435_v42, 1  ;;  %v6954_v61 = vld [vmem:[%s11856_s1 + $0x5d8] sm:$0xff] }
 0x12d   : > { %784 = vst [vmem:[#allocation2 + $0x70] sm:$0xff] %v752_v26  ;;  %v753_v58 = vmax.f32 %v721_v10, 0.0  ;;  %v9720_v43 = vpop.permute.xlu0 %2608  ;;  %v7659_v23 = vpop.f32.mrb[16].mxu0  ;;  %3737 = vperm.xlu1 %8468, %v3668_v51   ;;  %3734 = vperm.xlu0 %8467, %v3667_v15   ;;  %v6530_v11 = vpack.c.bf16 %v752_v26, %v11931_v1  ;;  %v6950_v26 = vld [vmem:[%s11856_s1 + $0x5b8] sm:$0xff]  ;;  %vm3644_vm15 = vcmp.ne.f32.partialorder %v6953_v16, 0.0  ;;  %v9828_v41 = vld [vmem:[%s11856_s1 + $0x5e8] sm:$0xff] }
 0x12e   : > { %787 = vst [vmem:[#allocation2 + $0x88] sm:$0xff] %v11892_v19  ;;  %v687_v51 = vmul.f32 %v7659_v23, %v9494_v59  ;;  %v599_v49 = vpop.f32.mrb[17].mxu0  ;;  %vm3641_vm9 = vcmp.ne.f32.partialorder %v6950_v26, 0.0  ;;  %vm1374_vm4 = vcmp.eq.s32.totalorder %v9472_v22, 1  ;;  %vm1373_vm5 = vcmp.eq.s32.totalorder %v9474_v56, 1 }
 0x12f   : > { %785 = vst [vmem:[#allocation2 + $0x78] sm:$0xff] %v753_v58  ;;  %v685_v52 = vmul.f32 %v9494_v59, %v599_v49  ;;  %v7660_v15 = vpop.f32.mrb[18].mxu0  ;;  %7701 = vmatprep.mubr.msk.bf16.mxu0 %vm6529_vm3, %v6530_v11  ;;  %v6533_v34 = vpack.c.bf16 %v754_v35, %v753_v58  ;;  %7732 = vmatpush3.bf16.msra.mxu0 %v8503_v21  ;;  %v8507_v35 = vld [vmem:[%s11860_s5 + $0x38] sm:$0xff]   ;;  %v3671_v49 = vsel %vm3639_vm6, 1, %v11922_v37  ;;  %vm3645_vm3 = vcmp.ne.f32.partialorder %v6954_v61, 0.0 }
 0x130   : > { %v726_v10 = vadd.f32 %v9501_v40, %v687_v51  ;;  %v688_v23 = vmul.f32 %v7660_v15, %v9494_v59  ;;  %v602_v1 = vpop.f32.mrb[19].mxu0  ;;  %v9744_v19 = vpop.permute.xlu1 %2617  ;;  %7733 = vmatprep.subr.bf16.mxu0 %v8505_v28  ;;  %v3672_v51 = vsel %vm3640_vm2, 1, %v11922_v37  ;;  %vm6538_vm2 = vmpackc.low %vm1368_vm13, %vm1367_vm14  ;;  %vm2668_vm13 = vcmp.eq.s32.totalorder %v9683_v0, 1 }
 0x131   : > { %v724_v58 = vadd.f32 %v9501_v40, %v685_v52  ;;  %v686_v21 = vmul.f32 %v9494_v59, %v602_v1  ;;  %v9755_v11 = vpop.permute.xlu0 %2614  ;;  %3743 = vperm.xlu1 %8468, %v3670_v50   ;;  %3740 = vperm.xlu0 %8467, %v3669_v36   ;;  %v6952_v52 = vld [vmem:[%s11856_s1 + $0x5c8] sm:$0xff]  ;;  %vm2670_vm14 = vcmp.eq.s32.totalorder %v9713_v62, 1 }
 0x132   : > { %v758_v15 = vmax.f32 %v726_v10, 0.0  ;;  %v9762_v54 = vadd.f32 %v9501_v40, %v688_v23  ;;  %7702 = vmatmul.mubr.msk.bf16.gmra.mrb[44].mxu0 %vm6532_vm7, %v6533_v34  ;;  %v6955_v34 = vld [vmem:[%s11856_s1 + $0x5e0] sm:$0xff]  ;;  %vm3643_vm0 = vcmp.ne.f32.partialorder %v6952_v52, 0.0  ;;  %v3677_v52 = vsel %vm3645_vm3, 1, %v11922_v37 }
 0x133   : > { %v756_v53 = vmax.f32 %v724_v58, 0.0  ;;  %v725_v50 = vadd.f32 %v9501_v40, %v686_v21  ;;  %7734 = vmatpush3.bf16.msra.mxu0 %v8505_v28  ;;  %v9782_v10 = vld [vmem:[%s11860_s5 + $0x80] sm:$0xff]   ;;  %v3674_v58 = vsel %vm3642_vm8, 1, %v11922_v37  ;;  %v3673_v21 = vsel %vm3641_vm9, 1, %v11922_v37 }
 0x134   : > { %790 = vst [vmem:[#allocation2 + $0xa0] sm:$0xff] %v758_v15  ;;  %v9771_v36 = vpop.permute.xlu1 %2623  ;;  %7735 = vmatprep.subr.bf16.mxu0 %v8507_v35  ;;  %vm3646_vm1 = vcmp.ne.f32.partialorder %v6955_v34, 0.0  ;;  %vm3647_vm7 = vcmp.ne.f32.partialorder %v9828_v41, 0.0  ;;  %v9852_v34 = vld [vmem:[%s11856_s1 + $0x600] sm:$0xff]  ;;  %vm1372_vm8 = vcmp.eq.s32.totalorder %v9457_v45, 1  ;;  %vm2669_vm9 = vcmp.eq.s32.totalorder %v9720_v43, 1 }
 0x135   : > { %788 = vst [vmem:[#allocation2 + $0x90] sm:$0xff] %v756_v53  ;;  %v757_v28 = vmax.f32 %v725_v50, 0.0  ;;  %v9784_v23 = vpop.permute.xlu0 %2620  ;;  %v7663_v1 = vpop.f32.mrb[20].mxu0  ;;  %3749 = vperm.xlu1 %8468, %v3672_v51   ;;  %3746 = vperm.xlu0 %8467, %v3671_v49   ;;  %v6536_v30 = vpack.c.bf16 %v756_v53, %v11932_v63  ;;  %v11933_v51 = vmax.f32 %v9762_v54, 0.0  ;;  %v3678_v16 = vsel %vm3646_vm1, 1, %v11922_v37  ;;  %v9906_v43 = vld [vmem:[%s11856_s1 + $0x610] sm:$0xff]  ;;  %vm6544_vm3 = vmpackc.low %vm1372_vm8, %vm1371_vm11 }
 0x136   : > { %v691_v33 = vmul.f32 %v7663_v1, %v9494_v59  ;;  %v615_v49 = vpop.f32.mrb[21].mxu0  ;;  %vm4181_vm1 = vcmp.ne.f32.partialorder %v9852_v34, 0.0  ;;  %v9925_v45 = vld [vmem:[%s11856_s1 + $0x608] sm:$0xff]  ;;  %vm1376_vm11 = vcmp.eq.s32.totalorder %v9487_v48, 1  ;;  %v7037_v48 = vld [vmem:[%s11856_s1 + $0x630] sm:$0xff] }
 0x137   : > { %791 = vst [vmem:[#allocation2 + $0xa8] sm:$0xff] %v11933_v51  ;;  %789 = vst [vmem:[#allocation2 + $0x98] sm:$0xff] %v757_v28  ;;  %v689_v8 = vmul.f32 %v9494_v59, %v615_v49  ;;  %v7664_v7 = vpop.f32.mrb[22].mxu0  ;;  %7705 = vmatprep.mubr.msk.bf16.mxu0 %vm6535_vm12, %v6536_v30  ;;  %v6539_v26 = vpack.c.bf16 %v758_v15, %v757_v28  ;;  %7736 = vmatpush3.bf16.msra.mxu0 %v8507_v35  ;;  %v3676_v35 = vsel %vm3644_vm15, 1, %v11922_v37  ;;  %v9823_v28 = vld [vmem:[%s11856_s1 + $0x5f0] sm:$0xff] }
 0x138   : > { %v730_v53 = vadd.f32 %v9501_v40, %v691_v33  ;;  %v692_v50 = vmul.f32 %v7664_v7, %v9494_v59  ;;  %v618_v63 = vpop.f32.mrb[23].mxu0  ;;  %v9807_v1 = vpop.permute.xlu1 %2629  ;;  %7769 = vmatprep.subr.bf16.mxu0 %v9782_v10  ;;  %vm3648_vm6 = vcmp.ne.f32.partialorder %v9823_v28, 0.0  ;;  %vm2671_vm12 = vcmp.eq.s32.totalorder %v9755_v11, 1  ;;  %vm6799_vm15 = vmpackc.low %vm2669_vm9, %vm2668_vm13  ;;  %v8557_v28 = vld [vmem:[%s11860_s5 + $0x100] sm:$0xff]  }
 0x139   : > { %v728_v51 = vadd.f32 %v9501_v40, %v689_v8  ;;  %v690_v30 = vmul.f32 %v9494_v59, %v618_v63  ;;  %v9816_v15 = vpop.permute.xlu0 %2626  ;;  %3755 = vperm.xlu1 %8468, %v3674_v58   ;;  %3752 = vperm.xlu0 %8467, %v3673_v21   ;;  %v3675_v58 = vsel %vm3643_vm0, 1, %v11922_v37  ;;  %v6958_v8 = vld [vmem:[%s11856_s1 + $0x5f8] sm:$0xff]  ;;  %vm6802_vm0 = vmpackc.low %vm2671_vm12, %vm2670_vm14  ;;  %vm4182_vm8 = vcmp.ne.f32.partialorder %v9925_v45, 0.0 }
 0x13a   : > { %v762_v42 = vmax.f32 %v730_v53, 0.0  ;;  %v9831_v33 = vadd.f32 %v9501_v40, %v692_v50  ;;  %7706 = vmatmul.mubr.msk.bf16.gmra.mrb[48].mxu0 %vm6538_vm2, %v6539_v26  ;;  %vm3649_vm2 = vcmp.ne.f32.partialorder %v6958_v8, 0.0  ;;  %vm1028_vm9 = vcmp.eq.s32.totalorder %v9108_v13, 1  ;;  %v7039_v13 = vld [vmem:[%s11856_s1 + $0x640] sm:$0xff] }
 0x13b   : > { %v760_v21 = vmax.f32 %v728_v51, 0.0  ;;  %v729_v49 = vadd.f32 %v9501_v40, %v690_v30  ;;  %v11934_v51 = vmax.f32 %v9762_v54, 0.0  ;;  %vm1375_vm12 = vcmp.eq.s32.totalorder %v9489_v47, 1 }
 0x13c   : > { %794 = vst [vmem:[#allocation2 + $0xc0] sm:$0xff] %v762_v42  ;;  %v9841_v7 = vpop.permute.xlu1 %2635  ;;  %v9843_v53 = vld [vmem:[#allocation2 + $0x8f] sm:$0xff]  ;;  %v11936_v8 = vmax.f32 %v9831_v33, 0.0  ;;  %vm2675_vm13 = vcmp.eq.s32.totalorder %v9816_v15, 1  ;;  %vm2672_vm14 = vcmp.eq.s32.totalorder %v9744_v19, 1 }
 0x13d   : > { %792 = vst [vmem:[#allocation2 + $0xb0] sm:$0xff] %v760_v21  ;;  %v761_v26 = vmax.f32 %v729_v49, 0.0  ;;  %v9855_v50 = vpop.permute.xlu0 %2632  ;;  %v7667_v63 = vpop.f32.mrb[24].mxu0  ;;  %3761 = vperm.xlu1 %8468, %v3676_v35   ;;  %3758 = vperm.xlu0 %8467, %v3675_v58   ;;  %v6542_v30 = vpack.c.bf16 %v760_v21, %v11934_v51  ;;  %v11935_v35 = vmax.f32 %v9831_v33, 0.0 }
 0x13e   : > { %v9858_v61 = vld [vmem:[#allocation2 + $0xa7] sm:$0xff]  ;;  %v695_v58 = vmul.f32 %v7667_v63, %v9494_v59  ;;  %v631_v54 = vpop.f32.mrb[25].mxu0  ;;  %v9874_v21 = vld [vmem:[#allocation2 + $0x97] sm:$0xff]  ;;  %v9877_v49 = vld [vmem:[#allocation2 + $0x9f] sm:$0xff] }
 0x13f   : > { %795 = vst [vmem:[#allocation2 + $0xc8] sm:$0xff] %v11935_v35  ;;  %793 = vst [vmem:[#allocation2 + $0xb8] sm:$0xff] %v761_v26  ;;  %v693_v4 = vmul.f32 %v9494_v59, %v631_v54  ;;  %v7668_v6 = vpop.f32.mrb[26].mxu0  ;;  %v6800_v51 = vpack.c.bf16 %v9874_v21, %v9843_v53  ;;  %v6803_v2 = vpack.c.bf16 %v9858_v61, %v9877_v49  ;;  %7709 = vmatprep.mubr.msk.bf16.mxu0 %vm6541_vm10, %v6542_v30  ;;  %v8496_v54 = vld [vmem:[%s11860_s5 + $0x108] sm:$0xff]  }
 0x140   : > { %v6545_v35 = vpack.c.bf16 %v762_v42, %v761_v26  ;;  %v9886_v63 = vadd.f32 %v9501_v40, %v695_v58  ;;  %v696_v0 = vmul.f32 %v7668_v6, %v9494_v59  ;;  %v634_v5 = vpop.f32.mrb[27].mxu0  ;;  %v9889_v27 = vpop.permute.xlu1 %2641  ;;  %v3679_v30 = vsel %vm3647_vm7, 1, %v11922_v37  ;;  %vm9963_vm10 = vmpackc.low %vm1374_vm4, %vm1373_vm5 }
 0x141   : > { %v732_v62 = vadd.f32 %v9501_v40, %v693_v4  ;;  %v694_v42 = vmul.f32 %v9494_v59, %v634_v5  ;;  %v9900_v26 = vpop.permute.xlu0 %2638  ;;  %7849 = vmatprep.mubr.msk.bf16.mxu1 %vm6799_vm15, %v6800_v51  ;;  %3767 = vperm.xlu1 %8468, %v3678_v16   ;;  %v3680_v16 = vsel %vm3648_vm6, 1, %v11922_v37  ;;  %v4213_v4 = vsel %vm4181_vm1, 1, %v11922_v37  ;;  %v8498_v51 = vld [vmem:[%s11860_s5 + $0x110] sm:$0xff]  }
 0x142   : > { %v766_v11 = vmax.f32 %v9886_v63, 0.0  ;;  %v9914_v5 = vadd.f32 %v9501_v40, %v696_v0  ;;  %3764 = vperm.xlu0 %8467, %v3677_v52   ;;  %7850 = vmatmul.mubr.msk.bf16.vlgmr.msra.gmra.mrb[0].mxu1 %vm6802_vm0, %v6803_v2  ;;  %v3681_v6 = vsel %vm3649_vm2, 1, %v11922_v37  ;;  %vm4183_vm6 = vcmp.ne.f32.partialorder %v9906_v43, 0.0 }
 0x143   : > { %v764_v46 = vmax.f32 %v732_v62, 0.0  ;;  %v733_v2 = vadd.f32 %v9501_v40, %v694_v42  ;;  %7866 = vmatpush3.bf16.msra.mxu1 %v8557_v28  ;;  %7710 = vmatmul.mubr.msk.bf16.gmra.mrb[52].mxu0 %vm6544_vm3, %v6545_v35  ;;  %vm2673_vm7 = vcmp.eq.s32.totalorder %v9784_v23, 1  ;;  %v7035_v42 = vld [vmem:[%s11856_s1 + $0x620] sm:$0xff]  ;;  %vm2674_vm15 = vcmp.eq.s32.totalorder %v9771_v36, 1  ;;  %vm6550_vm3 = vmpackc.low %vm1376_vm11, %vm1375_vm12 }
 0x144   : > { %798 = vst [vmem:[#allocation2 + $0xe0] sm:$0xff] %v766_v11  ;;  %v11896_v41 = vmax.f32 %v9914_v5, 0.0  ;;  %v9934_v52 = vpop.permute.xlu1 %2647  ;;  %7867 = vmatprep.subr.bf16.mxu1 %v8496_v54  ;;  %v9936_v58 = vld [vmem:[#allocation2 + $0xaf] sm:$0xff]  ;;  %vm6805_vm0 = vmpackc.low %vm2673_vm7, %vm2672_vm14  ;;  %vm4185_vm2 = vcmp.ne.f32.partialorder %v7035_v42, 0.0  ;;  %vm1378_vm5 = vcmp.eq.s32.totalorder %v9513_v9, 1  ;;  %vm1029_vm7 = vcmp.eq.s32.totalorder %v9117_v18, 1 }
 0x145   : > { %796 = vst [vmem:[#allocation2 + $0xd0] sm:$0xff] %v764_v46  ;;  %v765_v35 = vmax.f32 %v733_v2, 0.0  ;;  %v9948_v63 = vpop.permute.xlu0 %2644  ;;  %v7671_v0 = vpop.f32.mrb[28].mxu0  ;;  %3773 = vperm.xlu1 %8468, %v3680_v16   ;;  %v6548_v34 = vpack.c.bf16 %v764_v46, %v11936_v8  ;;  %vm6808_vm1 = vmpackc.low %vm2675_vm13, %vm2674_vm15  ;;  %v7036_v42 = vld [vmem:[%s11856_s1 + $0x628] sm:$0xff]  ;;  %vm1380_vm11 = vcmp.eq.s32.totalorder %v9531_v60, 1  ;;  %vm1379_vm12 = vcmp.eq.s32.totalorder %v9536_v57, 1 }
 0x146   : > { %v9950_v62 = vld [vmem:[#allocation2 + $0xc7] sm:$0xff]  ;;  %799 = vst [vmem:[#allocation2 + $0xe8] sm:$0xff] %v11896_v41  ;;  %v699_v33 = vmul.f32 %v7671_v0, %v9494_v59  ;;  %3770 = vperm.xlu0 %8467, %v3679_v30   ;;  %v647_v16 = vpop.f32.mrb[29].mxu0  ;;  %v9973_v56 = vld [vmem:[#allocation2 + $0xb7] sm:$0xff]  ;;  %v9975_v22 = vld [vmem:[#allocation2 + $0xbf] sm:$0xff]  ;;  %vm2679_vm13 = vcmp.eq.s32.totalorder %v9900_v26, 1 }
 0x147   : > { %797 = vst [vmem:[#allocation2 + $0xd8] sm:$0xff] %v765_v35  ;;  %v697_v46 = vmul.f32 %v9494_v59, %v647_v16  ;;  %v7672_v28 = vpop.f32.mrb[30].mxu0  ;;  %7868 = vmatpush3.bf16.msra.mxu1 %v8496_v54  ;;  %v6806_v8 = vpack.c.bf16 %v9973_v56, %v9936_v58  ;;  %v6809_v41 = vpack.c.bf16 %v9950_v62, %v9975_v22  ;;  %v7034_v30 = vld [vmem:[%s11856_s1 + $0x618] sm:$0xff]  ;;  %vm4187_vm14 = vcmp.ne.f32.partialorder %v7037_v48, 0.0  ;;  %vm10063_vm15 = vmpackc.low %vm1029_vm7, %vm1028_vm9  ;;  %v8506_v26 = vld [vmem:[%s11860_s5 + $0x130] sm:$0xff]  }
 0x148   : > { %7713 = vmatprep.mubr.msk.bf16.mxu0 %vm9963_vm10, %v6548_v34  ;;  %v9992_v19 = vadd.f32 %v9501_v40, %v699_v33  ;;  %v700_v54 = vmul.f32 %v7672_v28, %v9494_v59  ;;  %v650_v0 = vpop.f32.mrb[31].mxu0  ;;  %v9995_v16 = vpop.permute.xlu1 %3120  ;;  %7869 = vmatprep.subr.bf16.mxu1 %v8498_v51  ;;  %v8500_v34 = vld [vmem:[%s11860_s5 + $0x118] sm:$0xff]   ;;  %v6551_v2 = vpack.c.bf16 %v766_v11, %v765_v35  ;;  %v4215_v28 = vsel %vm4183_vm6, 1, %v11922_v37  ;;  %v2990_v57 = vld [vmem:[#allocation2 + $0x10] sm:$0xff] }
 0x149   : > { %v736_v36 = vadd.f32 %v9501_v40, %v697_v46  ;;  %v698_v23 = vmul.f32 %v9494_v59, %v650_v0  ;;  %v10004_v33 = vpop.permute.xlu0 %2650  ;;  %7853 = vmatprep.mubr.msk.bf16.mxu1 %vm6805_vm0, %v6806_v8  ;;  %4246 = vperm.xlu1 %8468, %v4213_v4   ;;  %v4214_v59 = vsel %vm4182_vm8, 1, %v11922_v37  ;;  %vm4184_vm4 = vcmp.ne.f32.partialorder %v7034_v30, 0.0  ;;  %v2991_v60 = vld [vmem:[#allocation2 + $0x18] sm:$0xff] }
 0x14a   : > { %v770_v15 = vmax.f32 %v9992_v19, 0.0  ;;  %v739_v11 = vadd.f32 %v9501_v40, %v700_v54  ;;  %3776 = vperm.xlu0 %8467, %v3681_v6   ;;  %7854 = vmatmul.mubr.msk.bf16.gmra.mrb[4].mxu1 %vm6808_vm1, %v6809_v41  ;;  %vm1377_vm6 = vcmp.eq.s32.totalorder %v9517_v3, 1  ;;  %v4217_v6 = vsel %vm4185_vm2, 1, %v11922_v37 }
 0x14b   : > { %v768_v43 = vmax.f32 %v736_v36, 0.0  ;;  %v737_v47 = vadd.f32 %v9501_v40, %v698_v23  ;;  %7870 = vmatpush3.bf16.msra.mxu1 %v8498_v51  ;;  %7714 = vmatmul.mubr.msk.bf16.gmra.mrb[56].mxu0 %vm6550_vm3, %v6551_v2  ;;  %v8502_v40 = vld [vmem:[%s11860_s5 + $0x120] sm:$0xff]   ;;  %vm2677_vm8 = vcmp.eq.s32.totalorder %v9855_v50, 1  ;;  %v4216_v8 = vsel %vm4184_vm4, 1, %v11922_v37  ;;  %v805_v2 = vld [vmem:[#allocation2 + $0xf] sm:$0xff]  ;;  %vm6553_vm10 = vmpackc.low %vm1378_vm5, %vm1377_vm6 }
 0x14c   : > { %802 = vst [vmem:[#allocation2 + $0x100] sm:$0xff] %v770_v15  ;;  %v771_v41 = vmax.f32 %v739_v11, 0.0  ;;  %v10025_v45 = vpop.permute.xlu1 %3126  ;;  %7871 = vmatprep.subr.bf16.mxu1 %v8500_v34  ;;  %v10027_v4 = vld [vmem:[#allocation2 + $0xcf] sm:$0xff]  ;;  %v10034_v51 = vld [vmem:[#allocation2 + $0x7] sm:$0xff]  ;;  %v11939_v54 = vmax.f32 %v9914_v5, 0.0  ;;  %vm2676_vm0 = vcmp.eq.s32.totalorder %v9807_v1, 1  ;;  %vm6556_vm6 = vmpackc.low %vm1380_vm11, %vm1379_vm12 }
 0x14d   : > { %800 = vst [vmem:[#allocation2 + $0xf0] sm:$0xff] %v768_v43  ;;  %v769_v35 = vmax.f32 %v737_v47, 0.0  ;;  %v10037_v46 = vpop.permute.xlu0 %3123  ;;  %4252 = vperm.xlu1 %8468, %v4215_v28   ;;  %v10041_v19 = vld [vmem:[#allocation2 + $0xe7] sm:$0xff]  ;;  %vm1031_vm9 = vcmp.eq.s32.totalorder %v9115_v17, 1  ;;  %vm2678_vm1 = vcmp.eq.s32.totalorder %v9841_v7, 1  ;;  %vm6811_vm2 = vmpackc.low %vm2677_vm8, %vm2676_vm0  ;;  %vm4186_vm3 = vcmp.ne.f32.partialorder %v7036_v42, 0.0 }
 0x14e   : > { %v6554_v0 = vpack.c.bf16 %v768_v43, %v11939_v54  ;;  %803 = vst [vmem:[#allocation2 + $0x108] sm:$0xff] %v771_v41  ;;  %4249 = vperm.xlu0 %8467, %v4214_v59   ;;  %v10055_v30 = vld [vmem:[#allocation2 + $0xd7] sm:$0xff]  ;;  %v10057_v36 = vld [vmem:[#allocation2 + $0xdf] sm:$0xff]  ;;  %v8504_v1 = vld [vmem:[%s11860_s5 + $0x128] sm:$0xff]   ;;  %v6568_v28 = vpack.c.bf16 %v805_v2, %v10034_v51  ;;  %vm1030_vm5 = vcmp.eq.s32.totalorder %v9106_v12, 1  ;;  %v4219_v50 = vsel %vm4187_vm14, 1, %v11922_v37 }
 0x14f   : > { %801 = vst [vmem:[#allocation2 + $0xf8] sm:$0xff] %v769_v35  ;;  %7872 = vmatpush3.bf16.msra.mxu1 %v8500_v34  ;;  %v6812_v3 = vpack.c.bf16 %v10055_v30, %v10027_v4  ;;  %v6815_v5 = vpack.c.bf16 %v10041_v19, %v10057_v36  ;;  %v6557_v23 = vpack.c.bf16 %v770_v15, %v769_v35  ;;  %v7038_v34 = vld [vmem:[%s11856_s1 + $0x638] sm:$0xff]  ;;  %vm6814_vm4 = vmpackc.low %vm2679_vm13, %vm2678_vm1  ;;  %vm4189_vm7 = vcmp.ne.f32.partialorder %v7039_v13, 0.0  ;;  %v7041_v11 = vld [vmem:[%s11856_s1 + $0x650] sm:$0xff] }
 0x150   : > { %7717 = vmatprep.mubr.msk.bf16.mxu0 %vm6553_vm10, %v6554_v0  ;;  %v10079_v18 = vpop.permute.xlu1 %3132  ;;  %7873 = vmatprep.subr.bf16.mxu1 %v8502_v40  ;;  %vm10104_vm8 = vmpackc.low %vm1031_vm9, %vm1030_vm5  ;;  %v4218_v12 = vsel %vm4186_vm3, 1, %v11922_v37  ;;  %vm4188_vm10 = vcmp.ne.f32.partialorder %v7038_v34, 0.0  ;;  %vm1033_vm11 = vcmp.eq.s32.totalorder %v9130_v24, 1  ;;  %vm1032_vm12 = vcmp.eq.s32.totalorder %v9132_v25, 1  ;;  %v7040_v43 = vld [vmem:[%s11856_s1 + $0x648] sm:$0xff]  ;;  %v807_v51 = vld [vmem:[#allocation2 + $0x1f] sm:$0xff] }
 0x151   : > { %v10090_v7 = vpop.permute.xlu0 %3129  ;;  %7857 = vmatprep.mubr.msk.bf16.mxu1 %vm6811_vm2, %v6812_v3  ;;  %4258 = vperm.xlu1 %8468, %v4217_v6   ;;  %v10124_v47 = vld [vmem:[#allocation2 + $0x27] sm:$0xff]  ;;  %vm2681_vm13 = vcmp.eq.s32.totalorder %v9948_v63, 1  ;;  %v4221_v41 = vsel %vm4189_vm7, 1, %v11922_v37  ;;  %vm2683_vm14 = vcmp.eq.s32.totalorder %v10004_v33, 1  ;;  %v6880_v54 = vpack.c.bf16 %v2991_v60, %v2990_v57  ;;  %v809_v0 = vld [vmem:[#allocation2 + $0x2f] sm:$0xff]  ;;  %vm10142_vm0 = vmpackc.low %vm1033_vm11, %vm1032_vm12 }
 0x152   : > { %4255 = vperm.xlu0 %8467, %v4216_v8   ;;  %7858 = vmatmul.mubr.msk.bf16.gmra.mrb[8].mxu1 %vm6814_vm4, %v6815_v5  ;;  %v4220_v8 = vsel %vm4188_vm10, 1, %v11922_v37  ;;  %vm2680_vm9 = vcmp.eq.s32.totalorder %v9889_v27, 1  ;;  %vm3216_vm1 = vcmp.eq.s32.totalorder %v10037_v46, 1  ;;  %vm2682_vm2 = vcmp.eq.s32.totalorder %v9934_v52, 1  ;;  %v8508_v25 = vld [vmem:[%s11860_s5 + $0x138] sm:$0xff]   ;;  %v7043_v5 = vld [vmem:[%s11856_s1 + $0x660] sm:$0xff] }
 0x153   : > { %7874 = vmatpush3.bf16.msra.mxu1 %v8502_v40  ;;  %7718 = vmatmul.mubr.msk.bf16.gmra.mrb[60].mxu0 %vm6556_vm6, %v6557_v23  ;;  %v806_v40 = vld [vmem:[#allocation2 + $0x17] sm:$0xff]  ;;  %vm6817_vm3 = vmpackc.low %vm2681_vm13, %vm2680_vm9  ;;  %vm4190_vm4 = vcmp.ne.f32.partialorder %v7040_v43, 0.0  ;;  %vm3215_vm5 = vcmp.eq.s32.totalorder %v9995_v16, 1  ;;  %v6574_v23 = vpack.c.bf16 %v809_v0, %v10124_v47  ;;  %vm4193_vm10 = vcmp.ne.f32.partialorder %v7043_v5, 0.0  ;;  %v7044_v46 = vld [vmem:[%s11856_s1 + $0x668] sm:$0xff] }
 0x154   : > { %v10115_v17 = vpop.permute.xlu1 %3138  ;;  %7875 = vmatprep.subr.bf16.mxu1 %v8504_v1  ;;  %v10117_v59 = vld [vmem:[#allocation2 + $0xef] sm:$0xff]  ;;  %7737 = vmatprep.mubr.msk.bf16.mxu0 %vm10063_vm15, %v6568_v28  ;;  %vm4191_vm15 = vcmp.ne.f32.partialorder %v7041_v11, 0.0  ;;  %v6571_v27 = vpack.c.bf16 %v807_v51, %v806_v40  ;;  %vm6820_vm6 = vmpackc.low %vm2683_vm14, %vm2682_vm2  ;;  %v7042_v63 = vld [vmem:[%s11856_s1 + $0x658] sm:$0xff]  ;;  %v4222_v13 = vsel %vm4190_vm4, 1, %v11922_v37  ;;  %vm1035_vm11 = vcmp.eq.s32.totalorder %v9145_v31, 1 }
 0x155   : > { %v10127_v48 = vpop.permute.xlu0 %3135  ;;  %4264 = vperm.xlu1 %8468, %v4219_v50   ;;  %v2458_v6 = vld [vmem:[#allocation2 + $0x107] sm:$0xff]  ;;  %vm6879_vm7 = vmpackc.low %vm3216_vm1, %vm3215_vm5  ;;  %v4223_v16 = vsel %vm4191_vm15, 1, %v11922_v37  ;;  %v7045_v33 = vld [vmem:[%s11856_s1 + $0x670] sm:$0xff]  ;;  %vm1034_vm12 = vcmp.eq.s32.totalorder %v9147_v32, 1  ;;  %vm4192_vm13 = vcmp.ne.f32.partialorder %v7042_v63, 0.0  ;;  %vm1037_vm14 = vcmp.eq.s32.totalorder %v9160_v38, 1 }
 0x156   : > { %4261 = vperm.xlu0 %8467, %v4218_v12   ;;  %v10132_v35 = vld [vmem:[#allocation2 + $0xf7] sm:$0xff]  ;;  %v10136_v42 = vld [vmem:[#allocation2 + $0xff] sm:$0xff]  ;;  %v10189_v34 = vld [vmem:[%s11860_s5 + $0x88] sm:$0xff]   ;;  %vm1036_vm15 = vcmp.eq.s32.totalorder %v9162_v39, 1  ;;  %vm3218_vm9 = vcmp.eq.s32.totalorder %v10090_v7, 1  ;;  %v4225_v15 = vsel %vm4193_vm10, 1, %v11922_v37 }
 0x157   : > { %7876 = vmatpush3.bf16.msra.mxu1 %v8504_v1  ;;  %v6818_v9 = vpack.c.bf16 %v10132_v35, %v10117_v59  ;;  %v6821_v3 = vpack.c.bf16 %v2458_v6, %v10136_v42  ;;  %v8510_v1 = vld [vmem:[%s11860_s5 + $0x140] sm:$0xff]   ;;  %v2995_v12 = vld [vmem:[#allocation2 + $0x38] sm:$0xff]  ;;  %v2993_v60 = vld [vmem:[#allocation2 + $0x28] sm:$0xff]  ;;  %v4224_v40 = vsel %vm4192_vm13, 1, %v11922_v37  ;;  %vm4195_vm1 = vcmp.ne.f32.partialorder %v7045_v33, 0.0 }
 0x158   : > { %v10154_v24 = vpop.permute.xlu1 %3144  ;;  %7877 = vmatprep.subr.bf16.mxu1 %v8506_v26  ;;  %v2992_v50 = vld [vmem:[#allocation2 + $0x20] sm:$0xff]  ;;  %v810_v11 = vld [vmem:[#allocation2 + $0x37] sm:$0xff]  ;;  %vm10223_vm2 = vmpackc.low %vm1037_vm14, %vm1036_vm15  ;;  %vm4194_vm4 = vcmp.ne.f32.partialorder %v7044_v46, 0.0  ;;  %vm3219_vm5 = vcmp.eq.s32.totalorder %v10079_v18, 1  ;;  %v4227_v2 = vsel %vm4195_vm1, 1, %v11922_v37 }
 0x159   : > { %v10165_v52 = vpop.permute.xlu0 %3141  ;;  %7861 = vmatprep.mubr.msk.bf16.mxu1 %vm6817_vm3, %v6818_v9  ;;  %4270 = vperm.xlu1 %8468, %v4221_v41   ;;  %v811_v43 = vld [vmem:[#allocation2 + $0x3f] sm:$0xff]  ;;  %v812_v47 = vld [vmem:[#allocation2 + $0x47] sm:$0xff]  ;;  %v813_v41 = vld [vmem:[#allocation2 + $0x4f] sm:$0xff]  ;;  %vm3217_vm3 = vcmp.eq.s32.totalorder %v10025_v45, 1  ;;  %v4226_v7 = vsel %vm4194_vm4, 1, %v11922_v37 }
 0x15a   : > { %4267 = vperm.xlu0 %8467, %v4220_v8   ;;  %7862 = vmatmul.mubr.msk.bf16.gmra.mrb[12].mxu1 %vm6820_vm6, %v6821_v3  ;;  %v6577_v8 = vpack.c.bf16 %v811_v43, %v810_v11  ;;  %v8512_v38 = vld [vmem:[%s11860_s5 + $0x148] sm:$0xff]   ;;  %vm6882_vm6 = vmpackc.low %vm3218_vm9, %vm3217_vm3  ;;  %v7046_v45 = vld [vmem:[%s11856_s1 + $0x678] sm:$0xff]  ;;  %v6580_v0 = vpack.c.bf16 %v813_v41, %v812_v47  ;;  %vm3222_vm9 = vcmp.eq.s32.totalorder %v10165_v52, 1  ;;  %vm3221_vm3 = vcmp.eq.s32.totalorder %v10115_v17, 1 }
 0x15b   : > { %7878 = vmatpush3.bf16.msra.mxu1 %v8506_v26  ;;  %7881 = vmatprep.mubr.msk.bf16.mxu1 %vm6879_vm7, %v6880_v54  ;;  %v2994_v26 = vld [vmem:[#allocation2 + $0x30] sm:$0xff]  ;;  %v7047_v54 = vld [vmem:[%s11856_s1 + $0x680] sm:$0xff]  ;;  %v7048_v9 = vld [vmem:[%s11856_s1 + $0x688] sm:$0xff]  ;;  %vm4196_vm13 = vcmp.ne.f32.partialorder %v7046_v45, 0.0 }
 0x15c   : > { %v10193_v28 = vpop.permute.xlu1 %3150  ;;  %7879 = vmatprep.subr.bf16.mxu1 %v8508_v25  ;;  %7738 = vmatmul.mubr.msk.bf16.vlgmr.msra.gmra.mrb[32].mxu0 %vm10104_vm8, %v6571_v27  ;;  %vm10211_vm8 = vmpackc.low %vm1035_vm11, %vm1034_vm12  ;;  %v6886_v51 = vpack.c.bf16 %v2995_v12, %v2994_v26  ;;  %v7049_v18 = vld [vmem:[%s11856_s1 + $0x690] sm:$0xff]  ;;  %vm4197_vm10 = vcmp.ne.f32.partialorder %v7047_v54, 0.0  ;;  %v11951_v27 = vld [vmem:[#allocation8_spill] sm:$0xff]  ;;  %vm4198_vm4 = vcmp.ne.f32.partialorder %v7048_v9, 0.0 }
 0x15d   : > { %v10199_v57 = vpop.permute.xlu0 %3147  ;;  %4276 = vperm.xlu1 %8468, %v4223_v16   ;;  %7741 = vmatprep.mubr.msk.bf16.mxu0 %vm10142_vm0, %v6574_v23  ;;  %vm3220_vm0 = vcmp.eq.s32.totalorder %v10127_v48, 1  ;;  %v8513_v48 = vld [vmem:[%s11860_s5 + $0x90] sm:$0xff]   ;;  %vm1038_vm12 = vcmp.eq.s32.totalorder %v11951_v27, 1  ;;  %v2996_v63 = vld [vmem:[#allocation2 + $0x40] sm:$0xff]  ;;  %v2999_v16 = vld [vmem:[#allocation2 + $0x58] sm:$0xff]  ;;  %v4229_v12 = vsel %vm4197_vm10, 1, %v11922_v37 }
 0x15e   : > { %4273 = vperm.xlu0 %8467, %v4222_v13   ;;  %7770 = vmatpush3.bf16.msra.mxu0 %v9782_v10  ;;  %v6883_v10 = vpack.c.bf16 %v2993_v60, %v2992_v50  ;;  %vm6885_vm7 = vmpackc.low %vm3220_vm0, %vm3219_vm5  ;;  %v10262_v3 = vld [vmem:[%s11860_s5 + $0x150] sm:$0xff]   ;;  %v11953_v13 = vld [vmem:[#allocation10_spill] sm:$0xff]  ;;  %vm3224_vm0 = vcmp.eq.s32.totalorder %v10199_v57, 1  ;;  %vm4199_vm1 = vcmp.ne.f32.partialorder %v7049_v18, 0.0  ;;  %vm3223_vm5 = vcmp.eq.s32.totalorder %v10154_v24, 1 }
 0x15f   : > { %7880 = vmatpush3.bf16.msra.mxu1 %v8508_v25  ;;  %7771 = vmatprep.subr.bf16.mxu0 %v10189_v34  ;;  %v11950_v25 = vld [vmem:[#allocation7_spill] sm:$0xff]  ;;  %v2998_v23 = vld [vmem:[#allocation2 + $0x50] sm:$0xff]  ;;  %vm1040_vm15 = vcmp.eq.s32.totalorder %v11953_v13, 1  ;;  %v7050_v17 = vld [vmem:[%s11856_s1 + $0x698] sm:$0xff]  ;;  %v4230_v54 = vsel %vm4198_vm4, 1, %v11922_v37 }
 0x160   : > { %v10228_v32 = vpop.permute.xlu1 %3156  ;;  %7913 = vmatprep.subr.bf16.mxu1 %v8510_v1  ;;  %vm1039_vm11 = vcmp.eq.s32.totalorder %v11950_v25, 1  ;;  %v11952_v33 = vld [vmem:[#allocation9_spill] sm:$0xff]  ;;  %v815_v26 = vld [vmem:[#allocation2 + $0x5f] sm:$0xff]  ;;  %v816_v60 = vld [vmem:[#allocation2 + $0x67] sm:$0xff]  ;;  %v6892_v47 = vpack.c.bf16 %v2999_v16, %v2998_v23 }
 0x161   : > { %v10239_v39 = vpop.permute.xlu0 %3153  ;;  %4282 = vperm.xlu1 %8468, %v4225_v15   ;;  %vm1041_vm14 = vcmp.eq.s32.totalorder %v11952_v33, 1  ;;  %v814_v50 = vld [vmem:[#allocation2 + $0x57] sm:$0xff]  ;;  %v817_v11 = vld [vmem:[#allocation2 + $0x6f] sm:$0xff]  ;;  %v4228_v15 = vsel %vm4196_vm13, 1, %v11922_v37  ;;  %v8517_v45 = vld [vmem:[%s11860_s5 + $0xa0] sm:$0xff]   ;;  %vm4200_vm13 = vcmp.ne.f32.partialorder %v7050_v17, 0.0 }
 0x162   : > { %4279 = vperm.xlu0 %8467, %v4224_v40   ;;  %7882 = vmatmul.mubr.msk.bf16.vlgmr.msra.gmra.mrb[16].mxu1 %vm6882_vm6, %v6883_v10  ;;  %v6583_v40 = vpack.c.bf16 %v815_v26, %v814_v50  ;;  %vm6888_vm6 = vmpackc.low %vm3222_vm9, %vm3221_vm3  ;;  %v6586_v10 = vpack.c.bf16 %v817_v11, %v816_v60  ;;  %v7053_v24 = vld [vmem:[%s11856_s1 + $0x6b0] sm:$0xff]  ;;  %v8515_v52 = vld [vmem:[%s11860_s5 + $0x98] sm:$0xff]   ;;  %vm3226_vm9 = vcmp.eq.s32.totalorder %v10239_v39, 1  ;;  %v4232_v26 = vsel %vm4200_vm13, 1, %v11922_v37 }
 0x163   : > { %7885 = vmatprep.mubr.msk.bf16.mxu1 %vm6885_vm7, %v6886_v51  ;;  %7914 = vmatpush3.bf16.msra.mxu1 %v8510_v1  ;;  %v2997_v1 = vld [vmem:[#allocation2 + $0x48] sm:$0xff]  ;;  %v7051_v51 = vld [vmem:[%s11856_s1 + $0x6a0] sm:$0xff]  ;;  %vm6891_vm7 = vmpackc.low %vm3224_vm0, %vm3223_vm5  ;;  %vm3225_vm3 = vcmp.eq.s32.totalorder %v10193_v28, 1  ;;  %vm3227_vm5 = vcmp.eq.s32.totalorder %v10228_v32, 1 }
 0x164   : > { %v10266_v5 = vpop.permute.xlu1 %3162  ;;  %7742 = vmatmul.mubr.msk.bf16.gmra.mrb[36].mxu0 %vm10211_vm8, %v6577_v8  ;;  %7915 = vmatprep.subr.bf16.mxu1 %v8512_v38  ;;  %vm10284_vm8 = vmpackc.low %vm1039_vm11, %vm1038_vm12  ;;  %v6889_v6 = vpack.c.bf16 %v2997_v1, %v2996_v63  ;;  %v4231_v8 = vsel %vm4199_vm1, 1, %v11922_v37  ;;  %vm4201_vm10 = vcmp.ne.f32.partialorder %v7051_v51, 0.0  ;;  %v7052_v57 = vld [vmem:[%s11856_s1 + $0x6a8] sm:$0xff]  ;;  %v3000_v9 = vld [vmem:[#allocation2 + $0x60] sm:$0xff]  ;;  %vm4203_vm1 = vcmp.ne.f32.partialorder %v7053_v24, 0.0 }
 0x165   : > { %v10272_v46 = vpop.permute.xlu0 %3159  ;;  %4288 = vperm.xlu1 %8468, %v4227_v2   ;;  %7745 = vmatprep.mubr.msk.bf16.mxu0 %vm10223_vm2, %v6580_v0  ;;  %vm10295_vm2 = vmpackc.low %vm1041_vm14, %vm1040_vm15  ;;  %v8518_v0 = vld [vmem:[%s11860_s5 + $0x160] sm:$0xff]   ;;  %v11959_v18 = vld [vmem:[#allocation12_spill] sm:$0xff]  ;;  %v4233_v1 = vsel %vm4201_vm10, 1, %v11922_v37  ;;  %vm4202_vm4 = vcmp.ne.f32.partialorder %v7052_v57, 0.0  ;;  %v4235_v32 = vsel %vm4203_vm1, 1, %v11922_v37 }
 0x166   : > { %4285 = vperm.xlu0 %8467, %v4226_v7   ;;  %7772 = vmatpush3.bf16.msra.mxu0 %v10189_v34  ;;  %v11958_v2 = vld [vmem:[#allocation11_spill] sm:$0xff]  ;;  %vm1042_vm12 = vcmp.eq.s32.totalorder %v11959_v18, 1  ;;  %v3003_v25 = vld [vmem:[#allocation2 + $0x78] sm:$0xff]  ;;  %v11960_v27 = vld [vmem:[#allocation13_spill] sm:$0xff]  ;;  %vm3228_vm0 = vcmp.eq.s32.totalorder %v10272_v46, 1 }
 0x167   : > { %7916 = vmatpush3.bf16.msra.mxu1 %v8512_v38  ;;  %7773 = vmatprep.subr.bf16.mxu0 %v8513_v48  ;;  %v8516_v38 = vld [vmem:[%s11860_s5 + $0x158] sm:$0xff]   ;;  %vm1043_vm11 = vcmp.eq.s32.totalorder %v11958_v2, 1  ;;  %vm1045_vm14 = vcmp.eq.s32.totalorder %v11960_v27, 1  ;;  %v3001_v16 = vld [vmem:[#allocation2 + $0x68] sm:$0xff]  ;;  %v8521_v24 = vld [vmem:[%s11860_s5 + $0xb0] sm:$0xff]  }
 0x168   : > { %v10300_v41 = vpop.permute.xlu1 %3168  ;;  %7917 = vmatprep.subr.bf16.mxu1 %v10262_v3  ;;  %v11961_v63 = vld [vmem:[#allocation14_spill] sm:$0xff]  ;;  %v6895_v43 = vpack.c.bf16 %v3001_v16, %v3000_v9  ;;  %v8519_v39 = vld [vmem:[%s11860_s5 + $0xa8] sm:$0xff]   ;;  %v11968_v2 = vld [vmem:[#allocation17_spill] sm:$0xff] }
 0x169   : > { %v10309_v31 = vpop.permute.xlu0 %3165  ;;  %4294 = vperm.xlu1 %8468, %v4229_v12   ;;  %vm1044_vm15 = vcmp.eq.s32.totalorder %v11961_v63, 1  ;;  %v818_v33 = vld [vmem:[#allocation2 + $0x77] sm:$0xff]  ;;  %v819_v13 = vld [vmem:[#allocation2 + $0x7f] sm:$0xff]  ;;  %v7056_v46 = vld [vmem:[%s11856_s1 + $0x6c8] sm:$0xff] }
 0x16a   : > { %4291 = vperm.xlu0 %8467, %v4228_v15   ;;  %7886 = vmatmul.mubr.msk.bf16.gmra.mrb[20].mxu1 %vm6888_vm6, %v6889_v6  ;;  %v6589_v15 = vpack.c.bf16 %v819_v13, %v818_v33  ;;  %vm6894_vm6 = vmpackc.low %vm3226_vm9, %vm3225_vm3  ;;  %v7054_v28 = vld [vmem:[%s11856_s1 + $0x6b8] sm:$0xff]  ;;  %v8520_v51 = vld [vmem:[%s11860_s5 + $0x168] sm:$0xff]   ;;  %vm3230_vm9 = vcmp.eq.s32.totalorder %v10309_v31, 1  ;;  %vm4206_vm3 = vcmp.ne.f32.partialorder %v7056_v46, 0.0  ;;  %v6595_v33 = vpack.c.bf16 %v9877_v49, %v9874_v21 }
 0x16b   : > { %7889 = vmatprep.mubr.msk.bf16.mxu1 %vm6891_vm7, %v6892_v47  ;;  %7774 = vmatpush3.bf16.msra.mxu0 %v8513_v48  ;;  %v3002_v48 = vld [vmem:[#allocation2 + $0x70] sm:$0xff]  ;;  %v7055_v47 = vld [vmem:[%s11856_s1 + $0x6c0] sm:$0xff]  ;;  %vm6897_vm7 = vmpackc.low %vm3228_vm0, %vm3227_vm5  ;;  %v6598_v21 = vpack.c.bf16 %v9936_v58, %v9858_v61  ;;  %v4238_v61 = vsel %vm4206_vm3, 1, %v11922_v37 }
 0x16c   : > { %v10340_v7 = vpop.permute.xlu1 %3174  ;;  %7746 = vmatmul.mubr.msk.bf16.gmra.mrb[40].mxu0 %vm10284_vm8, %v6583_v40  ;;  %7918 = vmatpush3.bf16.msra.mxu1 %v10262_v3  ;;  %v820_v3 = vld [vmem:[#allocation2 + $0x87] sm:$0xff]  ;;  %vm10358_vm8 = vmpackc.low %vm1043_vm11, %vm1042_vm12  ;;  %v6898_v12 = vpack.c.bf16 %v3003_v25, %v3002_v48  ;;  %v4234_v40 = vsel %vm4202_vm4, 1, %v11922_v37  ;;  %vm4205_vm10 = vcmp.ne.f32.partialorder %v7055_v47, 0.0  ;;  %vm4204_vm11 = vcmp.ne.f32.partialorder %v7054_v28, 0.0  ;;  %v11969_v18 = vld [vmem:[#allocation18_spill] sm:$0xff] }
 0x16d   : > { %v10347_v23 = vpop.permute.xlu0 %3171  ;;  %4300 = vperm.xlu1 %8468, %v4231_v8   ;;  %7749 = vmatprep.mubr.msk.bf16.mxu0 %vm10295_vm2, %v6586_v10  ;;  %vm10369_vm2 = vmpackc.low %vm1045_vm14, %vm1044_vm15  ;;  %v6592_v6 = vpack.c.bf16 %v9843_v53, %v820_v3  ;;  %v7057_v53 = vld [vmem:[%s11856_s1 + $0x6d0] sm:$0xff]  ;;  %v3007_v8 = vld [vmem:[#allocation2 + $0x98] sm:$0xff]  ;;  %vm1049_vm14 = vcmp.eq.s32.totalorder %v11968_v2, 1  ;;  %vm1048_vm15 = vcmp.eq.s32.totalorder %v11969_v18, 1  ;;  %v4237_v9 = vsel %vm4205_vm10, 1, %v11922_v37 }
 0x16e   : > { %4297 = vperm.xlu0 %8467, %v4230_v54   ;;  %7775 = vmatprep.subr.bf16.mxu0 %v8515_v52  ;;  %v3006_v10 = vld [vmem:[#allocation2 + $0x90] sm:$0xff]  ;;  %v11967_v54 = vld [vmem:[#allocation16_spill] sm:$0xff]  ;;  %v4236_v48 = vsel %vm4204_vm11, 1, %v11922_v37  ;;  %vm4207_vm0 = vcmp.ne.f32.partialorder %v7057_v53, 0.0  ;;  %v7059_v13 = vld [vmem:[%s11856_s1 + $0x6e0] sm:$0xff]  ;;  %vm3231_vm4 = vcmp.eq.s32.totalorder %v10300_v41, 1 }
 0x16f   : > { %7776 = vmatpush3.bf16.msra.mxu0 %v8515_v52  ;;  %7919 = vmatprep.subr.bf16.mxu1 %v8516_v38  ;;  %v11966_v52 = vld [vmem:[#allocation15_spill] sm:$0xff]  ;;  %vm1046_vm13 = vcmp.eq.s32.totalorder %v11967_v54, 1  ;;  %v6904_v25 = vpack.c.bf16 %v3007_v8, %v3006_v10  ;;  %v4239_v49 = vsel %vm4207_vm0, 1, %v11922_v37  ;;  %v8523_v41 = vld [vmem:[%s11860_s5 + $0xb8] sm:$0xff]   ;;  %vm4209_vm10 = vcmp.ne.f32.partialorder %v7059_v13, 0.0  ;;  %v7061_v58 = vld [vmem:[%s11856_s1 + $0x6f0] sm:$0xff] }
 0x170   : > { %v10374_v11 = vpop.permute.xlu1 %3180  ;;  %7920 = vmatpush3.bf16.msra.mxu1 %v8516_v38  ;;  %7777 = vmatprep.subr.bf16.mxu0 %v8517_v45  ;;  %vm1047_vm12 = vcmp.eq.s32.totalorder %v11966_v52, 1  ;;  %v3004_v38 = vld [vmem:[#allocation2 + $0x80] sm:$0xff]  ;;  %v3010_v50 = vld [vmem:[#allocation2 + $0xb0] sm:$0xff]  ;;  %v3009_v28 = vld [vmem:[#allocation2 + $0xa8] sm:$0xff]  ;;  %vm4211_vm0 = vcmp.ne.f32.partialorder %v7061_v58, 0.0  ;;  %v6610_v58 = vpack.c.bf16 %v10117_v59, %v10041_v19 }
 0x171   : > { %v10382_v34 = vpop.permute.xlu0 %3177  ;;  %4306 = vperm.xlu1 %8468, %v4233_v1   ;;  %7921 = vmatprep.subr.bf16.mxu1 %v8518_v0  ;;  %vm10434_vm1 = vmpackc.low %vm1047_vm12, %vm1046_vm13  ;;  %v11974_v60 = vld [vmem:[#allocation19_spill] sm:$0xff]  ;;  %v11983_v27 = vld [vmem:[#allocation26_spill] sm:$0xff] }
 0x172   : > { %4303 = vperm.xlu0 %8467, %v4232_v26   ;;  %7890 = vmatmul.mubr.msk.bf16.gmra.mrb[24].mxu1 %vm6894_vm6, %v6895_v43  ;;  %v3011_v26 = vld [vmem:[#allocation2 + $0xb8] sm:$0xff]  ;;  %vm1051_vm12 = vcmp.eq.s32.totalorder %v11974_v60, 1  ;;  %v11975_v43 = vld [vmem:[#allocation20_spill] sm:$0xff]  ;;  %v3008_v47 = vld [vmem:[#allocation2 + $0xa0] sm:$0xff] }
 0x173   : > { %7893 = vmatprep.mubr.msk.bf16.mxu1 %vm6897_vm7, %v6898_v12  ;;  %7778 = vmatpush3.bf16.msra.mxu0 %v8517_v45  ;;  %v3005_v45 = vld [vmem:[#allocation2 + $0x88] sm:$0xff]  ;;  %vm10467_vm7 = vmpackc.low %vm1049_vm14, %vm1048_vm15  ;;  %vm1050_vm13 = vcmp.eq.s32.totalorder %v11975_v43, 1  ;;  %v6910_v46 = vpack.c.bf16 %v3011_v26, %v3010_v50  ;;  %v6907_v8 = vpack.c.bf16 %v3009_v28, %v3008_v47  ;;  %v7135_v52 = vld [vmem:[%s11856_s1 + $0x700] sm:$0xff] }
 0x174   : > { %v10406_v17 = vpop.permute.xlu1 %3186  ;;  %7750 = vmatmul.mubr.msk.bf16.gmra.mrb[44].mxu0 %vm10358_vm8, %v6589_v15  ;;  %7922 = vmatpush3.bf16.msra.mxu1 %v8518_v0  ;;  %v8522_v0 = vld [vmem:[%s11860_s5 + $0x170] sm:$0xff]   ;;  %vm3232_vm8 = vcmp.eq.s32.totalorder %v10347_v23, 1  ;;  %v6901_v16 = vpack.c.bf16 %v3005_v45, %v3004_v38  ;;  %v8524_v23 = vld [vmem:[%s11860_s5 + $0x178] sm:$0xff]   ;;  %v7060_v12 = vld [vmem:[%s11856_s1 + $0x6e8] sm:$0xff] }
 0x175   : > { %v10415_v57 = vpop.permute.xlu0 %3183  ;;  %4312 = vperm.xlu1 %8468, %v4235_v32   ;;  %7753 = vmatprep.mubr.msk.bf16.mxu0 %vm10369_vm2, %v6592_v6  ;;  %vm3229_vm2 = vcmp.eq.s32.totalorder %v10266_v5, 1  ;;  %v7058_v5 = vld [vmem:[%s11856_s1 + $0x6d8] sm:$0xff]  ;;  %vm6903_vm6 = vmpackc.low %vm3232_vm8, %vm3231_vm4  ;;  %v10495_v6 = vld [vmem:[%s11860_s5 + $0x180] sm:$0xff]   ;;  %vm4210_vm3 = vcmp.ne.f32.partialorder %v7060_v12, 0.0  ;;  %vm3235_vm4 = vcmp.eq.s32.totalorder %v10374_v11, 1  ;;  %v4243_v11 = vsel %vm4211_vm0, 1, %v11922_v37 }
 0x176   : > { %4309 = vperm.xlu0 %8467, %v4234_v40   ;;  %7779 = vmatprep.subr.bf16.mxu0 %v8519_v39  ;;  %vm6900_vm5 = vmpackc.low %vm3230_vm9, %vm3229_vm2  ;;  %vm4208_vm11 = vcmp.ne.f32.partialorder %v7058_v5, 0.0  ;;  %v11976_v32 = vld [vmem:[#allocation21_spill] sm:$0xff]  ;;  %vm3234_vm9 = vcmp.eq.s32.totalorder %v10382_v34, 1  ;;  %v4241_v40 = vsel %vm4209_vm10, 1, %v11922_v37  ;;  %vm3236_vm8 = vcmp.eq.s32.totalorder %v10415_v57, 1  ;;  %v10524_v54 = vld [vmem:[%s11860_s5 + $0xc0] sm:$0xff]  }
 0x177   : > { %7780 = vmatpush3.bf16.msra.mxu0 %v8519_v39  ;;  %7923 = vmatprep.subr.bf16.mxu1 %v8520_v51  ;;  %vm1053_vm14 = vcmp.eq.s32.totalorder %v11976_v32, 1  ;;  %v11977_v39 = vld [vmem:[#allocation22_spill] sm:$0xff]  ;;  %v4240_v53 = vsel %vm4208_vm11, 1, %v11922_v37  ;;  %vm3233_vm2 = vcmp.eq.s32.totalorder %v10340_v7, 1  ;;  %v4242_v34 = vsel %vm4210_vm3, 1, %v11922_v37  ;;  %v7137_v38 = vld [vmem:[%s11856_s1 + $0x710] sm:$0xff] }
 0x178   : > { %v10439_v63 = vpop.permute.xlu1 %3192  ;;  %7924 = vmatpush3.bf16.msra.mxu1 %v8520_v51  ;;  %7781 = vmatprep.subr.bf16.mxu0 %v8521_v24  ;;  %vm1052_vm15 = vcmp.eq.s32.totalorder %v11977_v39, 1  ;;  %vm4744_vm10 = vcmp.ne.f32.partialorder %v7135_v52, 0.0  ;;  %v3015_v57 = vld [vmem:[#allocation2 + $0xd8] sm:$0xff]  ;;  %v11980_v45 = vld [vmem:[#allocation23_spill] sm:$0xff]  ;;  %vm4746_vm0 = vcmp.ne.f32.partialorder %v7137_v38, 0.0  ;;  %v3018_v19 = vld [vmem:[#allocation2 + $0xf0] sm:$0xff] }
 0x179   : > { %v10449_v1 = vpop.permute.xlu0 %3189  ;;  %4318 = vperm.xlu1 %8468, %v4237_v9   ;;  %7925 = vmatprep.subr.bf16.mxu1 %v8522_v0  ;;  %v3012_v18 = vld [vmem:[#allocation2 + $0xc0] sm:$0xff]  ;;  %v3013_v9 = vld [vmem:[#allocation2 + $0xc8] sm:$0xff]  ;;  %v3019_v59 = vld [vmem:[#allocation2 + $0xf8] sm:$0xff] }
 0x17a   : > { %4315 = vperm.xlu0 %8467, %v4236_v48   ;;  %7894 = vmatmul.mubr.msk.bf16.gmra.mrb[28].mxu1 %vm6900_vm5, %v6901_v16  ;;  %vm6906_vm5 = vmpackc.low %vm3234_vm9, %vm3233_vm2  ;;  %v7136_v48 = vld [vmem:[%s11856_s1 + $0x708] sm:$0xff]  ;;  %vm3238_vm9 = vcmp.eq.s32.totalorder %v10449_v1, 1  ;;  %v4776_v16 = vsel %vm4744_vm10, 1, %v11922_v37  ;;  %vm3237_vm2 = vcmp.eq.s32.totalorder %v10406_v17, 1  ;;  %v7139_v31 = vld [vmem:[%s11856_s1 + $0x720] sm:$0xff]  ;;  %v6922_v28 = vpack.c.bf16 %v3019_v59, %v3018_v19 }
 0x17b   : > { %7897 = vmatprep.mubr.msk.bf16.mxu1 %vm6903_vm6, %v6904_v25  ;;  %7782 = vmatpush3.bf16.msra.mxu0 %v8521_v24  ;;  %v6601_v24 = vpack.c.bf16 %v9975_v22, %v9973_v56  ;;  %v7062_v56 = vld [vmem:[%s11856_s1 + $0x6f8] sm:$0xff]  ;;  %v6604_v22 = vpack.c.bf16 %v10027_v4, %v9950_v62  ;;  %vm6909_vm6 = vmpackc.low %vm3236_vm8, %vm3235_vm4  ;;  %v3014_v4 = vld [vmem:[#allocation2 + $0xd0] sm:$0xff]  ;;  %vm4745_vm3 = vcmp.ne.f32.partialorder %v7136_v48, 0.0  ;;  %vm3239_vm4 = vcmp.eq.s32.totalorder %v10439_v63, 1 }
 0x17c   : > { %v10479_v3 = vpop.permute.xlu1 %3198  ;;  %7754 = vmatmul.mubr.msk.bf16.gmra.mrb[48].mxu0 %vm10434_vm1, %v6595_v33  ;;  %7926 = vmatpush3.bf16.msra.mxu1 %v8522_v0  ;;  %vm10509_vm1 = vmpackc.low %vm1051_vm12, %vm1050_vm13  ;;  %vm4212_vm11 = vcmp.ne.f32.partialorder %v7062_v56, 0.0  ;;  %vm1055_vm12 = vcmp.eq.s32.totalorder %v11980_v45, 1  ;;  %v11981_v0 = vld [vmem:[#allocation24_spill] sm:$0xff]  ;;  %v11982_v25 = vld [vmem:[#allocation25_spill] sm:$0xff]  ;;  %v6916_v13 = vpack.c.bf16 %v3015_v57, %v3014_v4  ;;  %vm4748_vm10 = vcmp.ne.f32.partialorder %v7139_v31, 0.0 }
 0x17d   : > { %v10488_v15 = vpop.permute.xlu0 %3195  ;;  %4324 = vperm.xlu1 %8468, %v4239_v49   ;;  %7757 = vmatprep.mubr.msk.bf16.mxu0 %vm10467_vm7, %v6598_v21  ;;  %vm6603_vm7 = vmpackc.low %vm1053_vm14, %vm1052_vm15  ;;  %vm1054_vm13 = vcmp.eq.s32.totalorder %v11981_v0, 1  ;;  %vm1057_vm14 = vcmp.eq.s32.totalorder %v11982_v25, 1  ;;  %vm1056_vm15 = vcmp.eq.s32.totalorder %v11983_v27, 1  ;;  %v4244_v33 = vsel %vm4212_vm11, 1, %v11922_v37  ;;  %v7138_v17 = vld [vmem:[%s11856_s1 + $0x718] sm:$0xff]  ;;  %v7141_v1 = vld [vmem:[%s11856_s1 + $0x730] sm:$0xff] }
 0x17e   : > { %4321 = vperm.xlu0 %8467, %v4238_v61   ;;  %7783 = vmatprep.subr.bf16.mxu0 %v8523_v41  ;;  %vm3240_vm8 = vcmp.eq.s32.totalorder %v10488_v15, 1  ;;  %v6913_v49 = vpack.c.bf16 %v3013_v9, %v3012_v18  ;;  %vm4747_vm11 = vcmp.ne.f32.partialorder %v7138_v17, 0.0  ;;  %v3016_v50 = vld [vmem:[#allocation2 + $0xe0] sm:$0xff]  ;;  %v3017_v26 = vld [vmem:[#allocation2 + $0xe8] sm:$0xff]  ;;  %v4780_v15 = vsel %vm4748_vm10, 1, %v11922_v37  ;;  %v1865_v51 = vld [vmem:[#allocation2 + $0x11] sm:$0xff] }
 0x17f   : > { %7784 = vmatpush3.bf16.msra.mxu0 %v8523_v41  ;;  %7927 = vmatprep.subr.bf16.mxu1 %v8524_v23  ;;  %v6607_v41 = vpack.c.bf16 %v10057_v36, %v10055_v30  ;;  %v4778_v30 = vsel %vm4746_vm0, 1, %v11922_v37  ;;  %v4777_v36 = vsel %vm4745_vm3, 1, %v11922_v37  ;;  %v7140_v12 = vld [vmem:[%s11856_s1 + $0x728] sm:$0xff]  ;;  %v11986_v60 = vld [vmem:[#allocation27_spill] sm:$0xff]  ;;  %v4779_v47 = vsel %vm4747_vm11, 1, %v11922_v37  ;;  %v6626_v45 = vld [vmem:[%s11856_s1 + $0x258] sm:$0xff] }
 0x180   : > { %v10514_v10 = vpop.permute.xlu1 %3204  ;;  %7928 = vmatpush3.bf16.msra.mxu1 %v8524_v23  ;;  %7817 = vmatprep.subr.bf16.mxu0 %v10524_v54  ;;  %v11987_v43 = vld [vmem:[#allocation28_spill] sm:$0xff]  ;;  %v6919_v39 = vpack.c.bf16 %v3017_v26, %v3016_v50  ;;  %vm4749_vm0 = vcmp.ne.f32.partialorder %v7140_v12, 0.0  ;;  %v3020_v56 = vld [vmem:[#allocation2 + $0x100] sm:$0xff]  ;;  %v11988_v18 = vld [vmem:[#allocation29_spill] sm:$0xff] }
 0x181   : > { %v10530_v7 = vpop.permute.xlu0 %3201  ;;  %4330 = vperm.xlu1 %8468, %v4241_v40   ;;  %7961 = vmatprep.subr.bf16.mxu1 %v10495_v6  ;;  %v6613_v40 = vpack.c.bf16 %v10136_v42, %v10132_v35  ;;  %vm3243_vm3 = vcmp.eq.s32.totalorder %v10514_v10, 1  ;;  %v7142_v35 = vld [vmem:[%s11856_s1 + $0x738] sm:$0xff]  ;;  %v4781_v10 = vsel %vm4749_vm0, 1, %v11922_v37  ;;  %v7144_v52 = vld [vmem:[%s11856_s1 + $0x748] sm:$0xff]  ;;  %v6625_v48 = vld [vmem:[%s11856_s1 + $0x250] sm:$0xff] }
 0x182   : > { %4327 = vperm.xlu0 %8467, %v4240_v53   ;;  %7898 = vmatmul.mubr.msk.bf16.gmra.mrb[0].mxu1 %vm6906_vm5, %v6907_v8  ;;  %vm6912_vm5 = vmpackc.low %vm3238_vm9, %vm3237_vm2  ;;  %vm4750_vm9 = vcmp.ne.f32.partialorder %v7141_v1, 0.0  ;;  %v6624_v53 = vld [vmem:[%s11856_s1 + $0x248] sm:$0xff]  ;;  %vm2089_vm2 = vcmp.eq.s32.totalorder %v9571_v55, 1  ;;  %vm4751_vm11 = vcmp.ne.f32.partialorder %v7142_v35, 0.0  ;;  %v7143_v55 = vld [vmem:[%s11856_s1 + $0x740] sm:$0xff] }
 0x183   : > { %7901 = vmatprep.mubr.msk.bf16.mxu1 %vm6909_vm6, %v6910_v46  ;;  %vm6915_vm6 = vmpackc.low %vm3240_vm8, %vm3239_vm4  ;;  %vm3241_vm8 = vcmp.eq.s32.totalorder %v10479_v3, 1  ;;  %v1864_v46 = vld [vmem:[#allocation2 + $0x9] sm:$0xff]  ;;  %v4782_v42 = vsel %vm4750_vm9, 1, %v11922_v37  ;;  %v10672_v4 = vld [vmem:[#allocation2 + $0x21] sm:$0xff]  ;;  %vm2091_vm9 = vcmp.eq.s32.totalorder %v9598_v29, 1  ;;  %vm4752_vm0 = vcmp.ne.f32.partialorder %v7143_v55, 0.0 }
 0x184   : > { %v10548_v62 = vpop.permute.xlu1 %3210  ;;  %7758 = vmatmul.mubr.msk.bf16.gmra.mrb[52].mxu0 %vm10509_vm1, %v6601_v24  ;;  %vm10574_vm1 = vmpackc.low %vm1055_vm12, %vm1054_vm13  ;;  %vm1059_vm12 = vcmp.eq.s32.totalorder %v11986_v60, 1  ;;  %vm1058_vm13 = vcmp.eq.s32.totalorder %v11987_v43, 1  ;;  %v6672_v8 = vpack.c.bf16 %v1865_v51, %v1864_v46  ;;  %v1868_v0 = vld [vmem:[#allocation2 + $0x29] sm:$0xff]  ;;  %v10722_v31 = vld [vmem:[#allocation2 + $0x41] sm:$0xff] }
 0x185   : > { %v10557_v2 = vpop.permute.xlu0 %3207  ;;  %4336 = vperm.xlu1 %8468, %v4243_v11   ;;  %7761 = vmatprep.mubr.msk.bf16.mxu0 %vm6603_vm7, %v6604_v22  ;;  %vm6609_vm7 = vmpackc.low %vm1057_vm14, %vm1056_vm15  ;;  %vm3242_vm14 = vcmp.eq.s32.totalorder %v10530_v7, 1  ;;  %v3021_v22 = vld [vmem:[#allocation2 + $0x108] sm:$0xff]  ;;  %v3554_v11 = vld [vmem:[#allocation2 + $0x19] sm:$0xff] }
 0x186   : > { %4333 = vperm.xlu0 %8467, %v4242_v34   ;;  %vm3244_vm15 = vcmp.eq.s32.totalorder %v10557_v2, 1  ;;  %vm6918_vm4 = vmpackc.low %vm3242_vm14, %vm3241_vm8  ;;  %v4783_v34 = vsel %vm4751_vm11, 1, %v11922_v37  ;;  %vm3245_vm8 = vcmp.eq.s32.totalorder %v10548_v62, 1  ;;  %v6925_v38 = vpack.c.bf16 %v3021_v22, %v3020_v56  ;;  %v1869_v2 = vld [vmem:[#allocation2 + $0x31] sm:$0xff]  ;;  %v11990_v17 = vld [vmem:[#allocation31_spill] sm:$0xff] }
 0x187   : > { %v6984_v9 = vpack.c.bf16 %v3554_v11, %v1865_v51  ;;  %v6675_v27 = vpack.c.bf16 %v10672_v4, %v3554_v11  ;;  %vm1939_vm11 = vcmp.ne.f32.partialorder %v6625_v48, 0.0  ;;  %v7145_v5 = vld [vmem:[%s11856_s1 + $0x750] sm:$0xff]  ;;  %v6627_v59 = vld [vmem:[%s11856_s1 + $0x260] sm:$0xff]  ;;  %v7148_v12 = vld [vmem:[%s11856_s1 + $0x768] sm:$0xff] }
 0x188   : > { %v10579_v21 = vpop.permute.xlu1 %3683  ;;  %v8527_v60 = vld [vmem:[%s11860_s5 + $0x190] sm:$0xff]   ;;  %v6630_v51 = vld [vmem:[%s11856_s1 + $0x278] sm:$0xff]  ;;  %v8529_v56 = vld [vmem:[%s11860_s5 + $0x1a0] sm:$0xff]  }
 0x189   : > { %v10589_v61 = vpop.permute.xlu0 %3213  ;;  %4809 = vperm.xlu1 %8468, %v4776_v16   ;;  %v4784_v16 = vsel %vm4752_vm0, 1, %v11922_v37  ;;  %vm4754_vm0 = vcmp.ne.f32.partialorder %v7145_v5, 0.0  ;;  %v8561_v22 = vld [vmem:[%s11860_s5 + $0xd8] sm:$0xff]   ;;  %v3564_v11 = vld [vmem:[#allocation2 + $0x69] sm:$0xff] }
 0x18a   : > { %4339 = vperm.xlu0 %8467, %v4244_v33   ;;  %7902 = vmatmul.mubr.msk.bf16.gmra.mrb[4].mxu1 %vm6912_vm5, %v6913_v49  ;;  %vm6921_vm5 = vmpackc.low %vm3244_vm15, %vm3243_vm3  ;;  %vm4753_vm15 = vcmp.ne.f32.partialorder %v7144_v52, 0.0  ;;  %vm3778_vm3 = vcmp.eq.s32.totalorder %v10579_v21, 1  ;;  %v6678_v33 = vpack.c.bf16 %v1869_v2, %v1868_v0  ;;  %v3558_v21 = vld [vmem:[#allocation2 + $0x39] sm:$0xff]  ;;  %v4786_v50 = vsel %vm4754_vm0, 1, %v11922_v37  ;;  %v8563_v5 = vld [vmem:[%s11860_s5 + $0xe8] sm:$0xff]  }
 0x18b   : > { %7905 = vmatprep.mubr.msk.bf16.mxu1 %vm6915_vm6, %v6916_v13  ;;  %vm6612_vm6 = vmpackc.low %vm1059_vm12, %vm1058_vm13  ;;  %vm3246_vm12 = vcmp.eq.s32.totalorder %v10589_v61, 1  ;;  %vm2092_vm13 = vcmp.eq.s32.totalorder %v9591_v14, 1  ;;  %v4785_v25 = vsel %vm4753_vm15, 1, %v11922_v37  ;;  %v7146_v14 = vld [vmem:[%s11856_s1 + $0x758] sm:$0xff]  ;;  %v8559_v61 = vld [vmem:[%s11860_s5 + $0xc8] sm:$0xff]  }
 0x18c   : > { %v10605_v63 = vpop.permute.xlu1 %3689  ;;  %7762 = vmatmul.mubr.msk.bf16.gmra.mrb[56].mxu0 %vm10574_vm1, %v6607_v41  ;;  %vm2090_vm1 = vcmp.eq.s32.totalorder %v9560_v44, 1  ;;  %v11989_v49 = vld [vmem:[#allocation30_spill] sm:$0xff]  ;;  %v1971_v41 = vsel %vm1939_vm11, 1, %v11922_v37  ;;  %vm4755_vm15 = vcmp.ne.f32.partialorder %v7146_v14, 0.0  ;;  %vm4757_vm11 = vcmp.ne.f32.partialorder %v7148_v12, 0.0  ;;  %v7152_v14 = vld [vmem:[%s11856_s1 + $0x788] sm:$0xff] }
 0x18d   : > { %v10612_v23 = vpop.permute.xlu0 %3686  ;;  %4815 = vperm.xlu1 %8468, %v4778_v30   ;;  %7765 = vmatprep.mubr.msk.bf16.mxu0 %vm6609_vm7, %v6610_v58  ;;  %vm1938_vm7 = vcmp.ne.f32.partialorder %v6624_v53, 0.0  ;;  %vm6671_vm10 = vmpackc.low %vm2090_vm1, %vm2089_vm2  ;;  %vm2094_vm1 = vcmp.eq.s32.totalorder %v9622_v20, 1  ;;  %vm2093_vm2 = vcmp.eq.s32.totalorder %v11988_v18, 1  ;;  %v6628_v30 = vld [vmem:[%s11856_s1 + $0x268] sm:$0xff]  ;;  %v4787_v1 = vsel %vm4755_vm15, 1, %v11922_v37 }
 0x18e   : > { %4812 = vperm.xlu0 %8467, %v4777_v36   ;;  %v1970_v44 = vsel %vm1938_vm7, 1, %v11922_v37  ;;  %vm3779_vm14 = vcmp.eq.s32.totalorder %v10612_v23, 1  ;;  %vm1940_vm7 = vcmp.ne.f32.partialorder %v6626_v45, 0.0  ;;  %v8526_v36 = vld [vmem:[%s11860_s5 + $0x188] sm:$0xff]   ;;  %v6681_v23 = vpack.c.bf16 %v10722_v31, %v3558_v21  ;;  %v8562_v45 = vld [vmem:[%s11860_s5 + $0xe0] sm:$0xff]  }
 0x18f   : > { %v1972_v20 = vsel %vm1940_vm7, 1, %v11922_v37 }
 0x190   : > { %v10626_v32 = vpop.permute.xlu1 %3695 }
 0x191   : > { %v10638_v3 = vpop.permute.xlu0 %3692  ;;  %4821 = vperm.xlu1 %8468, %v4780_v15   ;;  %v3560_v15 = vld [vmem:[#allocation2 + $0x49] sm:$0xff] }
 0x192   : > { %4818 = vperm.xlu0 %8467, %v4779_v47   ;;  %7906 = vmatmul.mubr.msk.bf16.gmra.mrb[8].mxu1 %vm6918_vm4, %v6919_v39  ;;  %vm6924_vm4 = vmpackc.low %vm3246_vm12, %vm3245_vm8  ;;  %vm3781_vm12 = vcmp.eq.s32.totalorder %v10638_v3, 1  ;;  %vm3780_vm8 = vcmp.eq.s32.totalorder %v10605_v63, 1  ;;  %v6990_v63 = vpack.c.bf16 %v3558_v21, %v1869_v2  ;;  %v8560_v39 = vld [vmem:[%s11860_s5 + $0xd0] sm:$0xff]   ;;  %v6993_v46 = vpack.c.bf16 %v3560_v15, %v10722_v31  ;;  %v8528_v3 = vld [vmem:[%s11860_s5 + $0x198] sm:$0xff]  }
 0x193   : > { %7909 = vmatprep.mubr.msk.bf16.mxu1 %vm6921_vm5, %v6922_v28  ;;  %vm6983_vm5 = vmpackc.low %vm3779_vm14, %vm3778_vm3  ;;  %v3561_v28 = vld [vmem:[#allocation2 + $0x51] sm:$0xff]  ;;  %v3567_v21 = vld [vmem:[#allocation2 + $0x81] sm:$0xff] }
 0x194   : > { %v10657_v24 = vpop.permute.xlu1 %3701  ;;  %7766 = vmatmul.mubr.msk.bf16.gmra.mrb[60].mxu0 %vm6612_vm6, %v6613_v40  ;;  %vm6674_vm6 = vmpackc.low %vm2092_vm13, %vm2091_vm9  ;;  %vm2096_vm13 = vcmp.eq.s32.totalorder %v11989_v49, 1  ;;  %vm2095_vm9 = vcmp.eq.s32.totalorder %v11990_v17, 1  ;;  %v3568_v49 = vld [vmem:[#allocation2 + $0x89] sm:$0xff]  ;;  %v3570_v17 = vld [vmem:[#allocation2 + $0x99] sm:$0xff] }
 0x195   : > { %v10662_v7 = vpop.permute.xlu0 %3698  ;;  %4827 = vperm.xlu1 %8468, %v4782_v42   ;;  %7785 = vmatprep.mubr.msk.bf16.mxu0 %vm6671_vm10, %v6672_v8  ;;  %vm6677_vm10 = vmpackc.low %vm2094_vm1, %vm2093_vm2  ;;  %vm3782_vm1 = vcmp.eq.s32.totalorder %v10626_v32, 1  ;;  %v3562_v32 = vld [vmem:[#allocation2 + $0x59] sm:$0xff]  ;;  %v4789_v8 = vsel %vm4757_vm11, 1, %v11922_v37 }
 0x196   : > { %4824 = vperm.xlu0 %8467, %v4781_v10   ;;  %vm3783_vm14 = vcmp.eq.s32.totalorder %v10662_v7, 1  ;;  %vm6986_vm2 = vmpackc.low %vm3781_vm12, %vm3780_vm8  ;;  %vm3784_vm12 = vcmp.eq.s32.totalorder %v10657_v24, 1  ;;  %v6996_v42 = vpack.c.bf16 %v3562_v32, %v3561_v28  ;;  %v6629_v10 = vld [vmem:[%s11856_s1 + $0x270] sm:$0xff]  ;;  %vm1944_vm8 = vcmp.ne.f32.partialorder %v6630_v51, 0.0  ;;  %v7150_v7 = vld [vmem:[%s11856_s1 + $0x778] sm:$0xff] }
 0x197   : > { %vm6989_vm3 = vmpackc.low %vm3783_vm14, %vm3782_vm1  ;;  %vm1943_vm0 = vcmp.ne.f32.partialorder %v6629_v10, 0.0  ;;  %v8565_v15 = vld [vmem:[%s11860_s5 + $0xf8] sm:$0xff]   ;;  %v3572_v28 = vld [vmem:[#allocation2 + $0xa9] sm:$0xff] }
 0x198   : > { %v10676_v57 = vpop.permute.xlu1 %3707  ;;  %v7153_v32 = vld [vmem:[%s11856_s1 + $0x790] sm:$0xff] }
 0x199   : > { %v10686_v62 = vpop.permute.xlu0 %3704  ;;  %2021 = vperm.xlu1 %8468, %v1970_v44   ;;  %vm3786_vm14 = vcmp.eq.s32.totalorder %v10676_v57, 1  ;;  %v3563_v44 = vld [vmem:[#allocation2 + $0x61] sm:$0xff]  ;;  %v3565_v57 = vld [vmem:[#allocation2 + $0x71] sm:$0xff] }
 0x19a   : > { %4830 = vperm.xlu0 %8467, %v4783_v34   ;;  %7910 = vmatmul.mubr.msk.bf16.gmra.mrb[12].mxu1 %vm6924_vm4, %v6925_v38  ;;  %vm6680_vm4 = vmpackc.low %vm2096_vm13, %vm2095_vm9  ;;  %vm3785_vm7 = vcmp.eq.s32.totalorder %v10686_v62, 1  ;;  %v7149_v34 = vld [vmem:[%s11856_s1 + $0x770] sm:$0xff]  ;;  %v3566_v38 = vld [vmem:[#allocation2 + $0x79] sm:$0xff]  ;;  %v6999_v18 = vpack.c.bf16 %v3564_v11, %v3563_v44 }
 0x19b   : > { %7929 = vmatprep.mubr.msk.bf16.mxu1 %vm6983_vm5, %v6984_v9  ;;  %vm1942_vm5 = vcmp.ne.f32.partialorder %v6628_v30, 0.0  ;;  %vm6992_vm15 = vmpackc.low %vm3785_vm7, %vm3784_vm12  ;;  %v6632_v62 = vld [vmem:[%s11856_s1 + $0x288] sm:$0xff]  ;;  %v7155_v11 = vld [vmem:[%s11856_s1 + $0x7a0] sm:$0xff] }
 0x19c   : > { %v10706_v13 = vpop.permute.xlu1 %3713  ;;  %7786 = vmatmul.mubr.msk.bf16.vlgmr.msra.gmra.mrb[32].mxu0 %vm6674_vm6, %v6675_v27  ;;  %vm1941_vm6 = vcmp.ne.f32.partialorder %v6627_v59, 0.0  ;;  %v1974_v47 = vsel %vm1942_vm5, 1, %v11922_v37  ;;  %vm4758_vm5 = vcmp.ne.f32.partialorder %v7149_v34, 0.0  ;;  %v8530_v9 = vld [vmem:[%s11860_s5 + $0x1a8] sm:$0xff]   ;;  %v6631_v27 = vld [vmem:[%s11856_s1 + $0x280] sm:$0xff]  ;;  %vm1946_vm11 = vcmp.ne.f32.partialorder %v6632_v62, 0.0 }
 0x19d   : > { %v10711_v29 = vpop.permute.xlu0 %3710  ;;  %4836 = vperm.xlu1 %8468, %v4785_v25   ;;  %7789 = vmatprep.mubr.msk.bf16.mxu0 %vm6677_vm10, %v6678_v33  ;;  %v1973_v40 = vsel %vm1941_vm6, 1, %v11922_v37  ;;  %v7002_v25 = vpack.c.bf16 %v3566_v38, %v3565_v57  ;;  %v4790_v33 = vsel %vm4758_vm5, 1, %v11922_v37  ;;  %vm1945_vm12 = vcmp.ne.f32.partialorder %v6631_v27, 0.0  ;;  %v3576_v44 = vld [vmem:[#allocation2 + $0xc9] sm:$0xff]  ;;  %v3578_v57 = vld [vmem:[#allocation2 + $0xd9] sm:$0xff] }
 0x19e   : > { %4833 = vperm.xlu0 %8467, %v4784_v16   ;;  %7818 = vmatpush3.bf16.msra.mxu0 %v10524_v54  ;;  %v6987_v54 = vpack.c.bf16 %v1868_v0, %v10672_v4  ;;  %vm3787_vm10 = vcmp.eq.s32.totalorder %v10711_v29, 1  ;;  %v1976_v4 = vsel %vm1944_vm8, 1, %v11922_v37  ;;  %v1975_v0 = vsel %vm1943_vm0, 1, %v11922_v37  ;;  %v8531_v29 = vld [vmem:[%s11860_s5 + $0x1b0] sm:$0xff]  }
 0x19f   : > { %7819 = vmatprep.subr.bf16.mxu0 %v8559_v61  ;;  %vm6995_vm9 = vmpackc.low %vm3787_vm10, %vm3786_vm14  ;;  %v1978_v31 = vsel %vm1946_vm11, 1, %v11922_v37  ;;  %vm4762_vm11 = vcmp.ne.f32.partialorder %v7153_v32, 0.0 }
 0x1a0   : > { %v10729_v58 = vpop.permute.xlu1 %3719 }
 0x1a1   : > { %v10741_v19 = vpop.permute.xlu0 %3716  ;;  %2027 = vperm.xlu1 %8468, %v1972_v20   ;;  %vm3790_vm6 = vcmp.eq.s32.totalorder %v10729_v58, 1  ;;  %v8564_v58 = vld [vmem:[%s11860_s5 + $0xf0] sm:$0xff]  }
 0x1a2   : > { %2024 = vperm.xlu0 %8467, %v1971_v41   ;;  %7930 = vmatmul.mubr.msk.bf16.vlgmr.msra.gmra.mrb[16].mxu1 %vm6986_vm2, %v6987_v54  ;;  %vm3789_vm1 = vcmp.eq.s32.totalorder %v10741_v19, 1  ;;  %v7151_v41 = vld [vmem:[%s11856_s1 + $0x780] sm:$0xff]  ;;  %v1977_v54 = vsel %vm1945_vm12, 1, %v11922_v37  ;;  %v6634_v19 = vld [vmem:[%s11856_s1 + $0x298] sm:$0xff] }
 0x1a3   : > { %7933 = vmatprep.mubr.msk.bf16.mxu1 %vm6989_vm3, %v6990_v63  ;;  %7962 = vmatpush3.bf16.msra.mxu1 %v10495_v6  ;;  %v7147_v6 = vld [vmem:[%s11856_s1 + $0x760] sm:$0xff]  ;;  %vm4759_vm3 = vcmp.ne.f32.partialorder %v7150_v7, 0.0  ;;  %vm4760_vm8 = vcmp.ne.f32.partialorder %v7151_v41, 0.0  ;;  %v8532_v63 = vld [vmem:[%s11860_s5 + $0x1b8] sm:$0xff]  }
 0x1a4   : > { %v10758_v26 = vpop.permute.xlu1 %3725  ;;  %7790 = vmatmul.mubr.msk.bf16.gmra.mrb[36].mxu0 %vm6680_vm4, %v6681_v23  ;;  %7963 = vmatprep.subr.bf16.mxu1 %v8526_v36  ;;  %vm4756_vm13 = vcmp.ne.f32.partialorder %v7147_v6, 0.0  ;;  %vm3788_vm4 = vcmp.eq.s32.totalorder %v10706_v13, 1  ;;  %v4791_v16 = vsel %vm4759_vm3, 1, %v11922_v37  ;;  %v6633_v23 = vld [vmem:[%s11856_s1 + $0x290] sm:$0xff]  ;;  %vm1948_vm3 = vcmp.ne.f32.partialorder %v6634_v19, 0.0 }
 0x1a5   : > { %v10766_v43 = vpop.permute.xlu0 %3722  ;;  %4842 = vperm.xlu1 %8468, %v4787_v1   ;;  %7820 = vmatpush3.bf16.msra.mxu0 %v8559_v61  ;;  %v4788_v24 = vsel %vm4756_vm13, 1, %v11922_v37  ;;  %vm6998_vm7 = vmpackc.low %vm3789_vm1, %vm3788_vm4  ;;  %v3569_v61 = vld [vmem:[#allocation2 + $0x91] sm:$0xff]  ;;  %vm1947_vm4 = vcmp.ne.f32.partialorder %v6633_v23, 0.0  ;;  %v3584_v23 = vld [vmem:[#allocation2 + $0x109] sm:$0xff] }
 0x1a6   : > { %4839 = vperm.xlu0 %8467, %v4786_v50   ;;  %7821 = vmatprep.subr.bf16.mxu0 %v8560_v39  ;;  %vm3791_vm2 = vcmp.eq.s32.totalorder %v10766_v43, 1  ;;  %v7008_v1 = vpack.c.bf16 %v3570_v17, %v3569_v61  ;;  %v10907_v43 = vld [vmem:[%s11860_s5 + $0x1c0] sm:$0xff]   ;;  %v6640_v61 = vld [vmem:[%s11856_s1 + $0x2c8] sm:$0xff] }
 0x1a7   : > { %7964 = vmatpush3.bf16.msra.mxu1 %v8526_v36  ;;  %vm7001_vm10 = vmpackc.low %vm3791_vm2, %vm3790_vm6  ;;  %v7005_v36 = vpack.c.bf16 %v3568_v49, %v3567_v21  ;;  %v3582_v21 = vld [vmem:[#allocation2 + $0xf9] sm:$0xff] }
 0x1a8   : > { %v10780_v53 = vpop.permute.xlu1 %3731  ;;  %7965 = vmatprep.subr.bf16.mxu1 %v8527_v60 }
 0x1a9   : > { %v10792_v35 = vpop.permute.xlu0 %3728  ;;  %2033 = vperm.xlu1 %8468, %v1974_v47   ;;  %7822 = vmatpush3.bf16.msra.mxu0 %v8560_v39  ;;  %vm3794_vm0 = vcmp.eq.s32.totalorder %v10780_v53, 1  ;;  %v3571_v47 = vld [vmem:[#allocation2 + $0xa1] sm:$0xff]  ;;  %v1980_v39 = vsel %vm1948_vm3, 1, %v11922_v37  ;;  %v3574_v53 = vld [vmem:[#allocation2 + $0xb9] sm:$0xff]  ;;  %vm4764_vm3 = vcmp.ne.f32.partialorder %v7155_v11, 0.0 }
 0x1aa   : > { %2030 = vperm.xlu0 %8467, %v1973_v40   ;;  %7934 = vmatmul.mubr.msk.bf16.gmra.mrb[20].mxu1 %vm6992_vm15, %v6993_v46  ;;  %vm3793_vm13 = vcmp.eq.s32.totalorder %v10792_v35, 1  ;;  %vm4761_vm15 = vcmp.ne.f32.partialorder %v7152_v14, 0.0  ;;  %v3573_v40 = vld [vmem:[#allocation2 + $0xb1] sm:$0xff]  ;;  %v1979_v46 = vsel %vm1947_vm4, 1, %v11922_v37  ;;  %v6636_v35 = vld [vmem:[%s11856_s1 + $0x2a8] sm:$0xff] }
 0x1ab   : > { %7937 = vmatprep.mubr.msk.bf16.mxu1 %vm6995_vm9, %v6996_v42  ;;  %7966 = vmatpush3.bf16.msra.mxu1 %v8527_v60  ;;  %vm3792_vm9 = vcmp.eq.s32.totalorder %v10758_v26, 1  ;;  %v4793_v50 = vsel %vm4761_vm15, 1, %v11922_v37  ;;  %v4792_v26 = vsel %vm4760_vm8, 1, %v11922_v37  ;;  %v7154_v60 = vld [vmem:[%s11856_s1 + $0x798] sm:$0xff]  ;;  %v7014_v10 = vpack.c.bf16 %v3574_v53, %v3573_v40  ;;  %v3580_v14 = vld [vmem:[#allocation2 + $0xe9] sm:$0xff] }
 0x1ac   : > { %v10803_v52 = vpop.permute.xlu1 %3737  ;;  %7967 = vmatprep.subr.bf16.mxu1 %v8528_v3  ;;  %7823 = vmatprep.subr.bf16.mxu0 %v8561_v22  ;;  %vm7004_vm1 = vmpackc.low %vm3793_vm13, %vm3792_vm9  ;;  %vm1950_vm15 = vcmp.ne.f32.partialorder %v6636_v35, 0.0  ;;  %v6641_v40 = vld [vmem:[%s11856_s1 + $0x2d0] sm:$0xff]  ;;  %v8534_v11 = vld [vmem:[%s11860_s5 + $0x1c8] sm:$0xff]  }
 0x1ad   : > { %v10814_v55 = vpop.permute.xlu0 %3734  ;;  %4848 = vperm.xlu1 %8468, %v4789_v8   ;;  %7824 = vmatpush3.bf16.msra.mxu0 %v8561_v22  ;;  %v6635_v8 = vld [vmem:[%s11856_s1 + $0x2a0] sm:$0xff]  ;;  %v1982_v34 = vsel %vm1950_vm15, 1, %v11922_v37 }
 0x1ae   : > { %4845 = vperm.xlu0 %8467, %v4788_v24   ;;  %7825 = vmatprep.subr.bf16.mxu0 %v8562_v45  ;;  %vm3795_vm14 = vcmp.eq.s32.totalorder %v10814_v55, 1  ;;  %vm1949_vm9 = vcmp.ne.f32.partialorder %v6635_v8, 0.0  ;;  %v3575_v55 = vld [vmem:[#allocation2 + $0xc1] sm:$0xff]  ;;  %v7161_v8 = vld [vmem:[%s11856_s1 + $0x7d0] sm:$0xff] }
 0x1af   : > { %7968 = vmatpush3.bf16.msra.mxu1 %v8528_v3  ;;  %vm7007_vm2 = vmpackc.low %vm3795_vm14, %vm3794_vm0  ;;  %v7011_v3 = vpack.c.bf16 %v3572_v28, %v3571_v47  ;;  %v1981_v38 = vsel %vm1949_vm9, 1, %v11922_v37  ;;  %v6642_v28 = vld [vmem:[%s11856_s1 + $0x2d8] sm:$0xff] }
 0x1b0   : > { %v10829_v2 = vpop.permute.xlu1 %3743  ;;  %7969 = vmatprep.subr.bf16.mxu1 %v8529_v56 }
 0x1b1   : > { %v10840_v48 = vpop.permute.xlu0 %3740  ;;  %2039 = vperm.xlu1 %8468, %v1976_v4   ;;  %7826 = vmatpush3.bf16.msra.mxu0 %v8562_v45  ;;  %vm3798_vm12 = vcmp.eq.s32.totalorder %v10829_v2, 1  ;;  %v3577_v4 = vld [vmem:[#allocation2 + $0xd1] sm:$0xff] }
 0x1b2   : > { %2036 = vperm.xlu0 %8467, %v1975_v0   ;;  %7938 = vmatmul.mubr.msk.bf16.gmra.mrb[24].mxu1 %vm6998_vm7, %v6999_v18  ;;  %vm3797_vm5 = vcmp.eq.s32.totalorder %v10840_v48, 1  ;;  %vm4763_vm7 = vcmp.ne.f32.partialorder %v7154_v60, 0.0  ;;  %v7017_v0 = vpack.c.bf16 %v3576_v44, %v3575_v55  ;;  %v6638_v2 = vld [vmem:[%s11856_s1 + $0x2b8] sm:$0xff]  ;;  %v7020_v62 = vpack.c.bf16 %v3578_v57, %v3577_v4  ;;  %v6644_v44 = vld [vmem:[%s11856_s1 + $0x2e8] sm:$0xff]  ;;  %v6643_v57 = vld [vmem:[%s11856_s1 + $0x2e0] sm:$0xff] }
 0x1b3   : > { %7941 = vmatprep.mubr.msk.bf16.mxu1 %vm7001_vm10, %v7002_v25  ;;  %7970 = vmatpush3.bf16.msra.mxu1 %v8529_v56  ;;  %vm3796_vm10 = vcmp.eq.s32.totalorder %v10803_v52, 1  ;;  %v4795_v24 = vsel %vm4763_vm7, 1, %v11922_v37  ;;  %v4794_v52 = vsel %vm4762_vm11, 1, %v11922_v37  ;;  %v7156_v56 = vld [vmem:[%s11856_s1 + $0x7a8] sm:$0xff]  ;;  %v4796_v25 = vsel %vm4764_vm3, 1, %v11922_v37  ;;  %v4117_v60 = vld [vmem:[#allocation2 + $0x1f] sm:$0xff] }
 0x1b4   : > { %v10851_v13 = vpop.permute.xlu1 %3749  ;;  %7971 = vmatprep.subr.bf16.mxu1 %v8530_v9  ;;  %7827 = vmatprep.subr.bf16.mxu0 %v8563_v5  ;;  %vm7010_vm13 = vmpackc.low %vm3797_vm5, %vm3796_vm10  ;;  %vm1952_vm7 = vcmp.ne.f32.partialorder %v6638_v2, 0.0  ;;  %v7164_v2 = vld [vmem:[%s11856_s1 + $0x7e8] sm:$0xff] }
 0x1b5   : > { %v10862_v20 = vpop.permute.xlu0 %3746  ;;  %4854 = vperm.xlu1 %8468, %v4791_v16   ;;  %7828 = vmatpush3.bf16.msra.mxu0 %v8563_v5  ;;  %v7158_v16 = vld [vmem:[%s11856_s1 + $0x7b8] sm:$0xff]  ;;  %v1984_v5 = vsel %vm1952_vm7, 1, %v11922_v37 }
 0x1b6   : > { %4851 = vperm.xlu0 %8467, %v4790_v33   ;;  %7829 = vmatprep.subr.bf16.mxu0 %v8564_v58  ;;  %vm3799_vm6 = vcmp.eq.s32.totalorder %v10862_v20, 1  ;;  %v3581_v20 = vld [vmem:[#allocation2 + $0xf1] sm:$0xff] }
 0x1b7   : > { %7972 = vmatpush3.bf16.msra.mxu1 %v8530_v9  ;;  %vm7013_vm14 = vmpackc.low %vm3799_vm6, %vm3798_vm12  ;;  %v6637_v9 = vld [vmem:[%s11856_s1 + $0x2b0] sm:$0xff] }
 0x1b8   : > { %v10877_v30 = vpop.permute.xlu1 %3755  ;;  %7973 = vmatprep.subr.bf16.mxu1 %v8531_v29  ;;  %vm1951_vm10 = vcmp.ne.f32.partialorder %v6637_v9, 0.0  ;;  %v4122_v9 = vld [vmem:[#allocation2 + $0x47] sm:$0xff] }
 0x1b9   : > { %v10888_v59 = vpop.permute.xlu0 %3752  ;;  %2045 = vperm.xlu1 %8468, %v1978_v31   ;;  %7830 = vmatpush3.bf16.msra.mxu0 %v8564_v58  ;;  %vm3802_vm4 = vcmp.eq.s32.totalorder %v10877_v30, 1  ;;  %v1983_v49 = vsel %vm1951_vm10, 1, %v11922_v37  ;;  %v7026_v58 = vpack.c.bf16 %v3582_v21, %v3581_v20 }
 0x1ba   : > { %2042 = vperm.xlu0 %8467, %v1977_v54   ;;  %7942 = vmatmul.mubr.msk.bf16.gmra.mrb[28].mxu1 %vm7004_vm1, %v7005_v36  ;;  %vm3801_vm8 = vcmp.eq.s32.totalorder %v10888_v59, 1  ;;  %vm4765_vm1 = vcmp.ne.f32.partialorder %v7156_v56, 0.0  ;;  %v6639_v54 = vld [vmem:[%s11856_s1 + $0x2c0] sm:$0xff] }
 0x1bb   : > { %7945 = vmatprep.mubr.msk.bf16.mxu1 %vm7007_vm2, %v7008_v1  ;;  %7974 = vmatpush3.bf16.msra.mxu1 %v8531_v29  ;;  %vm3800_vm2 = vcmp.eq.s32.totalorder %v10851_v13, 1  ;;  %v4797_v48 = vsel %vm4765_vm1, 1, %v11922_v37  ;;  %v3579_v13 = vld [vmem:[#allocation2 + $0xe1] sm:$0xff]  ;;  %v7157_v29 = vld [vmem:[%s11856_s1 + $0x7b0] sm:$0xff]  ;;  %vm1954_vm1 = vcmp.ne.f32.partialorder %v6640_v61, 0.0 }
 0x1bc   : > { %v10899_v12 = vpop.permute.xlu1 %3761  ;;  %7975 = vmatprep.subr.bf16.mxu1 %v8532_v63  ;;  %7831 = vmatprep.subr.bf16.mxu0 %v8565_v15  ;;  %vm7016_vm5 = vmpackc.low %vm3801_vm8, %vm3800_vm2  ;;  %v7023_v31 = vpack.c.bf16 %v3580_v14, %v3579_v13  ;;  %vm4766_vm15 = vcmp.ne.f32.partialorder %v7157_v29, 0.0  ;;  %vm1953_vm2 = vcmp.ne.f32.partialorder %v6639_v54, 0.0  ;;  %v3583_v1 = vld [vmem:[#allocation2 + $0x101] sm:$0xff]  ;;  %v6646_v29 = vld [vmem:[%s11856_s1 + $0x2f8] sm:$0xff] }
 0x1bd   : > { %v3759_v6 = vpop.permute.xlu0 %3758  ;;  %4860 = vperm.xlu1 %8468, %v4793_v50   ;;  %7832 = vmatpush3.bf16.msra.mxu0 %v8565_v15  ;;  %v4798_v36 = vsel %vm4766_vm15, 1, %v11922_v37  ;;  %v7159_v50 = vld [vmem:[%s11856_s1 + $0x7c0] sm:$0xff]  ;;  %v1985_v15 = vsel %vm1953_vm2, 1, %v11922_v37  ;;  %v7029_v47 = vpack.c.bf16 %v3584_v23, %v3583_v1 }
 0x1be   : > { %4857 = vperm.xlu0 %8467, %v4792_v26   ;;  %vm3803_vm0 = vcmp.eq.s32.totalorder %v3759_v6, 1  ;;  %v1986_v26 = vsel %vm1954_vm1, 1, %v11922_v37  ;;  %vm4768_vm7 = vcmp.ne.f32.partialorder %v7159_v50, 0.0  ;;  %vm4770_vm1 = vcmp.ne.f32.partialorder %v7161_v8, 0.0  ;;  %v4129_v1 = vld [vmem:[#allocation2 + $0x7f] sm:$0xff] }
 0x1bf   : > { %7976 = vmatpush3.bf16.msra.mxu1 %v8532_v63  ;;  %vm7019_vm6 = vmpackc.low %vm3803_vm0, %vm3802_vm4  ;;  %v7160_v63 = vld [vmem:[%s11856_s1 + $0x7c8] sm:$0xff]  ;;  %v4133_v8 = vld [vmem:[#allocation2 + $0x9f] sm:$0xff] }
 0x1c0   : > { %v10922_v51 = vpop.permute.xlu1 %3767  ;;  %8009 = vmatprep.subr.bf16.mxu1 %v10907_v43 }
 0x1c1   : > { %v10931_v42 = vpop.permute.xlu0 %3764  ;;  %2051 = vperm.xlu1 %8468, %v1980_v39   ;;  %vm3806_vm9 = vcmp.eq.s32.totalorder %v10922_v51, 1 }
 0x1c2   : > { %2048 = vperm.xlu0 %8467, %v1979_v46   ;;  %7946 = vmatmul.mubr.msk.bf16.gmra.mrb[0].mxu1 %vm7010_vm13, %v7011_v3  ;;  %vm3805_vm11 = vcmp.eq.s32.totalorder %v10931_v42, 1  ;;  %vm4767_vm13 = vcmp.ne.f32.partialorder %v7158_v16, 0.0  ;;  %v4800_v46 = vsel %vm4768_vm7, 1, %v11922_v37  ;;  %v7162_v3 = vld [vmem:[%s11856_s1 + $0x7d8] sm:$0xff]  ;;  %v4118_v42 = vld [vmem:[#allocation2 + $0x27] sm:$0xff] }
 0x1c3   : > { %7949 = vmatprep.mubr.msk.bf16.mxu1 %vm7013_vm14, %v7014_v10  ;;  %vm3804_vm14 = vcmp.eq.s32.totalorder %v10899_v12, 1  ;;  %v4799_v30 = vsel %vm4767_vm13, 1, %v11922_v37  ;;  %v4116_v12 = vld [vmem:[#allocation2 + $0x17] sm:$0xff]  ;;  %vm1956_vm13 = vcmp.ne.f32.partialorder %v6642_v28, 0.0  ;;  %v4119_v10 = vld [vmem:[#allocation2 + $0x2f] sm:$0xff]  ;;  %v4125_v16 = vld [vmem:[#allocation2 + $0x5f] sm:$0xff] }
 0x1c4   : > { %v10941_v7 = vpop.permute.xlu1 %3773  ;;  %vm7022_vm8 = vmpackc.low %vm3805_vm11, %vm3804_vm14  ;;  %v7088_v39 = vpack.c.bf16 %v4117_v60, %v4116_v12  ;;  %vm1955_vm14 = vcmp.ne.f32.partialorder %v6641_v40, 0.0  ;;  %v7091_v55 = vpack.c.bf16 %v4119_v10, %v4118_v42  ;;  %v6720_v12 = vld [vmem:[%s11856_s1 + $0x308] sm:$0xff]  ;;  %v4132_v10 = vld [vmem:[#allocation2 + $0x97] sm:$0xff] }
 0x1c5   : > { %v3771_v22 = vpop.permute.xlu0 %3770  ;;  %4866 = vperm.xlu1 %8468, %v4795_v24   ;;  %v1988_v24 = vsel %vm1956_vm13, 1, %v11922_v37  ;;  %v1987_v56 = vsel %vm1955_vm14, 1, %v11922_v37  ;;  %v8538_v60 = vld [vmem:[%s11860_s5 + $0x1e8] sm:$0xff]  }
 0x1c6   : > { %4863 = vperm.xlu0 %8467, %v4794_v52   ;;  %vm3807_vm12 = vcmp.eq.s32.totalorder %v3771_v22, 1  ;;  %v4120_v52 = vld [vmem:[#allocation2 + $0x37] sm:$0xff]  ;;  %v7240_v40 = vld [vmem:[%s11856_s1 + $0x808] sm:$0xff] }
 0x1c7   : > { %vm7025_vm0 = vmpackc.low %vm3807_vm12, %vm3806_vm9 }
 0x1c8   : > { %v10953_v45 = vpop.permute.xlu1 %4246 }
 0x1c9   : > { %v10959_v18 = vpop.permute.xlu0 %3776  ;;  %2057 = vperm.xlu1 %8468, %v1982_v34   ;;  %vm4341_vm10 = vcmp.eq.s32.totalorder %v10953_v45, 1  ;;  %v4802_v45 = vsel %vm4770_vm1, 1, %v11922_v37 }
 0x1ca   : > { %2054 = vperm.xlu0 %8467, %v1981_v38   ;;  %7950 = vmatmul.mubr.msk.bf16.gmra.mrb[4].mxu1 %vm7016_vm5, %v7017_v0  ;;  %vm3809_vm3 = vcmp.eq.s32.totalorder %v10959_v18, 1  ;;  %vm4769_vm5 = vcmp.ne.f32.partialorder %v7160_v63, 0.0  ;;  %v8535_v18 = vld [vmem:[%s11860_s5 + $0x1d0] sm:$0xff]  }
 0x1cb   : > { %7953 = vmatprep.mubr.msk.bf16.mxu1 %vm7019_vm6, %v7020_v62  ;;  %vm3808_vm6 = vcmp.eq.s32.totalorder %v10941_v7, 1  ;;  %v4801_v53 = vsel %vm4769_vm5, 1, %v11922_v37  ;;  %v4121_v7 = vld [vmem:[#allocation2 + $0x3f] sm:$0xff]  ;;  %vm1958_vm5 = vcmp.ne.f32.partialorder %v6644_v44, 0.0  ;;  %v7112_v44 = vpack.c.bf16 %v4133_v8, %v4132_v10 }
 0x1cc   : > { %v10966_v27 = vpop.permute.xlu1 %4252  ;;  %vm7028_vm11 = vmpackc.low %vm3809_vm3, %vm3808_vm6  ;;  %v7094_v4 = vpack.c.bf16 %v4121_v7, %v4120_v52  ;;  %vm1957_vm6 = vcmp.ne.f32.partialorder %v6643_v57, 0.0  ;;  %v6727_v8 = vld [vmem:[%s11856_s1 + $0x340] sm:$0xff] }
 0x1cd   : > { %v4250_v33 = vpop.permute.xlu0 %4249  ;;  %4872 = vperm.xlu1 %8468, %v4797_v48   ;;  %v4123_v48 = vld [vmem:[#allocation2 + $0x4f] sm:$0xff] }
 0x1ce   : > { %4869 = vperm.xlu0 %8467, %v4796_v25   ;;  %vm4342_vm4 = vcmp.eq.s32.totalorder %v4250_v33, 1  ;;  %v1990_v25 = vsel %vm1958_vm5, 1, %v11922_v37  ;;  %v1989_v33 = vsel %vm1957_vm6, 1, %v11922_v37  ;;  %v7097_v14 = vpack.c.bf16 %v4123_v48, %v4122_v9  ;;  %v4136_v48 = vld [vmem:[#allocation2 + $0xb7] sm:$0xff] }
 0x1cf   : > { %vm7087_vm12 = vmpackc.low %vm4342_vm4, %vm4341_vm10 }
 0x1d0   : > { %v10978_v41 = vpop.permute.xlu1 %4258 }
 0x1d1   : > { %v10984_v17 = vpop.permute.xlu0 %4255  ;;  %2063 = vperm.xlu1 %8468, %v1984_v5   ;;  %vm4345_vm2 = vcmp.eq.s32.totalorder %v10978_v41, 1  ;;  %v8536_v5 = vld [vmem:[%s11860_s5 + $0x1d8] sm:$0xff]  }
 0x1d2   : > { %2060 = vperm.xlu0 %8467, %v1983_v49   ;;  %7954 = vmatmul.mubr.msk.bf16.gmra.mrb[8].mxu1 %vm7022_vm8, %v7023_v31  ;;  %vm4344_vm15 = vcmp.eq.s32.totalorder %v10984_v17, 1  ;;  %vm4771_vm8 = vcmp.ne.f32.partialorder %v7162_v3, 0.0  ;;  %v6645_v49 = vld [vmem:[%s11856_s1 + $0x2f0] sm:$0xff]  ;;  %v7166_v17 = vld [vmem:[%s11856_s1 + $0x7f8] sm:$0xff] }
 0x1d3   : > { %7957 = vmatprep.mubr.msk.bf16.mxu1 %vm7025_vm0, %v7026_v58  ;;  %vm4343_vm0 = vcmp.eq.s32.totalorder %v10966_v27, 1  ;;  %v4803_v38 = vsel %vm4771_vm8, 1, %v11922_v37  ;;  %v4124_v27 = vld [vmem:[#allocation2 + $0x57] sm:$0xff]  ;;  %vm1960_vm8 = vcmp.ne.f32.partialorder %v6646_v29, 0.0  ;;  %v8537_v58 = vld [vmem:[%s11860_s5 + $0x1e0] sm:$0xff]   ;;  %v4131_v3 = vld [vmem:[#allocation2 + $0x8f] sm:$0xff] }
 0x1d4   : > { %v10991_v19 = vpop.permute.xlu1 %4264  ;;  %vm7090_vm3 = vmpackc.low %vm4344_vm15, %vm4343_vm0  ;;  %v7100_v21 = vpack.c.bf16 %v4125_v16, %v4124_v27  ;;  %vm1959_vm0 = vcmp.ne.f32.partialorder %v6645_v49, 0.0  ;;  %v1992_v63 = vsel %vm1960_vm8, 1, %v11922_v37  ;;  %v6723_v29 = vld [vmem:[%s11856_s1 + $0x320] sm:$0xff]  ;;  %v7244_v49 = vld [vmem:[%s11856_s1 + $0x828] sm:$0xff] }
 0x1d5   : > { %v4262_v59 = vpop.permute.xlu0 %4261  ;;  %4878 = vperm.xlu1 %8468, %v4799_v30   ;;  %v4126_v30 = vld [vmem:[#allocation2 + $0x67] sm:$0xff]  ;;  %v1991_v23 = vsel %vm1959_vm0, 1, %v11922_v37 }
 0x1d6   : > { %4875 = vperm.xlu0 %8467, %v4798_v36   ;;  %vm4346_vm9 = vcmp.eq.s32.totalorder %v4262_v59, 1  ;;  %v4127_v36 = vld [vmem:[#allocation2 + $0x6f] sm:$0xff]  ;;  %v4128_v59 = vld [vmem:[#allocation2 + $0x77] sm:$0xff] }
 0x1d7   : > { %vm7093_vm4 = vmpackc.low %vm4346_vm9, %vm4345_vm2 }
 0x1d8   : > { %v11003_v6 = vpop.permute.xlu1 %4270 }
 0x1d9   : > { %v11009_v32 = vpop.permute.xlu0 %4267  ;;  %2069 = vperm.xlu1 %8468, %v1986_v26   ;;  %vm4349_vm14 = vcmp.eq.s32.totalorder %v11003_v6, 1  ;;  %v7103_v26 = vpack.c.bf16 %v4127_v36, %v4126_v30  ;;  %v7106_v6 = vpack.c.bf16 %v4129_v1, %v4128_v59  ;;  %v4141_v30 = vld [vmem:[#allocation2 + $0xdf] sm:$0xff] }
 0x1da   : > { %2066 = vperm.xlu0 %8467, %v1985_v15   ;;  %7958 = vmatmul.mubr.msk.bf16.gmra.mrb[12].mxu1 %vm7028_vm11, %v7029_v47  ;;  %vm4348_vm7 = vcmp.eq.s32.totalorder %v11009_v32, 1  ;;  %vm4773_vm11 = vcmp.ne.f32.partialorder %v7164_v2, 0.0  ;;  %v6719_v47 = vld [vmem:[%s11856_s1 + $0x300] sm:$0xff]  ;;  %v6726_v59 = vld [vmem:[%s11856_s1 + $0x338] sm:$0xff] }
 0x1db   : > { %7977 = vmatprep.mubr.msk.bf16.mxu1 %vm7087_vm12, %v7088_v39  ;;  %vm4347_vm12 = vcmp.eq.s32.totalorder %v10991_v19, 1  ;;  %v4805_v41 = vsel %vm4773_vm11, 1, %v11922_v37  ;;  %v7165_v19 = vld [vmem:[%s11856_s1 + $0x7f0] sm:$0xff]  ;;  %vm2493_vm11 = vcmp.ne.f32.partialorder %v6720_v12, 0.0  ;;  %v4134_v2 = vld [vmem:[#allocation2 + $0xa7] sm:$0xff] }
 0x1dc   : > { %v11016_v51 = vpop.permute.xlu1 %4276  ;;  %vm7096_vm15 = vmpackc.low %vm4348_vm7, %vm4347_vm12  ;;  %vm4774_vm5 = vcmp.ne.f32.partialorder %v7165_v19, 0.0  ;;  %vm2492_vm12 = vcmp.ne.f32.partialorder %v6719_v47, 0.0  ;;  %v2525_v42 = vsel %vm2493_vm11, 1, %v11922_v37  ;;  %v4142_v47 = vld [vmem:[#allocation2 + $0xe7] sm:$0xff] }
 0x1dd   : > { %v11021_v35 = vpop.permute.xlu0 %4273  ;;  %4884 = vperm.xlu1 %8468, %v4801_v53   ;;  %v4806_v32 = vsel %vm4774_vm5, 1, %v11922_v37  ;;  %v8539_v53 = vld [vmem:[%s11860_s5 + $0x1f0] sm:$0xff]  }
 0x1de   : > { %4881 = vperm.xlu0 %8467, %v4800_v46   ;;  %vm4350_vm10 = vcmp.eq.s32.totalorder %v11021_v35, 1  ;;  %v7239_v35 = vld [vmem:[%s11856_s1 + $0x800] sm:$0xff] }
 0x1df   : > { %vm7099_vm9 = vmpackc.low %vm4350_vm10, %vm4349_vm14  ;;  %vm5307_vm8 = vcmp.ne.f32.partialorder %v7239_v35, 0.0  ;;  %v6728_v35 = vld [vmem:[%s11856_s1 + $0x348] sm:$0xff] }
 0x1e0   : > { %v11030_v22 = vpop.permute.xlu1 %4282 }
 0x1e1   : > { %v11041_v34 = vpop.permute.xlu0 %4279  ;;  %2075 = vperm.xlu1 %8468, %v1988_v24   ;;  %vm4353_vm6 = vcmp.eq.s32.totalorder %v11030_v22, 1  ;;  %v2524_v24 = vsel %vm2492_vm12, 1, %v11922_v37  ;;  %v8540_v22 = vld [vmem:[%s11860_s5 + $0x1f8] sm:$0xff]  }
 0x1e2   : > { %2072 = vperm.xlu0 %8467, %v1987_v56   ;;  %7978 = vmatmul.mubr.msk.bf16.vlgmr.msra.gmra.mrb[16].mxu1 %vm7090_vm3, %v7091_v55  ;;  %vm4352_vm1 = vcmp.eq.s32.totalorder %v11041_v34, 1  ;;  %vm4775_vm3 = vcmp.ne.f32.partialorder %v7166_v17, 0.0  ;;  %v6722_v56 = vld [vmem:[%s11856_s1 + $0x318] sm:$0xff]  ;;  %v7243_v17 = vld [vmem:[%s11856_s1 + $0x820] sm:$0xff] }
 0x1e3   : > { %7981 = vmatprep.mubr.msk.bf16.mxu1 %vm7093_vm4, %v7094_v4  ;;  %8010 = vmatpush3.bf16.msra.mxu1 %v10907_v43  ;;  %v7163_v43 = vld [vmem:[%s11856_s1 + $0x7e0] sm:$0xff]  ;;  %vm4351_vm4 = vcmp.eq.s32.totalorder %v11016_v51, 1  ;;  %v4807_v28 = vsel %vm4775_vm3, 1, %v11922_v37  ;;  %v5339_v4 = vsel %vm5307_vm8, 1, %v11922_v37  ;;  %vm2495_vm3 = vcmp.ne.f32.partialorder %v6722_v56, 0.0  ;;  %v4679_v56 = vld [vmem:[#allocation2 + $0x18] sm:$0xff] }
 0x1e4   : > { %v11051_v0 = vpop.permute.xlu1 %4288  ;;  %8011 = vmatprep.subr.bf16.mxu1 %v8534_v11  ;;  %vm4772_vm13 = vcmp.ne.f32.partialorder %v7163_v43, 0.0  ;;  %vm7102_vm7 = vmpackc.low %vm4352_vm1, %vm4351_vm4  ;;  %v4130_v51 = vld [vmem:[#allocation2 + $0x87] sm:$0xff]  ;;  %v2527_v9 = vsel %vm2495_vm3, 1, %v11922_v37  ;;  %v4137_v43 = vld [vmem:[#allocation2 + $0xbf] sm:$0xff]  ;;  %vm5311_vm3 = vcmp.ne.f32.partialorder %v7243_v17, 0.0 }
 0x1e5   : > { %v11059_v62 = vpop.permute.xlu0 %4285  ;;  %4890 = vperm.xlu1 %8468, %v4803_v38   ;;  %v4804_v31 = vsel %vm4772_vm13, 1, %v11922_v37  ;;  %v7109_v7 = vpack.c.bf16 %v4131_v3, %v4130_v51  ;;  %v7242_v38 = vld [vmem:[%s11856_s1 + $0x818] sm:$0xff]  ;;  %v5343_v12 = vsel %vm5311_vm3, 1, %v11922_v37 }
 0x1e6   : > { %4887 = vperm.xlu0 %8467, %v4802_v45   ;;  %vm4354_vm2 = vcmp.eq.s32.totalorder %v11059_v62, 1  ;;  %v11176_v45 = vld [vmem:[%s11860_s5 + $0x200] sm:$0xff]   ;;  %v7241_v62 = vld [vmem:[%s11856_s1 + $0x810] sm:$0xff] }
 0x1e7   : > { %8012 = vmatpush3.bf16.msra.mxu1 %v8534_v11  ;;  %vm7105_vm10 = vmpackc.low %vm4354_vm2, %vm4353_vm6  ;;  %v6721_v11 = vld [vmem:[%s11856_s1 + $0x310] sm:$0xff]  ;;  %vm5309_vm11 = vcmp.ne.f32.partialorder %v7241_v62, 0.0 }
 0x1e8   : > { %v11069_v13 = vpop.permute.xlu1 %4294  ;;  %8013 = vmatprep.subr.bf16.mxu1 %v8535_v18  ;;  %vm2494_vm4 = vcmp.ne.f32.partialorder %v6721_v11, 0.0  ;;  %v4147_v11 = vld [vmem:[#allocation2 + $0x10f] sm:$0xff] }
 0x1e9   : > { %v11080_v20 = vpop.permute.xlu0 %4291  ;;  %2081 = vperm.xlu1 %8468, %v1990_v25   ;;  %vm4357_vm0 = vcmp.eq.s32.totalorder %v11069_v13, 1  ;;  %v2526_v25 = vsel %vm2494_vm4, 1, %v11922_v37 }
 0x1ea   : > { %2078 = vperm.xlu0 %8467, %v1989_v33   ;;  %7982 = vmatmul.mubr.msk.bf16.gmra.mrb[20].mxu1 %vm7096_vm15, %v7097_v14  ;;  %vm4356_vm13 = vcmp.eq.s32.totalorder %v11080_v20, 1  ;;  %vm5308_vm15 = vcmp.ne.f32.partialorder %v7240_v40, 0.0  ;;  %v6724_v33 = vld [vmem:[%s11856_s1 + $0x328] sm:$0xff]  ;;  %v7118_v14 = vpack.c.bf16 %v4137_v43, %v4136_v48  ;;  %v5341_v20 = vsel %vm5309_vm11, 1, %v11922_v37  ;;  %v4144_v40 = vld [vmem:[#allocation2 + $0xf7] sm:$0xff] }
 0x1eb   : > { %7985 = vmatprep.mubr.msk.bf16.mxu1 %vm7099_vm9, %v7100_v21  ;;  %8014 = vmatpush3.bf16.msra.mxu1 %v8535_v18  ;;  %vm4355_vm9 = vcmp.eq.s32.totalorder %v11051_v0, 1  ;;  %v5340_v34 = vsel %vm5308_vm15, 1, %v11922_v37  ;;  %v4135_v18 = vld [vmem:[#allocation2 + $0xaf] sm:$0xff]  ;;  %vm2497_vm15 = vcmp.ne.f32.partialorder %v6724_v33, 0.0 }
 0x1ec   : > { %v11090_v61 = vpop.permute.xlu1 %4300  ;;  %8015 = vmatprep.subr.bf16.mxu1 %v8536_v5  ;;  %vm7108_vm1 = vmpackc.low %vm4356_vm13, %vm4355_vm9  ;;  %v7115_v16 = vpack.c.bf16 %v4135_v18, %v4134_v2  ;;  %vm2496_vm9 = vcmp.ne.f32.partialorder %v6723_v29, 0.0  ;;  %v11991_v48 = vld [vmem:[#allocation32_spill] sm:$0xff]  ;;  %v7250_v29 = vld [vmem:[%s11856_s1 + $0x858] sm:$0xff] }
 0x1ed   : > { %v11098_v54 = vpop.permute.xlu0 %4297  ;;  %4896 = vperm.xlu1 %8468, %v4805_v41   ;;  %v2528_v36 = vsel %vm2496_vm9, 1, %v11922_v37 }
 0x1ee   : > { %4893 = vperm.xlu0 %8467, %v4804_v31   ;;  %vm4358_vm14 = vcmp.eq.s32.totalorder %v11098_v54, 1  ;;  %v4138_v31 = vld [vmem:[#allocation2 + $0xc7] sm:$0xff]  ;;  %v4140_v54 = vld [vmem:[#allocation2 + $0xd7] sm:$0xff] }
 0x1ef   : > { %8016 = vmatpush3.bf16.msra.mxu1 %v8536_v5  ;;  %vm7111_vm2 = vmpackc.low %vm4358_vm14, %vm4357_vm0 }
 0x1f0   : > { %v11108_v50 = vpop.permute.xlu1 %4306  ;;  %8017 = vmatprep.subr.bf16.mxu1 %v8537_v58 }
 0x1f1   : > { %v11119_v15 = vpop.permute.xlu0 %4303  ;;  %2087 = vperm.xlu1 %8468, %v1992_v63   ;;  %vm4361_vm12 = vcmp.eq.s32.totalorder %v11108_v50, 1  ;;  %v6725_v50 = vld [vmem:[%s11856_s1 + $0x330] sm:$0xff] }
 0x1f2   : > { %2084 = vperm.xlu0 %8467, %v1991_v23   ;;  %7986 = vmatmul.mubr.msk.bf16.gmra.mrb[24].mxu1 %vm7102_vm7, %v7103_v26  ;;  %vm4360_vm5 = vcmp.eq.s32.totalorder %v11119_v15, 1  ;;  %vm5310_vm7 = vcmp.ne.f32.partialorder %v7242_v38, 0.0  ;;  %v7124_v23 = vpack.c.bf16 %v4141_v30, %v4140_v54  ;;  %v7246_v15 = vld [vmem:[%s11856_s1 + $0x838] sm:$0xff]  ;;  %v1872_v38 = vld [vmem:[#allocation2 + $0x49] sm:$0xff]  ;;  %v1875_v54 = vld [vmem:[#allocation2 + $0x61] sm:$0xff] }
 0x1f3   : > { %7989 = vmatprep.mubr.msk.bf16.mxu1 %vm7105_vm10, %v7106_v6  ;;  %8018 = vmatpush3.bf16.msra.mxu1 %v8537_v58  ;;  %vm4359_vm10 = vcmp.eq.s32.totalorder %v11090_v61, 1  ;;  %v5342_v5 = vsel %vm5310_vm7, 1, %v11922_v37  ;;  %v4139_v61 = vld [vmem:[#allocation2 + $0xcf] sm:$0xff]  ;;  %v2529_v58 = vsel %vm2497_vm15, 1, %v11922_v37  ;;  %vm2499_vm7 = vcmp.ne.f32.partialorder %v6726_v59, 0.0 }
 0x1f4   : > { %v11129_v39 = vpop.permute.xlu1 %4312  ;;  %8019 = vmatprep.subr.bf16.mxu1 %v8538_v60  ;;  %vm7114_vm13 = vmpackc.low %vm4360_vm5, %vm4359_vm10  ;;  %v7121_v63 = vpack.c.bf16 %v4139_v61, %v4138_v31  ;;  %vm2498_vm10 = vcmp.ne.f32.partialorder %v6725_v50, 0.0  ;;  %v4683_v31 = vld [vmem:[#allocation2 + $0x38] sm:$0xff]  ;;  %v4684_v61 = vld [vmem:[#allocation2 + $0x40] sm:$0xff] }
 0x1f5   : > { %v11137_v46 = vpop.permute.xlu0 %4309  ;;  %4902 = vperm.xlu1 %8468, %v4807_v28   ;;  %v4143_v28 = vld [vmem:[#allocation2 + $0xef] sm:$0xff] }
 0x1f6   : > { %4899 = vperm.xlu0 %8467, %v4806_v32   ;;  %vm4362_vm6 = vcmp.eq.s32.totalorder %v11137_v46, 1  ;;  %v7245_v32 = vld [vmem:[%s11856_s1 + $0x830] sm:$0xff]  ;;  %v2530_v46 = vsel %vm2498_vm10, 1, %v11922_v37  ;;  %v7127_v3 = vpack.c.bf16 %v4143_v28, %v4142_v47  ;;  %v4685_v28 = vld [vmem:[#allocation2 + $0x48] sm:$0xff] }
 0x1f7   : > { %8020 = vmatpush3.bf16.msra.mxu1 %v8538_v60  ;;  %vm7117_vm14 = vmpackc.low %vm4362_vm6, %vm4361_vm12  ;;  %vm5313_vm15 = vcmp.ne.f32.partialorder %v7245_v32, 0.0  ;;  %v4686_v32 = vld [vmem:[#allocation2 + $0x50] sm:$0xff] }
 0x1f8   : > { %v11147_v52 = vpop.permute.xlu1 %4318  ;;  %8021 = vmatprep.subr.bf16.mxu1 %v8539_v53 }
 0x1f9   : > { %v11158_v55 = vpop.permute.xlu0 %4315  ;;  %2560 = vperm.xlu1 %8468, %v2525_v42   ;;  %vm4365_vm4 = vcmp.eq.s32.totalorder %v11147_v52, 1  ;;  %v5345_v52 = vsel %vm5313_vm15, 1, %v11922_v37 }
 0x1fa   : > { %2557 = vperm.xlu0 %8467, %v2524_v24   ;;  %7990 = vmatmul.mubr.msk.bf16.gmra.mrb[28].mxu1 %vm7108_vm1, %v7109_v7  ;;  %vm4364_vm8 = vcmp.eq.s32.totalorder %v11158_v55, 1  ;;  %vm5312_vm1 = vcmp.ne.f32.partialorder %v7244_v49, 0.0  ;;  %v7249_v49 = vld [vmem:[%s11856_s1 + $0x850] sm:$0xff] }
 0x1fb   : > { %7993 = vmatprep.mubr.msk.bf16.mxu1 %vm7111_vm2, %v7112_v44  ;;  %8022 = vmatpush3.bf16.msra.mxu1 %v8539_v53  ;;  %vm4363_vm2 = vcmp.eq.s32.totalorder %v11129_v39, 1  ;;  %v5344_v26 = vsel %vm5312_vm1, 1, %v11922_v37  ;;  %v2531_v39 = vsel %vm2499_vm7, 1, %v11922_v37  ;;  %v4145_v53 = vld [vmem:[#allocation2 + $0xff] sm:$0xff]  ;;  %vm2501_vm1 = vcmp.ne.f32.partialorder %v6728_v35, 0.0  ;;  %v4146_v44 = vld [vmem:[#allocation2 + $0x107] sm:$0xff] }
 0x1fc   : > { %v11168_v57 = vpop.permute.xlu1 %4324  ;;  %8023 = vmatprep.subr.bf16.mxu1 %v8540_v22  ;;  %vm7120_vm5 = vmpackc.low %vm4364_vm8, %vm4363_vm2  ;;  %v7130_v10 = vpack.c.bf16 %v4145_v53, %v4144_v40  ;;  %vm2500_vm2 = vcmp.ne.f32.partialorder %v6727_v8, 0.0  ;;  %v7133_v62 = vpack.c.bf16 %v4147_v11, %v4146_v44  ;;  %v4687_v40 = vld [vmem:[#allocation2 + $0x58] sm:$0xff]  ;;  %v4688_v53 = vld [vmem:[#allocation2 + $0x60] sm:$0xff] }
 0x1fd   : > { %v4322_v0 = vpop.permute.xlu0 %4321  ;;  %5375 = vperm.xlu1 %8468, %v5340_v34   ;;  %v7247_v34 = vld [vmem:[%s11856_s1 + $0x840] sm:$0xff]  ;;  %v2532_v2 = vsel %vm2500_vm2, 1, %v11922_v37  ;;  %vm5318_vm2 = vcmp.ne.f32.partialorder %v7250_v29, 0.0  ;;  %v8544_v8 = vld [vmem:[%s11860_s5 + $0x218] sm:$0xff]  }
 0x1fe   : > { %5372 = vperm.xlu0 %8467, %v5339_v4   ;;  %vm4366_vm0 = vcmp.eq.s32.totalorder %v4322_v0, 1  ;;  %v2533_v4 = vsel %vm2501_vm1, 1, %v11922_v37  ;;  %v1873_v0 = vld [vmem:[#allocation2 + $0x51] sm:$0xff] }
 0x1ff   : > { %8024 = vmatpush3.bf16.msra.mxu1 %v8540_v22  ;;  %vm7123_vm6 = vmpackc.low %vm4366_vm0, %vm4365_vm4  ;;  %v7248_v22 = vld [vmem:[%s11856_s1 + $0x848] sm:$0xff]  ;;  %v7254_v11 = vld [vmem:[%s11856_s1 + $0x878] sm:$0xff] }
 0x200   : > { %v11186_v27 = vpop.permute.xlu1 %4330  ;;  %8057 = vmatprep.subr.bf16.mxu1 %v11176_v45 }
 0x201   : > { %v11195_v13 = vpop.permute.xlu0 %4327  ;;  %2566 = vperm.xlu1 %8468, %v2527_v9   ;;  %vm4369_vm9 = vcmp.eq.s32.totalorder %v11186_v27, 1  ;;  %v6730_v9 = vld [vmem:[%s11856_s1 + $0x358] sm:$0xff]  ;;  %v11280_v27 = vpack.c.bf16 %v1873_v0, %v1872_v38  ;;  %v4690_v38 = vld [vmem:[#allocation2 + $0x70] sm:$0xff] }
 0x202   : > { %2563 = vperm.xlu0 %8467, %v2526_v25   ;;  %7994 = vmatmul.mubr.msk.bf16.gmra.mrb[0].mxu1 %vm7114_vm13, %v7115_v16  ;;  %vm4368_vm11 = vcmp.eq.s32.totalorder %v11195_v13, 1  ;;  %vm5314_vm13 = vcmp.ne.f32.partialorder %v7246_v15, 0.0  ;;  %v6729_v16 = vld [vmem:[%s11856_s1 + $0x350] sm:$0xff]  ;;  %v7252_v15 = vld [vmem:[%s11856_s1 + $0x868] sm:$0xff] }
 0x203   : > { %7997 = vmatprep.mubr.msk.bf16.mxu1 %vm7117_vm14, %v7118_v14  ;;  %vm4367_vm14 = vcmp.eq.s32.totalorder %v11168_v57, 1  ;;  %v5346_v24 = vsel %vm5314_vm13, 1, %v11922_v37  ;;  %v4680_v57 = vld [vmem:[#allocation2 + $0x20] sm:$0xff]  ;;  %v7253_v0 = vld [vmem:[%s11856_s1 + $0x870] sm:$0xff] }
 0x204   : > { %v11205_v21 = vpop.permute.xlu1 %4336  ;;  %vm7126_vm8 = vmpackc.low %vm4368_vm11, %vm4367_vm14  ;;  %vm5315_vm11 = vcmp.ne.f32.partialorder %v7247_v34, 0.0  ;;  %v7192_v25 = vpack.c.bf16 %v4680_v57, %v4679_v56  ;;  %v8545_v34 = vld [vmem:[%s11860_s5 + $0x220] sm:$0xff]   ;;  %v4689_v57 = vld [vmem:[#allocation2 + $0x68] sm:$0xff] }
 0x205   : > { %v4334_v41 = vpop.permute.xlu0 %4333  ;;  %5381 = vperm.xlu1 %8468, %v5342_v5   ;;  %v5347_v13 = vsel %vm5315_vm11, 1, %v11922_v37 }
 0x206   : > { %5378 = vperm.xlu0 %8467, %v5341_v20   ;;  %vm4370_vm12 = vcmp.eq.s32.totalorder %v4334_v41, 1  ;;  %v4681_v20 = vld [vmem:[#allocation2 + $0x28] sm:$0xff] }
 0x207   : > { %vm7129_vm0 = vmpackc.low %vm4370_vm12, %vm4369_vm9  ;;  %vm2097_vm12 = vcmp.eq.s32.totalorder %v11991_v48, 1  ;;  %vm2503_vm9 = vcmp.ne.f32.partialorder %v6730_v9, 0.0  ;;  %v1878_v48 = vld [vmem:[#allocation2 + $0x79] sm:$0xff] }
 0x208   : > { %v11217_v19 = vpop.permute.xlu1 %4809  ;;  %v2535_v41 = vsel %vm2503_vm9, 1, %v11922_v37 }
 0x209   : > { %v11223_v1 = vpop.permute.xlu0 %4339  ;;  %2572 = vperm.xlu1 %8468, %v2529_v58   ;;  %vm4904_vm7 = vcmp.eq.s32.totalorder %v11217_v19, 1  ;;  %v1874_v58 = vld [vmem:[#allocation2 + $0x59] sm:$0xff]  ;;  %v6732_v19 = vld [vmem:[%s11856_s1 + $0x368] sm:$0xff] }
 0x20a   : > { %2569 = vperm.xlu0 %8467, %v2528_v36   ;;  %7998 = vmatmul.mubr.msk.bf16.gmra.mrb[4].mxu1 %vm7120_vm5, %v7121_v63  ;;  %vm4372_vm3 = vcmp.eq.s32.totalorder %v11223_v1, 1  ;;  %vm4371_vm5 = vcmp.eq.s32.totalorder %v11205_v21, 1  ;;  %v4682_v21 = vld [vmem:[#allocation2 + $0x30] sm:$0xff]  ;;  %v8542_v63 = vld [vmem:[%s11860_s5 + $0x208] sm:$0xff]   ;;  %v7198_v1 = vpack.c.bf16 %v4684_v61, %v4683_v31  ;;  %v11319_v50 = vpack.c.bf16 %v1875_v54, %v1874_v58  ;;  %v7258_v31 = vld [vmem:[%s11856_s1 + $0x898] sm:$0xff] }
 0x20b   : > { %8001 = vmatprep.mubr.msk.bf16.mxu1 %vm7123_vm6, %v7124_v23  ;;  %vm5316_vm6 = vcmp.ne.f32.partialorder %v7248_v22, 0.0  ;;  %vm7132_vm10 = vmpackc.low %vm4372_vm3, %vm4371_vm5  ;;  %v7195_v36 = vpack.c.bf16 %v4682_v21, %v4681_v20  ;;  %v6731_v23 = vld [vmem:[%s11856_s1 + $0x360] sm:$0xff]  ;;  %v8547_v61 = vld [vmem:[%s11860_s5 + $0x230] sm:$0xff]  }
 0x20c   : > { %v11230_v60 = vpop.permute.xlu1 %4815  ;;  %v5348_v33 = vsel %vm5316_vm6, 1, %v11922_v37  ;;  %v4693_v58 = vld [vmem:[#allocation2 + $0x88] sm:$0xff]  ;;  %v4694_v54 = vld [vmem:[#allocation2 + $0x90] sm:$0xff] }
 0x20d   : > { %v4813_v6 = vpop.permute.xlu0 %4812  ;;  %5387 = vperm.xlu1 %8468, %v5344_v26   ;;  %vm4906_vm3 = vcmp.eq.s32.totalorder %v11230_v60, 1  ;;  %v5350_v26 = vsel %vm5318_vm2, 1, %v11922_v37 }
 0x20e   : > { %5384 = vperm.xlu0 %8467, %v5343_v12   ;;  %vm4905_vm4 = vcmp.eq.s32.totalorder %v4813_v6, 1  ;;  %v8543_v6 = vld [vmem:[%s11860_s5 + $0x210] sm:$0xff]  }
 0x20f   : > { %vm7191_vm13 = vmpackc.low %vm4905_vm4, %vm4904_vm7  ;;  %vm5317_vm4 = vcmp.ne.f32.partialorder %v7249_v49, 0.0 }
 0x210   : > { %v11242_v51 = vpop.permute.xlu1 %4821  ;;  %v5349_v12 = vsel %vm5317_vm4, 1, %v11922_v37 }
 0x211   : > { %v11248_v42 = vpop.permute.xlu0 %4818  ;;  %2578 = vperm.xlu1 %8468, %v2531_v39   ;;  %vm4908_vm5 = vcmp.eq.s32.totalorder %v11242_v51, 1  ;;  %v1876_v51 = vld [vmem:[#allocation2 + $0x69] sm:$0xff] }
 0x212   : > { %2575 = vperm.xlu0 %8467, %v2530_v46   ;;  %8002 = vmatmul.mubr.msk.bf16.gmra.mrb[8].mxu1 %vm7126_vm8, %v7127_v3  ;;  %vm2502_vm8 = vcmp.ne.f32.partialorder %v6729_v16, 0.0  ;;  %v1877_v3 = vld [vmem:[#allocation2 + $0x71] sm:$0xff]  ;;  %v7207_v16 = vpack.c.bf16 %v4690_v38, %v4689_v57 }
 0x213   : > { %8005 = vmatprep.mubr.msk.bf16.mxu1 %vm7129_vm0, %v7130_v10  ;;  %vm4907_vm0 = vcmp.eq.s32.totalorder %v11248_v42, 1  ;;  %v2534_v17 = vsel %vm2502_vm8, 1, %v11922_v37  ;;  %v7201_v42 = vpack.c.bf16 %v4686_v32, %v4685_v28  ;;  %v6734_v10 = vld [vmem:[%s11856_s1 + $0x378] sm:$0xff]  ;;  %v11362_v56 = vpack.c.bf16 %v1877_v3, %v1876_v51  ;;  %v7261_v51 = vld [vmem:[%s11856_s1 + $0x8b0] sm:$0xff] }
 0x214   : > { %v11255_v7 = vpop.permute.xlu1 %4827  ;;  %vm7194_vm6 = vmpackc.low %vm4907_vm0, %vm4906_vm3  ;;  %vm5320_vm0 = vcmp.ne.f32.partialorder %v7252_v15, 0.0  ;;  %v7266_v38 = vld [vmem:[%s11856_s1 + $0x8d8] sm:$0xff] }
 0x215   : > { %v11261_v55 = vpop.permute.xlu0 %4824  ;;  %5393 = vperm.xlu1 %8468, %v5346_v24   ;;  %v5352_v22 = vsel %vm5320_vm0, 1, %v11922_v37 }
 0x216   : > { %5390 = vperm.xlu0 %8467, %v5345_v52   ;;  %vm4909_vm1 = vcmp.eq.s32.totalorder %v11261_v55, 1  ;;  %v7204_v52 = vpack.c.bf16 %v4688_v53, %v4687_v40  ;;  %v7262_v53 = vld [vmem:[%s11856_s1 + $0x8b8] sm:$0xff] }
 0x218   : > { %v2022_v18 = vpop.permute.xlu1 %2021 }
 0x219   : > { %vm2098_vm14 = vcmp.eq.s32.totalorder %v2022_v18, 1  ;;  %v11278_v43 = vpop.permute.xlu0 %4830  ;;  %2584 = vperm.xlu1 %8468, %v2533_v4   ;;  %v4691_v18 = vld [vmem:[#allocation2 + $0x78] sm:$0xff] }
 0x21a   : > { %vm6683_vm15 = vmpackc.low %vm2098_vm14, %vm2097_vm12  ;;  %2581 = vperm.xlu0 %8467, %v2532_v2   ;;  %8006 = vmatmul.mubr.msk.bf16.gmra.mrb[12].mxu1 %vm7132_vm10, %v7133_v62  ;;  %vm2504_vm14 = vcmp.ne.f32.partialorder %v6731_v23, 0.0  ;;  %v4692_v62 = vld [vmem:[#allocation2 + $0x80] sm:$0xff] }
 0x21b   : > { %8025 = vmatprep.mubr.msk.bf16.mxu1 %vm7191_vm13, %v7192_v25  ;;  %7793 = vmatprep.mubr.msk.bf16.mxu0 %vm6683_vm15, %v11280_v27  ;;  %vm7197_vm10 = vmpackc.low %vm4909_vm1, %vm4908_vm5  ;;  %vm2505_vm13 = vcmp.ne.f32.partialorder %v6732_v19, 0.0  ;;  %vm4911_vm15 = vcmp.eq.s32.totalorder %v11278_v43, 1  ;;  %v2536_v46 = vsel %vm2504_vm14, 1, %v11922_v37  ;;  %vm4910_vm1 = vcmp.eq.s32.totalorder %v11255_v7, 1  ;;  %v6733_v7 = vld [vmem:[%s11856_s1 + $0x370] sm:$0xff]  ;;  %v1879_v43 = vld [vmem:[#allocation2 + $0x81] sm:$0xff] }
 0x21c   : > { %v11290_v14 = vpop.permute.xlu1 %4836  ;;  %v2537_v39 = vsel %vm2505_vm13, 1, %v11922_v37  ;;  %vm7200_vm3 = vmpackc.low %vm4911_vm15, %vm4910_vm1  ;;  %v7210_v29 = vpack.c.bf16 %v4692_v62, %v4691_v18  ;;  %v11399_v20 = vpack.c.bf16 %v1879_v43, %v1878_v48  ;;  %v1884_v48 = vld [vmem:[#allocation2 + $0xa9] sm:$0xff]  ;;  %v1885_v43 = vld [vmem:[#allocation2 + $0xb1] sm:$0xff] }
 0x21d   : > { %v11295_v5 = vpop.permute.xlu0 %4833  ;;  %5399 = vperm.xlu1 %8468, %v5348_v33   ;;  %vm4913_vm9 = vcmp.eq.s32.totalorder %v11290_v14, 1  ;;  %v7256_v33 = vld [vmem:[%s11856_s1 + $0x888] sm:$0xff] }
 0x21e   : > { %5396 = vperm.xlu0 %8467, %v5347_v13   ;;  %vm4912_vm8 = vcmp.eq.s32.totalorder %v11295_v5, 1  ;;  %v8546_v13 = vld [vmem:[%s11860_s5 + $0x228] sm:$0xff]   ;;  %v7255_v5 = vld [vmem:[%s11856_s1 + $0x880] sm:$0xff] }
 0x21f   : > { %vm7203_vm5 = vmpackc.low %vm4913_vm9, %vm4912_vm8  ;;  %vm5322_vm9 = vcmp.ne.f32.partialorder %v7254_v11, 0.0  ;;  %vm5321_vm8 = vcmp.ne.f32.partialorder %v7253_v0, 0.0  ;;  %v1887_v19 = vld [vmem:[#allocation2 + $0xc1] sm:$0xff] }
 0x220   : > { %v2028_v30 = vpop.permute.xlu1 %2027  ;;  %v5354_v21 = vsel %vm5322_vm9, 1, %v11922_v37  ;;  %v5353_v49 = vsel %vm5321_vm8, 1, %v11922_v37 }
 0x221   : > { %vm2100_vm7 = vcmp.eq.s32.totalorder %v2028_v30, 1  ;;  %v2025_v59 = vpop.permute.xlu0 %2024  ;;  %2590 = vperm.xlu1 %8468, %v2535_v41   ;;  %v7257_v30 = vld [vmem:[%s11856_s1 + $0x890] sm:$0xff] }
 0x222   : > { %vm2099_vm11 = vcmp.eq.s32.totalorder %v2025_v59, 1  ;;  %2587 = vperm.xlu0 %8467, %v2534_v17   ;;  %8026 = vmatmul.mubr.msk.bf16.vlgmr.msra.gmra.mrb[16].mxu1 %vm7194_vm6, %v7195_v36  ;;  %v1880_v59 = vld [vmem:[#allocation2 + $0x89] sm:$0xff] }
 0x223   : > { %vm6686_vm12 = vmpackc.low %vm2100_vm7, %vm2099_vm11  ;;  %8029 = vmatprep.mubr.msk.bf16.mxu1 %vm7197_vm10, %v7198_v1  ;;  %8058 = vmatpush3.bf16.msra.mxu1 %v11176_v45  ;;  %v7251_v45 = vld [vmem:[%s11856_s1 + $0x860] sm:$0xff]  ;;  %vm2507_vm10 = vcmp.ne.f32.partialorder %v6734_v10, 0.0  ;;  %vm2506_vm11 = vcmp.ne.f32.partialorder %v6733_v7, 0.0  ;;  %v1881_v1 = vld [vmem:[#allocation2 + $0x91] sm:$0xff] }
 0x224   : > { %7794 = vmatmul.mubr.msk.bf16.gmra.mrb[40].mxu0 %vm6686_vm12, %v11319_v50  ;;  %v11327_v60 = vpop.permute.xlu1 %4842  ;;  %8059 = vmatprep.subr.bf16.mxu1 %v8542_v63  ;;  %vm5319_vm2 = vcmp.ne.f32.partialorder %v7251_v45, 0.0  ;;  %v2539_v2 = vsel %vm2507_vm10, 1, %v11922_v37  ;;  %v2538_v9 = vsel %vm2506_vm11, 1, %v11922_v37  ;;  %v4695_v45 = vld [vmem:[#allocation2 + $0x98] sm:$0xff] }
 0x225   : > { %v11335_v47 = vpop.permute.xlu0 %4839  ;;  %5405 = vperm.xlu1 %8468, %v5350_v26   ;;  %v5351_v55 = vsel %vm5319_vm2, 1, %v11922_v37  ;;  %vm4915_vm12 = vcmp.eq.s32.totalorder %v11327_v60, 1  ;;  %v7213_v26 = vpack.c.bf16 %v4694_v54, %v4693_v58  ;;  %v8548_v60 = vld [vmem:[%s11860_s5 + $0x238] sm:$0xff]  }
 0x226   : > { %5402 = vperm.xlu0 %8467, %v5349_v12   ;;  %vm4914_vm13 = vcmp.eq.s32.totalorder %v11335_v47, 1  ;;  %v7260_v12 = vld [vmem:[%s11856_s1 + $0x8a8] sm:$0xff]  ;;  %v11433_v47 = vpack.c.bf16 %v1881_v1, %v1880_v59  ;;  %v1882_v10 = vld [vmem:[#allocation2 + $0x99] sm:$0xff] }
 0x227   : > { %8060 = vmatpush3.bf16.msra.mxu1 %v8542_v63  ;;  %vm7206_vm0 = vmpackc.low %vm4915_vm12, %vm4914_vm13  ;;  %vm5326_vm12 = vcmp.ne.f32.partialorder %v7258_v31, 0.0  ;;  %vm5325_vm13 = vcmp.ne.f32.partialorder %v7257_v30, 0.0  ;;  %vm5328_vm8 = vcmp.ne.f32.partialorder %v7260_v12, 0.0  ;;  %v7270_v31 = vld [vmem:[%s11856_s1 + $0x8f8] sm:$0xff]  ;;  %v4701_v12 = vld [vmem:[#allocation2 + $0xc8] sm:$0xff] }
 0x228   : > { %v2034_v35 = vpop.permute.xlu1 %2033  ;;  %8061 = vmatprep.subr.bf16.mxu1 %v8543_v6  ;;  %v5358_v28 = vsel %vm5326_vm12, 1, %v11922_v37  ;;  %v5357_v32 = vsel %vm5325_vm13, 1, %v11922_v37 }
 0x229   : > { %vm2102_vm4 = vcmp.eq.s32.totalorder %v2034_v35, 1  ;;  %v2031_v24 = vpop.permute.xlu0 %2030  ;;  %2596 = vperm.xlu1 %8468, %v2537_v39   ;;  %v4696_v39 = vld [vmem:[#allocation2 + $0xa0] sm:$0xff]  ;;  %v5360_v35 = vsel %vm5328_vm8, 1, %v11922_v37 }
 0x22a   : > { %vm2101_vm6 = vcmp.eq.s32.totalorder %v2031_v24, 1  ;;  %2593 = vperm.xlu0 %8467, %v2536_v46   ;;  %8030 = vmatmul.mubr.msk.bf16.gmra.mrb[20].mxu1 %vm7200_vm3, %v7201_v42  ;;  %v7216_v3 = vpack.c.bf16 %v4696_v39, %v4695_v45  ;;  %v1889_v45 = vld [vmem:[#allocation2 + $0xd1] sm:$0xff] }
 0x22b   : > { %vm6689_vm7 = vmpackc.low %vm2102_vm4, %vm2101_vm6  ;;  %8033 = vmatprep.mubr.msk.bf16.mxu1 %vm7203_vm5, %v7204_v52  ;;  %8062 = vmatpush3.bf16.msra.mxu1 %v8543_v6  ;;  %vm5324_vm5 = vcmp.ne.f32.partialorder %v7256_v33, 0.0  ;;  %vm5323_vm6 = vcmp.ne.f32.partialorder %v7255_v5, 0.0  ;;  %v7259_v6 = vld [vmem:[%s11856_s1 + $0x8a0] sm:$0xff]  ;;  %v7264_v52 = vld [vmem:[%s11856_s1 + $0x8c8] sm:$0xff] }
 0x22c   : > { %7797 = vmatprep.mubr.msk.bf16.mxu0 %vm6689_vm7, %v11362_v56  ;;  %v4849_v44 = vpop.permute.xlu1 %4848  ;;  %8063 = vmatprep.subr.bf16.mxu1 %v8544_v8  ;;  %v5356_v36 = vsel %vm5324_vm5, 1, %v11922_v37  ;;  %v5355_v63 = vsel %vm5323_vm6, 1, %v11922_v37  ;;  %vm5329_vm5 = vcmp.ne.f32.partialorder %v7261_v51, 0.0 }
 0x22d   : > { %v4846_v4 = vpop.permute.xlu0 %4845  ;;  %5411 = vperm.xlu1 %8468, %v5352_v22   ;;  %vm4917_vm14 = vcmp.eq.s32.totalorder %v4849_v44, 1  ;;  %v7263_v22 = vld [vmem:[%s11856_s1 + $0x8c0] sm:$0xff]  ;;  %v5361_v11 = vsel %vm5329_vm5, 1, %v11922_v37 }
 0x22e   : > { %5408 = vperm.xlu0 %8467, %v5351_v55   ;;  %vm4916_vm15 = vcmp.eq.s32.totalorder %v4846_v4, 1  ;;  %v4698_v4 = vld [vmem:[#allocation2 + $0xb0] sm:$0xff]  ;;  %vm5331_vm12 = vcmp.ne.f32.partialorder %v7263_v22, 0.0 }
 0x22f   : > { %8064 = vmatpush3.bf16.msra.mxu1 %v8544_v8  ;;  %vm7209_vm2 = vmpackc.low %vm4917_vm14, %vm4916_vm15  ;;  %v1883_v8 = vld [vmem:[#allocation2 + $0xa1] sm:$0xff]  ;;  %v4706_v22 = vld [vmem:[#allocation2 + $0xf0] sm:$0xff] }
 0x230   : > { %v2040_v25 = vpop.permute.xlu1 %2039  ;;  %8065 = vmatprep.subr.bf16.mxu1 %v8545_v34  ;;  %v11453_v55 = vpack.c.bf16 %v1883_v8, %v1882_v10  ;;  %v1891_v10 = vld [vmem:[#allocation2 + $0xe1] sm:$0xff] }
 0x231   : > { %vm2104_vm1 = vcmp.eq.s32.totalorder %v2040_v25, 1  ;;  %v2037_v14 = vpop.permute.xlu0 %2036  ;;  %2602 = vperm.xlu1 %8468, %v2539_v2   ;;  %v7265_v2 = vld [vmem:[%s11856_s1 + $0x8d0] sm:$0xff] }
 0x232   : > { %vm2103_vm3 = vcmp.eq.s32.totalorder %v2037_v14, 1  ;;  %2599 = vperm.xlu0 %8467, %v2538_v9   ;;  %8034 = vmatmul.mubr.msk.bf16.gmra.mrb[24].mxu1 %vm7206_vm0, %v7207_v16  ;;  %vm5327_vm0 = vcmp.ne.f32.partialorder %v7259_v6, 0.0  ;;  %v5363_v9 = vsel %vm5331_vm12, 1, %v11922_v37  ;;  %vm5333_vm8 = vcmp.ne.f32.partialorder %v7265_v2, 0.0  ;;  %v7268_v16 = vld [vmem:[%s11856_s1 + $0x8e8] sm:$0xff] }
 0x233   : > { %vm6692_vm4 = vmpackc.low %vm2104_vm1, %vm2103_vm3  ;;  %8037 = vmatprep.mubr.msk.bf16.mxu1 %vm7209_vm2, %v7210_v29  ;;  %8066 = vmatpush3.bf16.msra.mxu1 %v8545_v34  ;;  %v5359_v42 = vsel %vm5327_vm0, 1, %v11922_v37  ;;  %v4697_v34 = vld [vmem:[#allocation2 + $0xa8] sm:$0xff]  ;;  %v11472_v14 = vpack.c.bf16 %v1885_v43, %v1884_v48  ;;  %v5365_v5 = vsel %vm5333_vm8, 1, %v11922_v37 }
 0x234   : > { %7798 = vmatmul.mubr.msk.bf16.gmra.mrb[44].mxu0 %vm6692_vm4, %v11399_v20  ;;  %v4855_v41 = vpop.permute.xlu1 %4854  ;;  %8067 = vmatprep.subr.bf16.mxu1 %v8546_v13  ;;  %vm5330_vm4 = vcmp.ne.f32.partialorder %v7262_v53, 0.0  ;;  %v7219_v18 = vpack.c.bf16 %v4698_v4, %v4697_v34  ;;  %v4703_v53 = vld [vmem:[#allocation2 + $0xd8] sm:$0xff]  ;;  %v1892_v4 = vld [vmem:[#allocation2 + $0xe9] sm:$0xff] }
 0x235   : > { %vm4919_vm7 = vcmp.eq.s32.totalorder %v4855_v41, 1  ;;  %v4852_v17 = vpop.permute.xlu0 %4851  ;;  %5417 = vperm.xlu1 %8468, %v5354_v21   ;;  %v5362_v44 = vsel %vm5330_vm4, 1, %v11922_v37  ;;  %v4699_v21 = vld [vmem:[#allocation2 + $0xb8] sm:$0xff] }
 0x236   : > { %vm4918_vm10 = vcmp.eq.s32.totalorder %v4852_v17, 1  ;;  %5414 = vperm.xlu0 %8467, %v5353_v49   ;;  %v4700_v49 = vld [vmem:[#allocation2 + $0xc0] sm:$0xff]  ;;  %v7269_v17 = vld [vmem:[%s11856_s1 + $0x8f0] sm:$0xff] }
 0x237   : > { %vm11417_vm11 = vmpackc.low %vm4919_vm7, %vm4918_vm10  ;;  %8068 = vmatpush3.bf16.msra.mxu1 %v8546_v13  ;;  %v7267_v13 = vld [vmem:[%s11856_s1 + $0x8e0] sm:$0xff]  ;;  %v7222_v58 = vpack.c.bf16 %v4700_v49, %v4699_v21  ;;  %v4710_v21 = vld [vmem:[#allocation2 + $0x110] sm:$0xff] }
 0x238   : > { %v2046_v23 = vpop.permute.xlu1 %2045  ;;  %8069 = vmatprep.subr.bf16.mxu1 %v8547_v61  ;;  %vm5335_vm4 = vcmp.ne.f32.partialorder %v7267_v13, 0.0 }
 0x239   : > { %vm2106_vm14 = vcmp.eq.s32.totalorder %v2046_v23, 1  ;;  %v2043_v15 = vpop.permute.xlu0 %2042  ;;  %5423 = vperm.xlu1 %8468, %v5356_v36   ;;  %v5367_v30 = vsel %vm5335_vm4, 1, %v11922_v37  ;;  %v1886_v36 = vld [vmem:[#allocation2 + $0xb9] sm:$0xff] }
 0x23a   : > { %vm2105_vm15 = vcmp.eq.s32.totalorder %v2043_v15, 1  ;;  %5420 = vperm.xlu0 %8467, %v5355_v63   ;;  %8038 = vmatmul.mubr.msk.bf16.gmra.mrb[28].mxu1 %vm11417_vm11, %v7213_v26  ;;  %vm5332_vm11 = vcmp.ne.f32.partialorder %v7264_v52, 0.0  ;;  %v11485_v1 = vpack.c.bf16 %v1887_v19, %v1886_v36  ;;  %v5242_v36 = vld [vmem:[#allocation2 + $0x19] sm:$0xff]  ;;  %v5243_v19 = vld [vmem:[#allocation2 + $0x21] sm:$0xff] }
 0x23b   : > { %vm6695_vm9 = vmpackc.low %vm2106_vm14, %vm2105_vm15  ;;  %8070 = vmatpush3.bf16.msra.mxu1 %v8547_v61  ;;  %v5364_v62 = vsel %vm5332_vm11, 1, %v11922_v37  ;;  %vm5337_vm11 = vcmp.ne.f32.partialorder %v7269_v17, 0.0  ;;  %v2428_v17 = vld [vmem:[#allocation2 + $0x17] sm:$0xff] }
 0x23c   : > { %7801 = vmatprep.mubr.msk.bf16.mxu0 %vm6695_vm9, %v11433_v47  ;;  %v4861_v40 = vpop.permute.xlu1 %4860  ;;  %8071 = vmatprep.subr.bf16.mxu1 %v8548_v60  ;;  %vm5334_vm9 = vcmp.ne.f32.partialorder %v7266_v38, 0.0  ;;  %v5369_v26 = vsel %vm5337_vm11, 1, %v11922_v37 }
 0x23d   : > { %vm4921_vm1 = vcmp.eq.s32.totalorder %v4861_v40, 1  ;;  %v4858_v46 = vpop.permute.xlu0 %4857  ;;  %5429 = vperm.xlu1 %8468, %v5358_v28   ;;  %v5366_v29 = vsel %vm5334_vm9, 1, %v11922_v37 }
 0x23e   : > { %vm4920_vm2 = vcmp.eq.s32.totalorder %v4858_v46, 1  ;;  %5426 = vperm.xlu0 %8467, %v5357_v32   ;;  %v1888_v32 = vld [vmem:[#allocation2 + $0xc9] sm:$0xff]  ;;  %v4704_v46 = vld [vmem:[#allocation2 + $0xe0] sm:$0xff] }
 0x23f   : > { %vm7215_vm3 = vmpackc.low %vm4921_vm1, %vm4920_vm2  ;;  %8072 = vmatpush3.bf16.msra.mxu1 %v8548_v60  ;;  %v4702_v60 = vld [vmem:[#allocation2 + $0xd0] sm:$0xff] }
 0x240   : > { %8041 = vmatprep.mubr.msk.bf16.mxu1 %vm7215_vm3, %v7216_v3  ;;  %v2052_v24 = vpop.permute.xlu1 %2051  ;;  %vm5336_vm3 = vcmp.ne.f32.partialorder %v7268_v16, 0.0  ;;  %v7225_v28 = vpack.c.bf16 %v4702_v60, %v4701_v12  ;;  %v1895_v16 = vld [vmem:[#allocation2 + $0x101] sm:$0xff] }
 0x241   : > { %vm2108_vm6 = vcmp.eq.s32.totalorder %v2052_v24, 1  ;;  %v2049_v7 = vpop.permute.xlu0 %2048  ;;  %5435 = vperm.xlu1 %8468, %v5360_v35   ;;  %v5368_v54 = vsel %vm5336_vm3, 1, %v11922_v37  ;;  %v7228_v35 = vpack.c.bf16 %v4704_v46, %v4703_v53  ;;  %v2430_v12 = vld [vmem:[#allocation2 + $0x27] sm:$0xff]  ;;  %v2431_v53 = vld [vmem:[#allocation2 + $0x2f] sm:$0xff]  ;;  %v2432_v46 = vld [vmem:[#allocation2 + $0x37] sm:$0xff] }
 0x242   : > { %vm2107_vm7 = vcmp.eq.s32.totalorder %v2049_v7, 1  ;;  %5432 = vperm.xlu0 %8467, %v5359_v42   ;;  %v1890_v42 = vld [vmem:[#allocation2 + $0xd9] sm:$0xff]  ;;  %v4705_v7 = vld [vmem:[#allocation2 + $0xe8] sm:$0xff] }
 0x243   : > { %vm6698_vm10 = vmpackc.low %vm2108_vm6, %vm2107_vm7  ;;  %v11493_v52 = vpack.c.bf16 %v1891_v10, %v1890_v42  ;;  %v7231_v34 = vpack.c.bf16 %v4706_v22, %v4705_v7  ;;  %v5246_v42 = vld [vmem:[#allocation2 + $0x39] sm:$0xff]  ;;  %v5247_v10 = vld [vmem:[#allocation2 + $0x41] sm:$0xff] }
 0x244   : > { %7802 = vmatmul.mubr.msk.bf16.gmra.mrb[48].mxu0 %vm6698_vm10, %v11453_v55  ;;  %v4867_v57 = vpop.permute.xlu1 %4866  ;;  %vm5338_vm10 = vcmp.ne.f32.partialorder %v7270_v31, 0.0  ;;  %v7302_v7 = vpack.c.bf16 %v5247_v10, %v5246_v42  ;;  %v2433_v22 = vld [vmem:[#allocation2 + $0x3f] sm:$0xff]  ;;  %v8555_v10 = vld [vmem:[%s11863_s8 + $0x30] sm:$0xff]  }
 0x245   : > { %vm4923_vm13 = vcmp.eq.s32.totalorder %v4867_v57, 1  ;;  %v4864_v0 = vpop.permute.xlu0 %4863  ;;  %5441 = vperm.xlu1 %8468, %v5362_v44   ;;  %v5370_v23 = vsel %vm5338_vm10, 1, %v11922_v37  ;;  %v11490_v37 = vpack.c.bf16 %v1889_v45, %v1888_v32  ;;  %v1893_v57 = vld [vmem:[#allocation2 + $0xf1] sm:$0xff]  ;;  %v8553_v42 = vld [vmem:[%s11863_s8 + $0x20] sm:$0xff]  }
 0x246   : > { %vm4922_vm14 = vcmp.eq.s32.totalorder %v4864_v0, 1  ;;  %5438 = vperm.xlu0 %8467, %v5361_v11   ;;  %v11496_v2 = vpack.c.bf16 %v1893_v57, %v1892_v4  ;;  %v5245_v32 = vld [vmem:[#allocation2 + $0x31] sm:$0xff] }
 0x247   : > { %vm7218_vm15 = vmpackc.low %vm4923_vm13, %vm4922_vm14 }
 0x248   : > { %8042 = vmatmul.mubr.msk.bf16.gmra.mrb[0].mxu1 %vm7218_vm15, %v7219_v18  ;;  %v2058_v25 = vpop.permute.xlu1 %2057  ;;  %v4707_v18 = vld [vmem:[#allocation2 + $0xf8] sm:$0xff] }
 0x249   : > { %vm2110_vm0 = vcmp.eq.s32.totalorder %v2058_v25, 1  ;;  %v2055_v33 = vpop.permute.xlu0 %2054  ;;  %5447 = vperm.xlu1 %8468, %v5364_v62   ;;  %v4708_v62 = vld [vmem:[#allocation2 + $0x100] sm:$0xff] }
 0x24a   : > { %vm2109_vm1 = vcmp.eq.s32.totalorder %v2055_v33, 1  ;;  %5444 = vperm.xlu0 %8467, %v5363_v9   ;;  %v7234_v43 = vpack.c.bf16 %v4708_v62, %v4707_v18  ;;  %v1894_v25 = vld [vmem:[#allocation2 + $0xf9] sm:$0xff] }
 0x24b   : > { %vm6701_vm2 = vmpackc.low %vm2110_vm0, %vm2109_vm1  ;;  %v2436_v18 = vld [vmem:[#allocation2 + $0x57] sm:$0xff] }
 0x24c   : > { %7805 = vmatprep.mubr.msk.bf16.mxu0 %vm6701_vm2, %v11472_v14  ;;  %v4873_v41 = vpop.permute.xlu1 %4872 }
 0x24d   : > { %vm4925_vm5 = vcmp.eq.s32.totalorder %v4873_v41, 1  ;;  %v4870_v61 = vpop.permute.xlu0 %4869  ;;  %5453 = vperm.xlu1 %8468, %v5366_v29   ;;  %v11499_v29 = vpack.c.bf16 %v1895_v16, %v1894_v25  ;;  %v2437_v16 = vld [vmem:[#allocation2 + $0x5f] sm:$0xff] }
 0x24e   : > { %vm4924_vm6 = vcmp.eq.s32.totalorder %v4870_v61, 1  ;;  %5450 = vperm.xlu0 %8467, %v5365_v5   ;;  %v4709_v5 = vld [vmem:[#allocation2 + $0x108] sm:$0xff] }
 0x24f   : > { %vm7221_vm7 = vmpackc.low %vm4925_vm5, %vm4924_vm6  ;;  %v7237_v31 = vpack.c.bf16 %v4710_v21, %v4709_v5  ;;  %v2427_v61 = vld [vmem:[#allocation2 + $0xf] sm:$0xff] }
 0x250   : > { %8045 = vmatprep.mubr.msk.bf16.mxu1 %vm7221_vm7, %v7222_v58  ;;  %v2064_v63 = vpop.permute.xlu1 %2063 }
 0x251   : > { %vm2112_vm12 = vcmp.eq.s32.totalorder %v2064_v63, 1  ;;  %v2061_v59 = vpop.permute.xlu0 %2060  ;;  %5459 = vperm.xlu1 %8468, %v5368_v54  }
 0x252   : > { %vm2111_vm13 = vcmp.eq.s32.totalorder %v2061_v59, 1  ;;  %5456 = vperm.xlu0 %8467, %v5367_v30   ;;  %v6776_v30 = vpack.c.bf16 %v2428_v17, %v2427_v61 }
 0x253   : > { %vm6704_vm14 = vmpackc.low %vm2112_vm12, %vm2111_vm13 }
 0x254   : > { %7806 = vmatmul.mubr.msk.bf16.gmra.mrb[52].mxu0 %vm6704_vm14, %v11485_v1  ;;  %v4879_v15 = vpop.permute.xlu1 %4878 }
 0x255   : > { %vm4927_vm15 = vcmp.eq.s32.totalorder %v4879_v15, 1  ;;  %v4876_v6 = vpop.permute.xlu0 %4875  ;;  %5465 = vperm.xlu1 %8468, %v5370_v23   ;;  %v7296_v23 = vpack.c.bf16 %v5243_v19, %v5242_v36  ;;  %v2442_v36 = vld [vmem:[#allocation2 + $0x87] sm:$0xff] }
 0x256   : > { %vm4926_vm9 = vcmp.eq.s32.totalorder %v4876_v6, 1  ;;  %5462 = vperm.xlu0 %8467, %v5369_v26   ;;  %v2429_v26 = vld [vmem:[#allocation2 + $0x1f] sm:$0xff] }
 0x257   : > { %vm7224_vm8 = vmpackc.low %vm4927_vm15, %vm4926_vm9  ;;  %v6779_v6 = vpack.c.bf16 %v2430_v12, %v2429_v26 }
 0x258   : > { %8046 = vmatmul.mubr.msk.bf16.gmra.mrb[4].mxu1 %vm7224_vm8, %v7225_v28  ;;  %v2070_v39 = vpop.permute.xlu1 %2069  ;;  %v5244_v28 = vld [vmem:[#allocation2 + $0x29] sm:$0xff] }
 0x259   : > { %vm2114_vm0 = vcmp.eq.s32.totalorder %v2070_v39, 1  ;;  %v2067_v40 = vpop.permute.xlu0 %2066 }
 0x25a   : > { %vm2113_vm1 = vcmp.eq.s32.totalorder %v2067_v40, 1  ;;  %v7299_v40 = vpack.c.bf16 %v5245_v32, %v5244_v28 }
 0x25b   : > { %vm6707_vm2 = vmpackc.low %vm2114_vm0, %vm2113_vm1 }
 0x25c   : > { %7809 = vmatprep.mubr.msk.bf16.mxu0 %vm6707_vm2, %v11490_v37  ;;  %v4885_v51 = vpop.permute.xlu1 %4884 }
 0x25d   : > { %vm4929_vm3 = vcmp.eq.s32.totalorder %v4885_v51, 1  ;;  %v4882_v3 = vpop.permute.xlu0 %4881 }
 0x25e   : > { %vm4928_vm4 = vcmp.eq.s32.totalorder %v4882_v3, 1 }
 0x25f   : > { %vm7227_vm5 = vmpackc.low %vm4929_vm3, %vm4928_vm4 }
 0x260   : > { %8049 = vmatprep.mubr.msk.bf16.mxu1 %vm7227_vm5, %v7228_v35  ;;  %v2076_v8 = vpop.permute.xlu1 %2075  ;;  %v6782_v35 = vpack.c.bf16 %v2432_v46, %v2431_v53  ;;  %v5272_v46 = vld [vmem:[#allocation2 + $0x109] sm:$0xff] }
 0x261   : > { %vm2116_vm6 = vcmp.eq.s32.totalorder %v2076_v8, 1  ;;  %v2073_v24 = vpop.permute.xlu0 %2072 }
 0x262   : > { %vm2115_vm7 = vcmp.eq.s32.totalorder %v2073_v24, 1 }
 0x263   : > { %vm6710_vm10 = vmpackc.low %vm2116_vm6, %vm2115_vm7 }
 0x264   : > { %7810 = vmatmul.mubr.msk.bf16.gmra.mrb[56].mxu0 %vm6710_vm10, %v11493_v52  ;;  %v4891_v44 = vpop.permute.xlu1 %4890 }
 0x265   : > { %vm4931_vm11 = vcmp.eq.s32.totalorder %v4891_v44, 1  ;;  %v4888_v11 = vpop.permute.xlu0 %4887  ;;  %v2434_v44 = vld [vmem:[#allocation2 + $0x47] sm:$0xff] }
 0x266   : > { %vm4930_vm12 = vcmp.eq.s32.totalorder %v4888_v11, 1  ;;  %v6785_v4 = vpack.c.bf16 %v2434_v44, %v2433_v22 }
 0x267   : > { %vm7230_vm13 = vmpackc.low %vm4931_vm11, %vm4930_vm12 }
 0x268   : > { %8050 = vmatmul.mubr.msk.bf16.gmra.mrb[8].mxu1 %vm7230_vm13, %v7231_v34  ;;  %v2082_v38 = vpop.permute.xlu1 %2081 }
 0x269   : > { %vm2118_vm14 = vcmp.eq.s32.totalorder %v2082_v38, 1  ;;  %v2079_v0 = vpop.permute.xlu0 %2078 }
 0x26a   : > { %vm2117_vm15 = vcmp.eq.s32.totalorder %v2079_v0, 1  ;;  %v2435_v0 = vld [vmem:[#allocation2 + $0x4f] sm:$0xff] }
 0x26b   : > { %vm6713_vm9 = vmpackc.low %vm2118_vm14, %vm2117_vm15 }
 0x26c   : > { %7813 = vmatprep.mubr.msk.bf16.mxu0 %vm6713_vm9, %v11496_v2  ;;  %v4897_v9 = vpop.permute.xlu1 %4896 }
 0x26d   : > { %vm4933_vm8 = vcmp.eq.s32.totalorder %v4897_v9, 1  ;;  %v4894_v48 = vpop.permute.xlu0 %4893 }
 0x26e   : > { %vm4932_vm0 = vcmp.eq.s32.totalorder %v4894_v48, 1  ;;  %v6788_v48 = vpack.c.bf16 %v2436_v18, %v2435_v0 }
 0x26f   : > { %vm7233_vm1 = vmpackc.low %vm4933_vm8, %vm4932_vm0 }
 0x270   : > { %8053 = vmatprep.mubr.msk.bf16.mxu1 %vm7233_vm1, %v7234_v43  ;;  %v2088_v33 = vpop.permute.xlu1 %2087 }
 0x271   : > { %vm2120_vm2 = vcmp.eq.s32.totalorder %v2088_v33, 1  ;;  %v2085_v13 = vpop.permute.xlu0 %2084  ;;  %v2438_v33 = vld [vmem:[#allocation2 + $0x67] sm:$0xff] }
 0x272   : > { %vm2119_vm3 = vcmp.eq.s32.totalorder %v2085_v13, 1 }
 0x273   : > { %vm6716_vm4 = vmpackc.low %vm2120_vm2, %vm2119_vm3 }
 0x274   : > { %7814 = vmatmul.mubr.msk.bf16.gmra.mrb[60].mxu0 %vm6716_vm4, %v11499_v29  ;;  %v4903_v49 = vpop.permute.xlu1 %4902 }
 0x275   : > { %vm4935_vm5 = vcmp.eq.s32.totalorder %v4903_v49, 1  ;;  %v4900_v41 = vpop.permute.xlu0 %4899 }
 0x276   : > { %vm4934_vm6 = vcmp.eq.s32.totalorder %v4900_v41, 1  ;;  %v2439_v41 = vld [vmem:[#allocation2 + $0x6f] sm:$0xff] }
 0x277   : > { %vm7236_vm7 = vmpackc.low %vm4935_vm5, %vm4934_vm6 }
 0x278   : > { %8054 = vmatmul.mubr.msk.bf16.gmra.mrb[12].mxu1 %vm7236_vm7, %v7237_v31  ;;  %v2561_v58 = vpop.permute.xlu1 %2560  ;;  %v2440_v31 = vld [vmem:[#allocation2 + $0x77] sm:$0xff] }
 0x279   : > { %vm2653_vm10 = vcmp.eq.s32.totalorder %v2561_v58, 1  ;;  %v2558_v54 = vpop.permute.xlu0 %2557 }
 0x27a   : > { %vm2652_vm11 = vcmp.eq.s32.totalorder %v2558_v54, 1 }
 0x27b   : > { %vm6775_vm12 = vmpackc.low %vm2653_vm10, %vm2652_vm11 }
 0x27c   : > { %7833 = vmatprep.mubr.msk.bf16.mxu0 %vm6775_vm12, %v6776_v30  ;;  %v5376_v63 = vpop.permute.xlu1 %5375  ;;  %v2441_v30 = vld [vmem:[#allocation2 + $0x7f] sm:$0xff] }
 0x27d   : > { %vm5468_vm13 = vcmp.eq.s32.totalorder %v5376_v63, 1  ;;  %v5373_v59 = vpop.permute.xlu0 %5372 }
 0x27e   : > { %vm5467_vm14 = vcmp.eq.s32.totalorder %v5373_v59, 1 }
 0x27f   : > { %vm7295_vm15 = vmpackc.low %vm5468_vm13, %vm5467_vm14 }
 0x280   : > { %8073 = vmatprep.mubr.msk.bf16.mxu1 %vm7295_vm15, %v7296_v23  ;;  %v2567_v60 = vpop.permute.xlu1 %2566 }
 0x281   : > { %vm2655_vm9 = vcmp.eq.s32.totalorder %v2567_v60, 1  ;;  %v2564_v15 = vpop.permute.xlu0 %2563 }
 0x282   : > { %vm2654_vm8 = vcmp.eq.s32.totalorder %v2564_v15, 1 }
 0x283   : > { %vm6778_vm0 = vmpackc.low %vm2655_vm9, %vm2654_vm8 }
 0x284   : > { %7834 = vmatmul.mubr.msk.bf16.vlgmr.msra.gmra.mrb[32].mxu0 %vm6778_vm0, %v6779_v6  ;;  %v5382_v45 = vpop.permute.xlu1 %5381 }
 0x285   : > { %vm5470_vm1 = vcmp.eq.s32.totalorder %v5382_v45, 1  ;;  %v5379_v39 = vpop.permute.xlu0 %5378  ;;  %v8550_v45 = vld [vmem:[%s11863_s8 + $0x8] sm:$0xff]  }
 0x286   : > { %vm5469_vm2 = vcmp.eq.s32.totalorder %v5379_v39, 1 }
 0x287   : > { %vm7298_vm3 = vmpackc.low %vm5470_vm1, %vm5469_vm2 }
 0x288   : > { %8074 = vmatmul.mubr.msk.bf16.vlgmr.msra.gmra.mrb[16].mxu1 %vm7298_vm3, %v7299_v40  ;;  %v2573_v51 = vpop.permute.xlu1 %2572 }
 0x289   : > { %vm2657_vm4 = vcmp.eq.s32.totalorder %v2573_v51, 1  ;;  %v2570_v3 = vpop.permute.xlu0 %2569  ;;  %v5273_v51 = vld [vmem:[#allocation2 + $0x111] sm:$0xff] }
 0x28a   : > { %vm2656_vm5 = vcmp.eq.s32.totalorder %v2570_v3, 1 }
 0x28b   : > { %vm6781_vm6 = vmpackc.low %vm2657_vm4, %vm2656_vm5 }
 0x28c   : > { %7837 = vmatprep.mubr.msk.bf16.mxu0 %vm6781_vm6, %v6782_v35  ;;  %v5388_v8 = vpop.permute.xlu1 %5387 }
 0x28d   : > { %vm5472_vm7 = vcmp.eq.s32.totalorder %v5388_v8, 1  ;;  %v5385_v24 = vpop.permute.xlu0 %5384  ;;  %v8556_v8 = vld [vmem:[%s11863_s8 + $0x38] sm:$0xff]  }
 0x28e   : > { %vm5471_vm10 = vcmp.eq.s32.totalorder %v5385_v24, 1 }
 0x28f   : > { %vm7301_vm11 = vmpackc.low %vm5472_vm7, %vm5471_vm10 }
 0x290   : > { %8077 = vmatprep.mubr.msk.bf16.mxu1 %vm7301_vm11, %v7302_v7  ;;  %v2579_v11 = vpop.permute.xlu1 %2578 }
 0x291   : > { %vm2659_vm12 = vcmp.eq.s32.totalorder %v2579_v11, 1  ;;  %v2576_v34 = vpop.permute.xlu0 %2575 }
 0x292   : > { %vm2658_vm13 = vcmp.eq.s32.totalorder %v2576_v34, 1 }
 0x293   : > { %vm6784_vm14 = vmpackc.low %vm2659_vm12, %vm2658_vm13 }
 0x294   : > { %7838 = vmatmul.mubr.msk.bf16.gmra.mrb[36].mxu0 %vm6784_vm14, %v6785_v4  ;;  %v5394_v57 = vpop.permute.xlu1 %5393 }
 0x295   : > { %vm5474_vm15 = vcmp.eq.s32.totalorder %v5394_v57, 1  ;;  %v5391_v38 = vpop.permute.xlu0 %5390 }
 0x296   : > { %vm5473_vm9 = vcmp.eq.s32.totalorder %v5391_v38, 1 }
 0x297   : > { %vm7304_vm8 = vmpackc.low %vm5474_vm15, %vm5473_vm9 }
 0x298   : > { %8078 = vmatmul.mubr.msk.bf16.gmra.mrb[20].mxu1 %vm7304_vm8, %v11280_v27  ;;  %v2585_v62 = vpop.permute.xlu1 %2584  ;;  %v6791_v27 = vpack.c.bf16 %v2438_v33, %v2437_v16 }
 0x299   : > { %vm2661_vm0 = vcmp.eq.s32.totalorder %v2585_v62, 1  ;;  %v2582_v9 = vpop.permute.xlu0 %2581 }
 0x29a   : > { %vm2660_vm1 = vcmp.eq.s32.totalorder %v2582_v9, 1 }
 0x29b   : > { %vm6787_vm2 = vmpackc.low %vm2661_vm0, %vm2660_vm1 }
 0x29c   : > { %7841 = vmatprep.mubr.msk.bf16.mxu0 %vm6787_vm2, %v6788_v48  ;;  %v5400_v43 = vpop.permute.xlu1 %5399 }
 0x29d   : > { %vm5476_vm3 = vcmp.eq.s32.totalorder %v5400_v43, 1  ;;  %v5397_v25 = vpop.permute.xlu0 %5396 }
 0x29e   : > { %vm5475_vm4 = vcmp.eq.s32.totalorder %v5397_v25, 1 }
 0x29f   : > { %vm7307_vm5 = vmpackc.low %vm5476_vm3, %vm5475_vm4 }
 0x2a0   : > { %8081 = vmatprep.mubr.msk.bf16.mxu1 %vm7307_vm5, %v11319_v50  ;;  %v2591_v13 = vpop.permute.xlu1 %2590  ;;  %v6794_v50 = vpack.c.bf16 %v2440_v31, %v2439_v41  ;;  %v11578_v31 = vld [vmem:[%s11862_s7] ss:$0 sm:$0xff] }
 0x2a1   : > { %vm2663_vm6 = vcmp.eq.s32.totalorder %v2591_v13, 1  ;;  %v2588_v5 = vpop.permute.xlu0 %2587 }
 0x2a2   : > { %vm2662_vm7 = vcmp.eq.s32.totalorder %v2588_v5, 1 }
 0x2a3   : > { %vm6790_vm10 = vmpackc.low %vm2663_vm6, %vm2662_vm7 }
 0x2a4   : > { %7842 = vmatmul.mubr.msk.bf16.gmra.mrb[40].mxu0 %vm6790_vm10, %v6791_v27  ;;  %v5406_v21 = vpop.permute.xlu1 %5405 }
 0x2a5   : > { %vm5478_vm11 = vcmp.eq.s32.totalorder %v5406_v21, 1  ;;  %v5403_v49 = vpop.permute.xlu0 %5402  ;;  %v11573_v21 = vld [vmem:[%s11861_s6] ss:$0 sm:$0xff] }
 0x2a6   : > { %vm5477_vm12 = vcmp.eq.s32.totalorder %v5403_v49, 1 }
 0x2a7   : > { %vm7310_vm13 = vmpackc.low %vm5478_vm11, %vm5477_vm12 }
 0x2a8   : > { %8082 = vmatmul.mubr.msk.bf16.gmra.mrb[24].mxu1 %vm7310_vm13, %v11362_v56  ;;  %v2597_v61 = vpop.permute.xlu1 %2596  ;;  %v6797_v56 = vpack.c.bf16 %v2442_v36, %v2441_v30 }
 0x2a9   : > { %vm2665_vm14 = vcmp.eq.s32.totalorder %v2597_v61, 1  ;;  %v2594_v17 = vpop.permute.xlu0 %2593 }
 0x2aa   : > { %vm2664_vm15 = vcmp.eq.s32.totalorder %v2594_v17, 1 }
 0x2ab   : > { %vm6793_vm9 = vmpackc.low %vm2665_vm14, %vm2664_vm15 }
 0x2ac   : > { %7845 = vmatprep.mubr.msk.bf16.mxu0 %vm6793_vm9, %v6794_v50  ;;  %v5412_v58 = vpop.permute.xlu1 %5411 }
 0x2ad   : > { %vm5480_vm8 = vcmp.eq.s32.totalorder %v5412_v58, 1  ;;  %v5409_v54 = vpop.permute.xlu0 %5408 }
 0x2ae   : > { %vm5479_vm0 = vcmp.eq.s32.totalorder %v5409_v54, 1 }
 0x2af   : > { %vm7313_vm1 = vmpackc.low %vm5480_vm8, %vm5479_vm0 }
 0x2b0   : > { %8085 = vmatprep.mubr.msk.bf16.mxu1 %vm7313_vm1, %v11399_v20  ;;  %v2603_v19 = vpop.permute.xlu1 %2602 }
 0x2b1   : > { %vm2667_vm2 = vcmp.eq.s32.totalorder %v2603_v19, 1  ;;  %v2600_v63 = vpop.permute.xlu0 %2599 }
 0x2b2   : > { %vm2666_vm3 = vcmp.eq.s32.totalorder %v2600_v63, 1 }
 0x2b3   : > { %vm6796_vm4 = vmpackc.low %vm2667_vm2, %vm2666_vm3 }
 0x2b4   : > { %7846 = vmatmul.mubr.msk.bf16.gmra.mrb[44].mxu0 %vm6796_vm4, %v6797_v56  ;;  %v5418_v59 = vpop.permute.xlu1 %5417 }
 0x2b5   : > { %vm5482_vm5 = vcmp.eq.s32.totalorder %v5418_v59, 1  ;;  %v5415_v23 = vpop.permute.xlu0 %5414 }
 0x2b6   : > { %vm5481_vm6 = vcmp.eq.s32.totalorder %v5415_v23, 1 }
 0x2b7   : > { %vm7316_vm7 = vmpackc.low %vm5482_vm5, %vm5481_vm6 }
 0x2b8   : > { %8086 = vmatmul.mubr.msk.bf16.gmra.mrb[28].mxu1 %vm7316_vm7, %v11433_v47  ;;  %v5424_v26 = vpop.permute.xlu1 %5423 }
 0x2b9   : > { %vm5484_vm10 = vcmp.eq.s32.totalorder %v5424_v26, 1  ;;  %v5421_v12 = vpop.permute.xlu0 %5420 }
 0x2ba   : > { %vm5483_vm11 = vcmp.eq.s32.totalorder %v5421_v12, 1 }
 0x2bb   : > { %vm7319_vm12 = vmpackc.low %vm5484_vm10, %vm5483_vm11 }
 0x2bc   : > { %8089 = vmatprep.mubr.msk.bf16.mxu1 %vm7319_vm12, %v11453_v55  ;;  %v5430_v20 = vpop.permute.xlu1 %5429 }
 0x2bd   : > { %vm5486_vm13 = vcmp.eq.s32.totalorder %v5430_v20, 1  ;;  %v5427_v60 = vpop.permute.xlu0 %5426 }
 0x2be   : > { %vm5485_vm14 = vcmp.eq.s32.totalorder %v5427_v60, 1 }
 0x2bf   : > { %vm7322_vm15 = vmpackc.low %vm5486_vm13, %vm5485_vm14 }
 0x2c0   : > { %8090 = vmatmul.mubr.msk.bf16.gmra.mrb[0].mxu1 %vm7322_vm15, %v11472_v14  ;;  %v5436_v15 = vpop.permute.xlu1 %5435  ;;  %v8549_v14 = vld [vmem:[%s11863_s8] sm:$0xff]  }
 0x2c1   : > { %vm5488_vm9 = vcmp.eq.s32.totalorder %v5436_v15, 1  ;;  %v5433_v6 = vpop.permute.xlu0 %5432  ;;  %8105 = vmatprep.subr.bf16.mxu0 %v8549_v14 }
 0x2c2   : > { %vm5487_vm8 = vcmp.eq.s32.totalorder %v5433_v6, 1  ;;  %8106 = vmatpush3.bf16.msra.mxu0 %v8549_v14 }
 0x2c3   : > { %vm7325_vm0 = vmpackc.low %vm5488_vm9, %vm5487_vm8  ;;  %8107 = vmatprep.subr.bf16.mxu0 %v8550_v45 }
 0x2c4   : > { %8093 = vmatprep.mubr.msk.bf16.mxu1 %vm7325_vm0, %v11485_v1  ;;  %v5442_v47 = vpop.permute.xlu1 %5441 }
 0x2c5   : > { %vm5490_vm1 = vcmp.eq.s32.totalorder %v5442_v47, 1  ;;  %v5439_v28 = vpop.permute.xlu0 %5438 }
 0x2c6   : > { %vm5489_vm2 = vcmp.eq.s32.totalorder %v5439_v28, 1  ;;  %8108 = vmatpush3.bf16.msra.mxu0 %v8550_v45 }
 0x2c7   : > { %vm7328_vm3 = vmpackc.low %vm5490_vm1, %vm5489_vm2 }
 0x2c8   : > { %8094 = vmatmul.mubr.msk.bf16.gmra.mrb[4].mxu1 %vm7328_vm3, %v11490_v37  ;;  %v5448_v55 = vpop.permute.xlu1 %5447  ;;  %v8551_v37 = vld [vmem:[%s11863_s8 + $0x10] sm:$0xff]  }
 0x2c9   : > { %vm5492_vm4 = vcmp.eq.s32.totalorder %v5448_v55, 1  ;;  %v5445_v32 = vpop.permute.xlu0 %5444  ;;  %8109 = vmatprep.subr.bf16.mxu0 %v8551_v37 }
 0x2ca   : > { %vm5491_vm5 = vcmp.eq.s32.totalorder %v5445_v32, 1  ;;  %8110 = vmatpush3.bf16.msra.mxu0 %v8551_v37 }
 0x2cb   : > { %vm7331_vm6 = vmpackc.low %vm5492_vm4, %vm5491_vm5 }
 0x2cc   : > { %8097 = vmatprep.mubr.msk.bf16.mxu1 %vm7331_vm6, %v11493_v52  ;;  %v5454_v1 = vpop.permute.xlu1 %5453  ;;  %v8552_v52 = vld [vmem:[%s11863_s8 + $0x18] sm:$0xff]  }
 0x2cd   : > { %vm5494_vm7 = vcmp.eq.s32.totalorder %v5454_v1, 1  ;;  %v5451_v39 = vpop.permute.xlu0 %5450  ;;  %8111 = vmatprep.subr.bf16.mxu0 %v8552_v52 }
 0x2ce   : > { %vm5493_vm10 = vcmp.eq.s32.totalorder %v5451_v39, 1  ;;  %8112 = vmatpush3.bf16.msra.mxu0 %v8552_v52 }
 0x2cf   : > { %vm7334_vm11 = vmpackc.low %vm5494_vm7, %vm5493_vm10  ;;  %8113 = vmatprep.subr.bf16.mxu0 %v8553_v42 }
 0x2d0   : > { %8098 = vmatmul.mubr.msk.bf16.gmra.mrb[8].mxu1 %vm7334_vm11, %v11496_v2  ;;  %v5460_v40 = vpop.permute.xlu1 %5459  ;;  %v7341_v2 = vpack.c.bf16 %v5273_v51, %v5272_v46 }
 0x2d1   : > { %vm5496_vm12 = vcmp.eq.s32.totalorder %v5460_v40, 1  ;;  %v5457_v53 = vpop.permute.xlu0 %5456 }
 0x2d2   : > { %vm5495_vm13 = vcmp.eq.s32.totalorder %v5457_v53, 1  ;;  %8114 = vmatpush3.bf16.msra.mxu0 %v8553_v42 }
 0x2d3   : > { %vm7337_vm14 = vmpackc.low %vm5496_vm12, %vm5495_vm13 }
 0x2d4   : > { %8101 = vmatprep.mubr.msk.bf16.mxu1 %vm7337_vm14, %v11499_v29  ;;  %v5466_v3 = vpop.permute.xlu1 %5465  ;;  %v8554_v29 = vld [vmem:[%s11863_s8 + $0x28] sm:$0xff]  }
 0x2d5   : > { %vm5498_vm15 = vcmp.eq.s32.totalorder %v5466_v3, 1  ;;  %v5463_v35 = vpop.permute.xlu0 %5462  ;;  %8115 = vmatprep.subr.bf16.mxu0 %v8554_v29 }
 0x2d6   : > { %vm5497_vm9 = vcmp.eq.s32.totalorder %v5463_v35, 1  ;;  %8116 = vmatpush3.bf16.msra.mxu0 %v8554_v29 }
 0x2d7   : > { %vm7340_vm8 = vmpackc.low %vm5498_vm15, %vm5497_vm9  ;;  %8117 = vmatprep.subr.bf16.mxu0 %v8555_v10 }
 0x2d8   : > { %8102 = vmatmul.mubr.msk.bf16.gmra.mrb[12].mxu1 %vm7340_vm8, %v7341_v2 }
 0x2da   : > { %8118 = vmatpush3.bf16.msra.mxu0 %v8555_v10 }
 0x2db   : > { %8119 = vmatprep.subr.bf16.mxu0 %v8556_v8 }
 0x2de   : > { %8120 = vmatpush3.bf16.msra.mxu0 %v8556_v8 }
 0x317   : > { %v11538_v24 = vpop.f32.mrb[48].mxu0 }
 0x318   : > { %v11540_v7 = vpop.f32.mrb[49].mxu0 }
 0x319   : > { %v11542_v22 = vpop.f32.mrb[50].mxu0 }
 0x31a   : > { %v11544_v44 = vpop.f32.mrb[51].mxu0 }
 0x327   : > { %v11546_v11 = vpop.f32.mrb[52].mxu0 }
 0x328   : > { %v11548_v34 = vpop.f32.mrb[53].mxu0 }
 0x329   : > { %v11550_v4 = vpop.f32.mrb[54].mxu0 }
 0x32a   : > { %v11552_v57 = vpop.f32.mrb[55].mxu0 }
 0x337   : > { %v11554_v38 = vpop.f32.mrb[56].mxu0 }
 0x338   : > { %v11556_v0 = vpop.f32.mrb[57].mxu0 }
 0x339   : > { %v11558_v18 = vpop.f32.mrb[58].mxu0 }
 0x33a   : > { %v11560_v62 = vpop.f32.mrb[59].mxu0 }
 0x347   : > { %v11562_v9 = vpop.f32.mrb[60].mxu0 }
 0x348   : > { %v11564_v48 = vpop.f32.mrb[61].mxu0 }
 0x349   : > { %v11566_v43 = vpop.f32.mrb[62].mxu0 }
 0x34a   : > { %v11568_v25 = vpop.f32.mrb[63].mxu0 }
 0x357   : > { %v7835_v16 = vpop.f32.mrb[32].mxu0 }
 0x358   : > { %v2831_v33 = vpop.f32.mrb[33].mxu0 }
 0x359   : > { %v7836_v13 = vpop.f32.mrb[34].mxu0 }
 0x35a   : > { %v2834_v5 = vpop.f32.mrb[35].mxu0 }
 0x35b   : > { %v8075_v27 = vpop.f32.mrb[16].mxu1 }
 0x35c   : > { %v8169_v49 = vadd.f32 %v8075_v27, %v7835_v16  ;;  %v5646_v41 = vpop.f32.mrb[17].mxu1 }
 0x35d   : > { %v8170_v61 = vadd.f32 %v5646_v41, %v2831_v33  ;;  %v8076_v17 = vpop.f32.mrb[18].mxu1 }
 0x35e   : > { %v5814_v50 = vmul.f32 %v8169_v49, %v11573_v21  ;;  %v8171_v58 = vadd.f32 %v8076_v17, %v7836_v13  ;;  %v5649_v54 = vpop.f32.mrb[19].mxu1 }
 0x35f   : > { %v5812_v30 = vmul.f32 %v8170_v61, %v11573_v21  ;;  %v8172_v36 = vadd.f32 %v5649_v54, %v2834_v5 }
 0x360   : > { %v5853_v19 = vadd.f32 %v11578_v31, %v5814_v50  ;;  %v5815_v63 = vmul.f32 %v8171_v58, %v11573_v21 }
 0x361   : > { %v5851_v56 = vadd.f32 %v11578_v31, %v5812_v30  ;;  %v5813_v59 = vmul.f32 %v8172_v36, %v11573_v21 }
 0x362   : > { %v5854_v23 = vadd.f32 %v11578_v31, %v5815_v63  ;;  %v5885_v12 = vmax.f32 %v5853_v19, 0.0 }
 0x363   : > { %v5852_v26 = vadd.f32 %v11578_v31, %v5813_v59  ;;  %v5883_v60 = vmax.f32 %v5851_v56, 0.0 }
 0x364   : > { %v5886_v20 = vmax.f32 %v5854_v23, 0.0 }
 0x365   : > { %v5884_v15 = vmax.f32 %v5852_v26, 0.0 }
 0x366   : > { %v5916_v6 = vpack.c.bf16 %v5886_v20, %v5885_v12 }
 0x367   : > { %v7839_v47 = vpop.f32.mrb[36].mxu0  ;;  %v5915_v28 = vpack.c.bf16 %v5884_v15, %v5883_v60 }
 0x368   : > { %v2847_v55 = vpop.f32.mrb[37].mxu0 }
 0x369   : > { %v7840_v32 = vpop.f32.mrb[38].mxu0  ;;  %8121 = vmatprep.mubr.bf16.mxu0 %v5915_v28 }
 0x36a   : > { %v2850_v14 = vpop.f32.mrb[39].mxu0  ;;  %8122 = vmatmul.mubr.bf16.vlgmr.msra.gmra.mrb[64].mxu0 %v5916_v6 }
 0x36b   : > { %v8079_v45 = vpop.f32.mrb[20].mxu1 }
 0x36c   : > { %v8173_v1 = vadd.f32 %v8079_v45, %v7839_v47  ;;  %v5662_v39 = vpop.f32.mrb[21].mxu1 }
 0x36d   : > { %v8174_v37 = vadd.f32 %v5662_v39, %v2847_v55  ;;  %v8080_v40 = vpop.f32.mrb[22].mxu1 }
 0x36e   : > { %v5818_v53 = vmul.f32 %v8173_v1, %v11573_v21  ;;  %v8175_v52 = vadd.f32 %v8080_v40, %v7840_v32  ;;  %v5665_v46 = vpop.f32.mrb[23].mxu1 }
 0x36f   : > { %v5816_v51 = vmul.f32 %v8174_v37, %v11573_v21  ;;  %v8176_v3 = vadd.f32 %v5665_v46, %v2850_v14 }
 0x370   : > { %v5857_v35 = vadd.f32 %v11578_v31, %v5818_v53  ;;  %v5819_v2 = vmul.f32 %v8175_v52, %v11573_v21 }
 0x371   : > { %v5855_v42 = vadd.f32 %v11578_v31, %v5816_v51  ;;  %v5817_v29 = vmul.f32 %v8176_v3, %v11573_v21 }
 0x372   : > { %v5858_v10 = vadd.f32 %v11578_v31, %v5819_v2  ;;  %v5889_v16 = vmax.f32 %v5857_v35, 0.0 }
 0x373   : > { %v5856_v8 = vadd.f32 %v11578_v31, %v5817_v29  ;;  %v5887_v13 = vmax.f32 %v5855_v42, 0.0 }
 0x374   : > { %v5890_v33 = vmax.f32 %v5858_v10, 0.0 }
 0x375   : > { %v5888_v5 = vmax.f32 %v5856_v8, 0.0 }
 0x376   : > { %v5918_v27 = vpack.c.bf16 %v5890_v33, %v5889_v16 }
 0x377   : > { %v7843_v49 = vpop.f32.mrb[40].mxu0  ;;  %v5917_v41 = vpack.c.bf16 %v5888_v5, %v5887_v13 }
 0x378   : > { %v2863_v61 = vpop.f32.mrb[41].mxu0 }
 0x379   : > { %v7844_v17 = vpop.f32.mrb[42].mxu0  ;;  %8125 = vmatprep.mubr.bf16.mxu0 %v5917_v41 }
 0x37a   : > { %v2866_v50 = vpop.f32.mrb[43].mxu0  ;;  %8126 = vmatmul.mubr.bf16.gmra.mrb[68].mxu0 %v5918_v27 }
 0x37b   : > { %v8083_v58 = vpop.f32.mrb[24].mxu1 }
 0x37c   : > { %v8177_v54 = vadd.f32 %v8083_v58, %v7843_v49  ;;  %v5678_v30 = vpop.f32.mrb[25].mxu1 }
 0x37d   : > { %v8178_v36 = vadd.f32 %v5678_v30, %v2863_v61  ;;  %v8084_v19 = vpop.f32.mrb[26].mxu1 }
 0x37e   : > { %v5822_v63 = vmul.f32 %v8177_v54, %v11573_v21  ;;  %v8179_v56 = vadd.f32 %v8084_v19, %v7844_v17  ;;  %v5681_v59 = vpop.f32.mrb[27].mxu1 }
 0x37f   : > { %v5820_v23 = vmul.f32 %v8178_v36, %v11573_v21  ;;  %v8180_v26 = vadd.f32 %v5681_v59, %v2866_v50 }
 0x380   : > { %v5861_v12 = vadd.f32 %v11578_v31, %v5822_v63  ;;  %v5823_v20 = vmul.f32 %v8179_v56, %v11573_v21 }
 0x381   : > { %v5859_v60 = vadd.f32 %v11578_v31, %v5820_v23  ;;  %v5821_v15 = vmul.f32 %v8180_v26, %v11573_v21 }
 0x382   : > { %v5862_v6 = vadd.f32 %v11578_v31, %v5823_v20  ;;  %v5893_v28 = vmax.f32 %v5861_v12, 0.0 }
 0x383   : > { %v5860_v47 = vadd.f32 %v11578_v31, %v5821_v15  ;;  %v5891_v32 = vmax.f32 %v5859_v60, 0.0 }
 0x384   : > { %v5894_v55 = vmax.f32 %v5862_v6, 0.0 }
 0x385   : > { %v5892_v14 = vmax.f32 %v5860_v47, 0.0 }
 0x386   : > { %v5920_v45 = vpack.c.bf16 %v5894_v55, %v5893_v28 }
 0x387   : > { %v7847_v1 = vpop.f32.mrb[44].mxu0  ;;  %v5919_v39 = vpack.c.bf16 %v5892_v14, %v5891_v32 }
 0x388   : > { %v2879_v37 = vpop.f32.mrb[45].mxu0 }
 0x389   : > { %v7848_v40 = vpop.f32.mrb[46].mxu0  ;;  %8129 = vmatprep.mubr.bf16.mxu0 %v5919_v39 }
 0x38a   : > { %v2882_v53 = vpop.f32.mrb[47].mxu0  ;;  %8130 = vmatmul.mubr.bf16.gmra.mrb[72].mxu0 %v5920_v45 }
 0x38b   : > { %v8087_v52 = vpop.f32.mrb[28].mxu1 }
 0x38c   : > { %v8181_v46 = vadd.f32 %v8087_v52, %v7847_v1  ;;  %v5694_v51 = vpop.f32.mrb[29].mxu1 }
 0x38d   : > { %v8182_v3 = vadd.f32 %v5694_v51, %v2879_v37  ;;  %v8088_v35 = vpop.f32.mrb[30].mxu1 }
 0x38e   : > { %v5826_v2 = vmul.f32 %v8181_v46, %v11573_v21  ;;  %v8183_v42 = vadd.f32 %v8088_v35, %v7848_v40  ;;  %v5697_v29 = vpop.f32.mrb[31].mxu1 }
 0x38f   : > { %v5824_v10 = vmul.f32 %v8182_v3, %v11573_v21  ;;  %v8184_v8 = vadd.f32 %v5697_v29, %v2882_v53 }
 0x390   : > { %v5865_v16 = vadd.f32 %v11578_v31, %v5826_v2  ;;  %v5827_v33 = vmul.f32 %v8183_v42, %v11573_v21 }
 0x391   : > { %v5863_v13 = vadd.f32 %v11578_v31, %v5824_v10  ;;  %v5825_v5 = vmul.f32 %v8184_v8, %v11573_v21 }
 0x392   : > { %v5866_v27 = vadd.f32 %v11578_v31, %v5827_v33  ;;  %v5897_v61 = vmax.f32 %v5865_v16, 0.0 }
 0x393   : > { %v5864_v49 = vadd.f32 %v11578_v31, %v5825_v5  ;;  %v8091_v41 = vpop.f32.mrb[0].mxu1  ;;  %v5895_v54 = vmax.f32 %v5863_v13, 0.0 }
 0x394   : > { %v5898_v17 = vmax.f32 %v5866_v27, 0.0  ;;  %v8185_v50 = vadd.f32 %v8091_v41, %v11538_v24  ;;  %v5710_v58 = vpop.f32.mrb[1].mxu1 }
 0x395   : > { %v5896_v30 = vmax.f32 %v5864_v49, 0.0  ;;  %v8186_v36 = vadd.f32 %v5710_v58, %v11540_v7  ;;  %v8092_v19 = vpop.f32.mrb[2].mxu1 }
 0x396   : > { %v5830_v63 = vmul.f32 %v8185_v50, %v11573_v21  ;;  %v8187_v56 = vadd.f32 %v8092_v19, %v11542_v22  ;;  %v5713_v59 = vpop.f32.mrb[3].mxu1  ;;  %v5922_v23 = vpack.c.bf16 %v5898_v17, %v5897_v61 }
 0x397   : > { %v5828_v26 = vmul.f32 %v8186_v36, %v11573_v21  ;;  %v8188_v12 = vadd.f32 %v5713_v59, %v11544_v44  ;;  %v5921_v20 = vpack.c.bf16 %v5896_v30, %v5895_v54 }
 0x398   : > { %v5869_v60 = vadd.f32 %v11578_v31, %v5830_v63  ;;  %v5831_v24 = vmul.f32 %v8187_v56, %v11573_v21 }
 0x399   : > { %v5867_v15 = vadd.f32 %v11578_v31, %v5828_v26  ;;  %v5829_v7 = vmul.f32 %v8188_v12, %v11573_v21  ;;  %8133 = vmatprep.mubr.bf16.mxu0 %v5921_v20 }
 0x39a   : > { %v5870_v6 = vadd.f32 %v11578_v31, %v5831_v24  ;;  %8134 = vmatmul.mubr.bf16.gmra.mrb[76].mxu0 %v5922_v23  ;;  %v5901_v28 = vmax.f32 %v5869_v60, 0.0 }
 0x39b   : > { %v5868_v22 = vadd.f32 %v11578_v31, %v5829_v7  ;;  %v8095_v47 = vpop.f32.mrb[4].mxu1  ;;  %v5899_v14 = vmax.f32 %v5867_v15, 0.0 }
 0x39c   : > { %v5902_v55 = vmax.f32 %v5870_v6, 0.0  ;;  %v8189_v44 = vadd.f32 %v8095_v47, %v11546_v11  ;;  %v5726_v32 = vpop.f32.mrb[5].mxu1 }
 0x39d   : > { %v5900_v45 = vmax.f32 %v5868_v22, 0.0  ;;  %v8190_v1 = vadd.f32 %v5726_v32, %v11548_v34  ;;  %v8096_v39 = vpop.f32.mrb[6].mxu1 }
 0x39e   : > { %v5834_v37 = vmul.f32 %v8189_v44, %v11573_v21  ;;  %v8191_v40 = vadd.f32 %v8096_v39, %v11550_v4  ;;  %v5729_v53 = vpop.f32.mrb[7].mxu1  ;;  %v5924_v52 = vpack.c.bf16 %v5902_v55, %v5901_v28 }
 0x39f   : > { %v5832_v46 = vmul.f32 %v8190_v1, %v11573_v21  ;;  %v8192_v51 = vadd.f32 %v5729_v53, %v11552_v57  ;;  %v5923_v3 = vpack.c.bf16 %v5900_v45, %v5899_v14 }
 0x3a0   : > { %v5873_v35 = vadd.f32 %v11578_v31, %v5834_v37  ;;  %v5835_v11 = vmul.f32 %v8191_v40, %v11573_v21 }
 0x3a1   : > { %v5871_v2 = vadd.f32 %v11578_v31, %v5832_v46  ;;  %v5833_v34 = vmul.f32 %v8192_v51, %v11573_v21  ;;  %8137 = vmatprep.mubr.bf16.mxu0 %v5923_v3  ;;  %v6236_v46 = vld [vmem:[%s8807_s26 + $0x10] sm:$0xff] }
 0x3a2   : > { %v5874_v42 = vadd.f32 %v11578_v31, %v5835_v11  ;;  %8138 = vmatmul.mubr.bf16.gmra.mrb[80].mxu0 %v5924_v52  ;;  %v5905_v10 = vmax.f32 %v5873_v35, 0.0  ;;  %v6234_v11 = vld [vmem:[%s8807_s26] sm:$0xff] }
 0x3a3   : > { %v5872_v4 = vadd.f32 %v11578_v31, %v5833_v34  ;;  %v8099_v29 = vpop.f32.mrb[8].mxu1  ;;  %v5903_v33 = vmax.f32 %v5871_v2, 0.0 }
 0x3a4   : > { %v5906_v8 = vmax.f32 %v5874_v42, 0.0  ;;  %v8193_v57 = vadd.f32 %v8099_v29, %v11554_v38  ;;  %v5742_v16 = vpop.f32.mrb[9].mxu1 }
 0x3a5   : > { %v5904_v13 = vmax.f32 %v5872_v4, 0.0  ;;  %v8194_v5 = vadd.f32 %v5742_v16, %v11556_v0  ;;  %v8100_v27 = vpop.f32.mrb[10].mxu1  ;;  %v6237_v4 = vld [vmem:[%s8807_s26 + $0x18] sm:$0xff] }
 0x3a6   : > { %v5838_v49 = vmul.f32 %v8193_v57, %v11573_v21  ;;  %v8195_v41 = vadd.f32 %v8100_v27, %v11558_v18  ;;  %v5745_v61 = vpop.f32.mrb[11].mxu1  ;;  %v5926_v17 = vpack.c.bf16 %v5906_v8, %v5905_v10  ;;  %v6235_v57 = vld [vmem:[%s8807_s26 + $0x8] sm:$0xff] }
 0x3a7   : > { %v5836_v50 = vmul.f32 %v8194_v5, %v11573_v21  ;;  %v8196_v58 = vadd.f32 %v5745_v61, %v11560_v62  ;;  %v5925_v54 = vpack.c.bf16 %v5904_v13, %v5903_v33 }
 0x3a8   : > { %v5877_v30 = vadd.f32 %v11578_v31, %v5838_v49  ;;  %v5839_v38 = vmul.f32 %v8195_v41, %v11573_v21 }
 0x3a9   : > { %v5875_v36 = vadd.f32 %v11578_v31, %v5836_v50  ;;  %v5837_v0 = vmul.f32 %v8196_v58, %v11573_v21  ;;  %8141 = vmatprep.mubr.bf16.mxu0 %v5925_v54  ;;  %v6240_v54 = vld [vmem:[%s8807_s26 + $0x30] sm:$0xff] }
 0x3aa   : > { %v5878_v19 = vadd.f32 %v11578_v31, %v5839_v38  ;;  %8142 = vmatmul.mubr.bf16.gmra.mrb[84].mxu0 %v5926_v17  ;;  %v5909_v56 = vmax.f32 %v5877_v30, 0.0 }
 0x3ab   : > { %v5876_v18 = vadd.f32 %v11578_v31, %v5837_v0  ;;  %v8103_v63 = vpop.f32.mrb[12].mxu1  ;;  %v5907_v26 = vmax.f32 %v5875_v36, 0.0  ;;  %v6238_v0 = vld [vmem:[%s8807_s26 + $0x20] sm:$0xff] }
 0x3ac   : > { %v5910_v59 = vmax.f32 %v5878_v19, 0.0  ;;  %v8197_v62 = vadd.f32 %v8103_v63, %v11562_v9  ;;  %v5758_v23 = vpop.f32.mrb[13].mxu1 }
 0x3ad   : > { %v5908_v12 = vmax.f32 %v5876_v18, 0.0  ;;  %v8198_v20 = vadd.f32 %v5758_v23, %v11564_v48  ;;  %v8104_v60 = vpop.f32.mrb[14].mxu1 }
 0x3ae   : > { %v5842_v24 = vmul.f32 %v8197_v62, %v11573_v21  ;;  %v8199_v15 = vadd.f32 %v8104_v60, %v11566_v43  ;;  %v5761_v7 = vpop.f32.mrb[15].mxu1  ;;  %v5928_v6 = vpack.c.bf16 %v5910_v59, %v5909_v56  ;;  %v6241_v56 = vld [vmem:[%s8807_s26 + $0x38] sm:$0xff] }
 0x3af   : > { %v5840_v22 = vmul.f32 %v8198_v20, %v11573_v21  ;;  %v8200_v47 = vadd.f32 %v5761_v7, %v11568_v25  ;;  %v5927_v28 = vpack.c.bf16 %v5908_v12, %v5907_v26  ;;  %v6239_v26 = vld [vmem:[%s8807_s26 + $0x28] sm:$0xff] }
 0x3b0   : > { %v5881_v55 = vadd.f32 %v11578_v31, %v5842_v24  ;;  %v5843_v9 = vmul.f32 %v8199_v15, %v11573_v21 }
 0x3b1   : > { %v5879_v44 = vadd.f32 %v11578_v31, %v5840_v22  ;;  %v5841_v48 = vmul.f32 %v8200_v47, %v11573_v21  ;;  %8145 = vmatprep.mubr.bf16.mxu0 %v5927_v28  ;;  %v11663_v21 = vld [vmem:[%s11864_s9] ss:$0 sm:$0xff] }
 0x3b2   : > { %v5882_v32 = vadd.f32 %v11578_v31, %v5843_v9  ;;  %8146 = vmatmul.mubr.bf16.gmra.mrb[88].mxu0 %v5928_v6  ;;  %v5913_v14 = vmax.f32 %v5881_v55, 0.0  ;;  %v6244_v9 = vld [vmem:[%s8807_s26 + $0x50] sm:$0xff] }
 0x3b3   : > { %v5880_v43 = vadd.f32 %v11578_v31, %v5841_v48  ;;  %v5911_v25 = vmax.f32 %v5879_v44, 0.0  ;;  %v11669_v31 = vld [vmem:[%s11865_s10] ss:$0 sm:$0xff] }
 0x3b4   : > { %v5914_v45 = vmax.f32 %v5882_v32, 0.0 }
 0x3b5   : > { %v5912_v1 = vmax.f32 %v5880_v43, 0.0  ;;  %v6242_v43 = vld [vmem:[%s8807_s26 + $0x40] sm:$0xff] }
 0x3b6   : > { %v5930_v39 = vpack.c.bf16 %v5914_v45, %v5913_v14 }
 0x3b7   : > { %v5929_v37 = vpack.c.bf16 %v5912_v1, %v5911_v25  ;;  %v6245_v1 = vld [vmem:[%s8807_s26 + $0x58] sm:$0xff] }
 0x3b9   : > { %8149 = vmatprep.mubr.bf16.mxu0 %v5929_v37 }
 0x3ba   : > { %8150 = vmatmul.mubr.bf16.gmra.mrb[92].mxu0 %v5930_v39 }
 0x43d   : > { %v8123_v40 = vpop.f32.mrb[64].mxu0 }
 0x43e   : > { %v6165_v53 = vmul.f32 %v8123_v40, %v11663_v21  ;;  %v6029_v52 = vpop.f32.mrb[65].mxu0 }
 0x43f   : > { %v6163_v51 = vmul.f32 %v11663_v21, %v6029_v52  ;;  %v8124_v3 = vpop.f32.mrb[66].mxu0 }
 0x440   : > { %v6204_v35 = vadd.f32 %v11669_v31, %v6165_v53  ;;  %v6166_v2 = vmul.f32 %v8124_v3, %v11663_v21  ;;  %v6032_v34 = vpop.f32.mrb[67].mxu0  ;;  %v6243_v53 = vld [vmem:[%s8807_s26 + $0x48] sm:$0xff] }
 0x441   : > { %v6202_v42 = vadd.f32 %v11669_v31, %v6163_v51  ;;  %v6164_v29 = vmul.f32 %v11663_v21, %v6032_v34 }
 0x442   : > { %v6268_v10 = vadd.f32 %v6236_v46, %v6204_v35  ;;  %v6205_v8 = vadd.f32 %v11669_v31, %v6166_v2 }
 0x443   : > { %v6266_v16 = vadd.f32 %v6234_v11, %v6202_v42  ;;  %v6203_v33 = vadd.f32 %v11669_v31, %v6164_v29 }
 0x444   : > { %v6300_v13 = vmax.f32 %v6268_v10, 0.0  ;;  %v6269_v5 = vadd.f32 %v6237_v4, %v6205_v8  ;;  %v6248_v10 = vld [vmem:[%s8807_s26 + $0x70] sm:$0xff] }
 0x445   : > { %v6298_v27 = vmax.f32 %v6266_v16, 0.0  ;;  %v6267_v49 = vadd.f32 %v6235_v57, %v6203_v33  ;;  %v6246_v33 = vld [vmem:[%s8807_s26 + $0x60] sm:$0xff] }
 0x446   : > { %6332 = vst [vmem:[%s11685_s12 + $0x10] sm:$0xff] %v6300_v13  ;;  %v6301_v41 = vmax.f32 %v6269_v5, 0.0 }
 0x447   : > { %6330 = vst [vmem:[%s11685_s12] sm:$0xff] %v6298_v27  ;;  %v6299_v61 = vmax.f32 %v6267_v49, 0.0  ;;  %v6249_v49 = vld [vmem:[%s8807_s26 + $0x78] sm:$0xff] }
 0x448   : > { %6333 = vst [vmem:[%s11685_s12 + $0x18] sm:$0xff] %v6301_v41 }
 0x449   : > { %6331 = vst [vmem:[%s11685_s12 + $0x8] sm:$0xff] %v6299_v61 }
 0x44d   : > { %v8127_v17 = vpop.f32.mrb[68].mxu0 }
 0x44e   : > { %v6169_v50 = vmul.f32 %v8127_v17, %v11663_v21  ;;  %v6045_v58 = vpop.f32.mrb[69].mxu0 }
 0x44f   : > { %v6167_v30 = vmul.f32 %v11663_v21, %v6045_v58  ;;  %v8128_v38 = vpop.f32.mrb[70].mxu0 }
 0x450   : > { %v6208_v36 = vadd.f32 %v11669_v31, %v6169_v50  ;;  %v6170_v19 = vmul.f32 %v8128_v38, %v11663_v21  ;;  %v6048_v18 = vpop.f32.mrb[71].mxu0  ;;  %v6247_v50 = vld [vmem:[%s8807_s26 + $0x68] sm:$0xff] }
 0x451   : > { %v6206_v63 = vadd.f32 %v11669_v31, %v6167_v30  ;;  %v6168_v59 = vmul.f32 %v11663_v21, %v6048_v18 }
 0x452   : > { %v6272_v62 = vadd.f32 %v6240_v54, %v6208_v36  ;;  %v6209_v23 = vadd.f32 %v11669_v31, %v6170_v19 }
 0x453   : > { %v6270_v12 = vadd.f32 %v6238_v0, %v6206_v63  ;;  %v6207_v20 = vadd.f32 %v11669_v31, %v6168_v59 }
 0x454   : > { %v6304_v60 = vmax.f32 %v6272_v62, 0.0  ;;  %v6273_v24 = vadd.f32 %v6241_v56, %v6209_v23  ;;  %v6252_v62 = vld [vmem:[%s8807_s26 + $0x90] sm:$0xff] }
 0x455   : > { %v6302_v15 = vmax.f32 %v6270_v12, 0.0  ;;  %v6271_v7 = vadd.f32 %v6239_v26, %v6207_v20  ;;  %v6250_v20 = vld [vmem:[%s8807_s26 + $0x80] sm:$0xff] }
 0x456   : > { %6336 = vst [vmem:[%s11685_s12 + $0x30] sm:$0xff] %v6304_v60  ;;  %v6305_v6 = vmax.f32 %v6273_v24, 0.0 }
 0x457   : > { %6334 = vst [vmem:[%s11685_s12 + $0x20] sm:$0xff] %v6302_v15  ;;  %v6303_v22 = vmax.f32 %v6271_v7, 0.0  ;;  %v6253_v7 = vld [vmem:[%s8807_s26 + $0x98] sm:$0xff] }
 0x458   : > { %6337 = vst [vmem:[%s11685_s12 + $0x38] sm:$0xff] %v6305_v6 }
 0x459   : > { %6335 = vst [vmem:[%s11685_s12 + $0x28] sm:$0xff] %v6303_v22 }
 0x45d   : > { %v8131_v47 = vpop.f32.mrb[72].mxu0 }
 0x45e   : > { %v6173_v28 = vmul.f32 %v8131_v47, %v11663_v21  ;;  %v6061_v55 = vpop.f32.mrb[73].mxu0 }
 0x45f   : > { %v6171_v44 = vmul.f32 %v11663_v21, %v6061_v55  ;;  %v8132_v48 = vpop.f32.mrb[74].mxu0 }
 0x460   : > { %v6212_v32 = vadd.f32 %v11669_v31, %v6173_v28  ;;  %v6174_v14 = vmul.f32 %v8132_v48, %v11663_v21  ;;  %v6064_v45 = vpop.f32.mrb[75].mxu0  ;;  %v6251_v28 = vld [vmem:[%s8807_s26 + $0x88] sm:$0xff] }
 0x461   : > { %v6210_v25 = vadd.f32 %v11669_v31, %v6171_v44  ;;  %v6172_v39 = vmul.f32 %v11663_v21, %v6064_v45 }
 0x462   : > { %v6276_v37 = vadd.f32 %v6244_v9, %v6212_v32  ;;  %v6213_v40 = vadd.f32 %v11669_v31, %v6174_v14 }
 0x463   : > { %v6274_v52 = vadd.f32 %v6242_v43, %v6210_v25  ;;  %v6211_v46 = vadd.f32 %v11669_v31, %v6172_v39 }
 0x464   : > { %v6308_v51 = vmax.f32 %v6276_v37, 0.0  ;;  %v6277_v3 = vadd.f32 %v6245_v1, %v6213_v40  ;;  %v6256_v37 = vld [vmem:[%s8807_s26 + $0xb0] sm:$0xff] }
 0x465   : > { %v6306_v35 = vmax.f32 %v6274_v52, 0.0  ;;  %v6275_v11 = vadd.f32 %v6243_v53, %v6211_v46  ;;  %v6254_v46 = vld [vmem:[%s8807_s26 + $0xa0] sm:$0xff] }
 0x466   : > { %6340 = vst [vmem:[%s11685_s12 + $0x50] sm:$0xff] %v6308_v51  ;;  %v6309_v2 = vmax.f32 %v6277_v3, 0.0 }
 0x467   : > { %6338 = vst [vmem:[%s11685_s12 + $0x40] sm:$0xff] %v6306_v35  ;;  %v6307_v34 = vmax.f32 %v6275_v11, 0.0  ;;  %v6257_v11 = vld [vmem:[%s8807_s26 + $0xb8] sm:$0xff] }
 0x468   : > { %6341 = vst [vmem:[%s11685_s12 + $0x58] sm:$0xff] %v6309_v2 }
 0x469   : > { %6339 = vst [vmem:[%s11685_s12 + $0x48] sm:$0xff] %v6307_v34 }
 0x46d   : > { %v8135_v42 = vpop.f32.mrb[76].mxu0 }
 0x46e   : > { %v6177_v4 = vmul.f32 %v8135_v42, %v11663_v21  ;;  %v6077_v29 = vpop.f32.mrb[77].mxu0 }
 0x46f   : > { %v6175_v8 = vmul.f32 %v11663_v21, %v6077_v29  ;;  %v8136_v57 = vpop.f32.mrb[78].mxu0 }
 0x470   : > { %v6216_v16 = vadd.f32 %v11669_v31, %v6177_v4  ;;  %v6178_v13 = vmul.f32 %v8136_v57, %v11663_v21  ;;  %v6080_v5 = vpop.f32.mrb[79].mxu0  ;;  %v6255_v4 = vld [vmem:[%s8807_s26 + $0xa8] sm:$0xff] }
 0x471   : > { %v6214_v27 = vadd.f32 %v11669_v31, %v6175_v8  ;;  %v6176_v41 = vmul.f32 %v11663_v21, %v6080_v5 }
 0x472   : > { %v6280_v61 = vadd.f32 %v6248_v10, %v6216_v16  ;;  %v6217_v17 = vadd.f32 %v11669_v31, %v6178_v13 }
 0x473   : > { %v6278_v58 = vadd.f32 %v6246_v33, %v6214_v27  ;;  %v6215_v54 = vadd.f32 %v11669_v31, %v6176_v41 }
 0x474   : > { %v6312_v30 = vmax.f32 %v6280_v61, 0.0  ;;  %v6281_v38 = vadd.f32 %v6249_v49, %v6217_v17  ;;  %v6260_v61 = vld [vmem:[%s8807_s26 + $0xd0] sm:$0xff] }
 0x475   : > { %v6310_v36 = vmax.f32 %v6278_v58, 0.0  ;;  %v6279_v0 = vadd.f32 %v6247_v50, %v6215_v54  ;;  %v8139_v19 = vpop.f32.mrb[80].mxu0  ;;  %v6258_v54 = vld [vmem:[%s8807_s26 + $0xc0] sm:$0xff] }
 0x476   : > { %6344 = vst [vmem:[%s11685_s12 + $0x70] sm:$0xff] %v6312_v30  ;;  %v6313_v18 = vmax.f32 %v6281_v38, 0.0  ;;  %v6181_v63 = vmul.f32 %v8139_v19, %v11663_v21  ;;  %v6093_v56 = vpop.f32.mrb[81].mxu0 }
 0x477   : > { %6342 = vst [vmem:[%s11685_s12 + $0x60] sm:$0xff] %v6310_v36  ;;  %v6311_v59 = vmax.f32 %v6279_v0, 0.0  ;;  %v6179_v23 = vmul.f32 %v11663_v21, %v6093_v56  ;;  %v8140_v26 = vpop.f32.mrb[82].mxu0  ;;  %v6261_v0 = vld [vmem:[%s8807_s26 + $0xd8] sm:$0xff]  ;;  %v6259_v56 = vld [vmem:[%s8807_s26 + $0xc8] sm:$0xff] }
 0x478   : > { %6345 = vst [vmem:[%s11685_s12 + $0x78] sm:$0xff] %v6313_v18  ;;  %v6220_v12 = vadd.f32 %v11669_v31, %v6181_v63  ;;  %v6182_v60 = vmul.f32 %v8140_v26, %v11663_v21  ;;  %v6096_v24 = vpop.f32.mrb[83].mxu0 }
 0x479   : > { %6343 = vst [vmem:[%s11685_s12 + $0x68] sm:$0xff] %v6311_v59  ;;  %v6218_v15 = vadd.f32 %v11669_v31, %v6179_v23  ;;  %v6180_v6 = vmul.f32 %v11663_v21, %v6096_v24 }
 0x47a   : > { %v6284_v22 = vadd.f32 %v6252_v62, %v6220_v12  ;;  %v6221_v47 = vadd.f32 %v11669_v31, %v6182_v60 }
 0x47b   : > { %v6282_v55 = vadd.f32 %v6250_v20, %v6218_v15  ;;  %v6219_v9 = vadd.f32 %v11669_v31, %v6180_v6 }
 0x47c   : > { %v6316_v44 = vmax.f32 %v6284_v22, 0.0  ;;  %v6285_v48 = vadd.f32 %v6253_v7, %v6221_v47  ;;  %v6264_v22 = vld [vmem:[%s8807_s26 + $0xf0] sm:$0xff] }
 0x47d   : > { %v6314_v32 = vmax.f32 %v6282_v55, 0.0  ;;  %v6283_v43 = vadd.f32 %v6251_v28, %v6219_v9  ;;  %v8143_v14 = vpop.f32.mrb[84].mxu0  ;;  %v6262_v9 = vld [vmem:[%s8807_s26 + $0xe0] sm:$0xff] }
 0x47e   : > { %6348 = vst [vmem:[%s11685_s12 + $0x90] sm:$0xff] %v6316_v44  ;;  %v6317_v45 = vmax.f32 %v6285_v48, 0.0  ;;  %v6185_v25 = vmul.f32 %v8143_v14, %v11663_v21  ;;  %v6109_v1 = vpop.f32.mrb[85].mxu0 }
 0x47f   : > { %6346 = vst [vmem:[%s11685_s12 + $0x80] sm:$0xff] %v6314_v32  ;;  %v6315_v39 = vmax.f32 %v6283_v43, 0.0  ;;  %v6183_v40 = vmul.f32 %v11663_v21, %v6109_v1  ;;  %v8144_v53 = vpop.f32.mrb[86].mxu0  ;;  %v6265_v43 = vld [vmem:[%s8807_s26 + $0xf8] sm:$0xff]  ;;  %v6263_v1 = vld [vmem:[%s8807_s26 + $0xe8] sm:$0xff]  ;;  %s8566_s26 = scalar_lea.vmem %s11807_s29, 4096 }
 0x480   : > { %6349 = vst [vmem:[%s11685_s12 + $0x98] sm:$0xff] %v6317_v45  ;;  %v6224_v52 = vadd.f32 %v11669_v31, %v6185_v25  ;;  %v6186_v51 = vmul.f32 %v8144_v53, %v11663_v21  ;;  %v6112_v3 = vpop.f32.mrb[87].mxu0  ;;  %p8567_p11 = scmp.ne.s32.totalorder %s11807_s29, %s8566_s26  ;;  %p8574_p1 = scmp.lt.s32.totalorder %s8572_s24, %s8566_s26 }
 0x481   : > { %6347 = vst [vmem:[%s11685_s12 + $0x88] sm:$0xff] %v6315_v39  ;;  %v6222_v35 = vadd.f32 %v11669_v31, %v6183_v40  ;;  %v6184_v2 = vmul.f32 %v11663_v21, %v6112_v3 }
 0x482   : > { %v6288_v34 = vadd.f32 %v6256_v37, %v6224_v52  ;;  %v6225_v42 = vadd.f32 %v11669_v31, %v6186_v51  ;;  %p8568_p12 = pnand %p8567_p11, %p8732_p5  ;;  %p8575_p2 = por %p8574_p1, %p8573_p0 }
 0x483   : > { %v6286_v29 = vadd.f32 %v6254_v46, %v6222_v35  ;;  %v6223_v10 = vadd.f32 %v11669_v31, %v6184_v2 }
 0x484   : > { %v6320_v8 = vmax.f32 %v6288_v34, 0.0  ;;  %v6289_v57 = vadd.f32 %v6257_v11, %v6225_v42  ;;  %p8569_p13 = pneg %p8568_p12 }
 0x485   : > { %v6318_v16 = vmax.f32 %v6286_v29, 0.0  ;;  %v6287_v33 = vadd.f32 %v6255_v4, %v6223_v10  ;;  %v8147_v13 = vpop.f32.mrb[88].mxu0 }
 0x486   : > { %6352 = vst [vmem:[%s11685_s12 + $0xb0] sm:$0xff] %v6320_v8  ;;  %v6321_v5 = vmax.f32 %v6289_v57, 0.0  ;;  %v6189_v27 = vmul.f32 %v8147_v13, %v11663_v21  ;;  %v6125_v49 = vpop.f32.mrb[89].mxu0  ;;  %p8576_p3 = pnand %p8575_p2, %p8569_p13 }
 0x487   : > { %6350 = vst [vmem:[%s11685_s12 + $0xa0] sm:$0xff] %v6318_v16  ;;  %v6319_v41 = vmax.f32 %v6287_v33, 0.0  ;;  %v6187_v17 = vmul.f32 %v11663_v21, %v6125_v49  ;;  %v8148_v50 = vpop.f32.mrb[90].mxu0 }
 0x488   : > { %6353 = vst [vmem:[%s11685_s12 + $0xb8] sm:$0xff] %v6321_v5  ;;  %v6228_v58 = vadd.f32 %v11669_v31, %v6189_v27  ;;  %v6190_v30 = vmul.f32 %v8148_v50, %v11663_v21  ;;  %v6128_v38 = vpop.f32.mrb[91].mxu0 }
 0x489   : > { %6351 = vst [vmem:[%s11685_s12 + $0xa8] sm:$0xff] %v6319_v41  ;;  %v6226_v36 = vadd.f32 %v11669_v31, %v6187_v17  ;;  %v6188_v19 = vmul.f32 %v11663_v21, %v6128_v38 }
 0x48a   : > { %v6292_v18 = vadd.f32 %v6260_v61, %v6228_v58  ;;  %v6229_v63 = vadd.f32 %v11669_v31, %v6190_v30 }
 0x48b   : > { %v6290_v59 = vadd.f32 %v6258_v54, %v6226_v36  ;;  %v6227_v62 = vadd.f32 %v11669_v31, %v6188_v19 }
 0x48c   : > { %v6324_v23 = vmax.f32 %v6292_v18, 0.0  ;;  %v6293_v26 = vadd.f32 %v6261_v0, %v6229_v63 }
 0x48d   : > { %v6322_v12 = vmax.f32 %v6290_v59, 0.0  ;;  %v6291_v20 = vadd.f32 %v6259_v56, %v6227_v62  ;;  %v8151_v60 = vpop.f32.mrb[92].mxu0 }
 0x48e   : > { %6356 = vst [vmem:[%s11685_s12 + $0xd0] sm:$0xff] %v6324_v23  ;;  %v6325_v24 = vmax.f32 %v6293_v26, 0.0  ;;  %v6193_v15 = vmul.f32 %v8151_v60, %v11663_v21  ;;  %v6141_v7 = vpop.f32.mrb[93].mxu0 }
 0x48f   : > { %6354 = vst [vmem:[%s11685_s12 + $0xc0] sm:$0xff] %v6322_v12  ;;  %v6323_v6 = vmax.f32 %v6291_v20, 0.0  ;;  %v6191_v47 = vmul.f32 %v11663_v21, %v6141_v7  ;;  %v8152_v28 = vpop.f32.mrb[94].mxu0 }
 0x490   : > { %6357 = vst [vmem:[%s11685_s12 + $0xd8] sm:$0xff] %v6325_v24  ;;  %v6232_v55 = vadd.f32 %v11669_v31, %v6193_v15  ;;  %v6194_v44 = vmul.f32 %v8152_v28, %v11663_v21  ;;  %v6144_v48 = vpop.f32.mrb[95].mxu0 }
 0x491   : > { %6355 = vst [vmem:[%s11685_s12 + $0xc8] sm:$0xff] %v6323_v6  ;;  %v6230_v32 = vadd.f32 %v11669_v31, %v6191_v47  ;;  %v6192_v14 = vmul.f32 %v11663_v21, %v6144_v48 }
 0x492   : > { %v6296_v45 = vadd.f32 %v6264_v22, %v6232_v55  ;;  %v6233_v25 = vadd.f32 %v11669_v31, %v6194_v44 }
 0x493   : > { %v6294_v39 = vadd.f32 %v6262_v9, %v6230_v32  ;;  %v6231_v37 = vadd.f32 %v11669_v31, %v6192_v14 }
 0x494   : > { %v6328_v40 = vmax.f32 %v6296_v45, 0.0  ;;  %v6297_v53 = vadd.f32 %v6265_v43, %v6233_v25 }
 0x495   : > { %v6326_v52 = vmax.f32 %v6294_v39, 0.0  ;;  %v6295_v46 = vadd.f32 %v6263_v1, %v6231_v37 }
 0x496   : > { %6360 = vst [vmem:[%s11685_s12 + $0xf0] sm:$0xff] %v6328_v40  ;;  %v6329_v21 = vmax.f32 %v6297_v53, 0.0 }
 0x497   : > { %6358 = vst [vmem:[%s11685_s12 + $0xe0] sm:$0xff] %v6326_v52  ;;  %v6327_v31 = vmax.f32 %v6295_v46, 0.0 }
 0x498   : > { %6361 = vst [vmem:[%s11685_s12 + $0xf8] sm:$0xff] %v6329_v21 }
 0x499   : > { %6359 = vst [vmem:[%s11685_s12 + $0xe8] sm:$0xff] %v6327_v31 }
 0x49a   : > { %8579 = shalt.err (!%p8576_p3)
}
 0x49b   : > { %s8580_s15 = scalar_lea.hbm %s11805_s14, 4096  ;;  %s8584_s30 = scalar_lea.hbm %s11866_s11, 8192 }
 0x49c   : > { %p8581_p4 = scmp.ne.s32.totalorder %s11805_s14, %s8580_s15  ;;  %p8585_p9 = scmp.lt.u32.totalorder %s11805_s14, %s11866_s11 }
 0x49d   : > { %p8586_p10 = scmp.lt.u32.totalorder %s8584_s30, %s8580_s15  ;;  %p8588_p12 = scmp.lt.u32.totalorder %s8580_s15, %s11805_s14 }
 0x49e   : > { %p8582_p7 = pnand %p8581_p4, %p8732_p5 }
 0x49f   : > { %p8587_p11 = por %p8586_p10, %p8585_p9 }
 0x4a0   : > { %p8583_p8 = pneg %p8582_p7 }
 0x4a1   : > { %p8589_p13 = por %p8588_p12, %p8587_p11 }
 0x4a3   : > { %p8590_p0 = pnand %p8589_p13, %p8583_p8 }
 0x4a5   : > { %8593 = shalt.err (!%p8590_p0)
}
 0x4a6   : > { %s8632_s26 = smov 128   ;;  %s8633_s22 = smov 8  }
 0x4a7   : > { %8425 = dma.vmem_to_hbm [thread:$0]  (%p8732_p5), %s11807_s29, 4096, %s11805_s14, %s11814_s21, %s8632_s26, %s8632_s26, %s8633_s22  }
 0x4a8 PF: > { %p8431_p1 = scmp.ge.s32.totalorder %s8628_s20, 2  ;;  %s6391_s24 = sand.u32 1, %s8616_s17  }
 0x4a9   : > { %s6392_s15 = scalar_lea.sflag [#allocation4], %s6391_s24 }
 0x4aa   : > { %p8428_p2 = pnand %p8431_p1, %p8736_p6 }
 0x4ac   : > { %8611 = dma.done.wait (!%p8428_p2), %s6392_s15, 4096  }
 0x4ad   : > { %8613 = vsyncadd (!%p8428_p2), %s6392_s15, 4294963200  ;;  %s11994_s12 = sld [smem:[#allocation6_spill]]  ;;  %p21_p3 = scmp.ge.s32.totalorder %s8719_s23, 4  }
 0x4ae   : > { %s11995_s17 = smov %s8620_s18  ;;  %s11996_s18 = smov %s8624_s19 }
 0x4af   : > { %s11998_s20 = smov %s8719_s23  ;;  %23 = sbr.rel (!%p21_p3) target bundleno = 3 (0x3), region = 115 }
 0x4b3   : > { %s11997_s19 = smov %s11994_s12 }
 0x4b6   :  { %6397 = vsyncpa [#allocation4], 1 }
 0x4b7   :  { %6399 = vsyncpa [#allocation4 + $0x1], 1 }

</bundles_post_ra>
